<compile_context>
chip_gen: v7x
topology: tpu7x:2x2x1
jax: 0.10.0
libtpu: 0.0.40
codegen_flags: <defaults>
</compile_context>

<pallas_src>
import jax
import jax.numpy as jnp
from jax.experimental import pallas as pl
from jax.experimental.pallas import tpu as pltpu

_LANE = 128
_SUBLANE = 8


def _round_up(x, m):
    return ((x + m - 1) // m) * m


def _cdiv(a, b):
    return -(-a // b)


# ---------------------------------------------------------------------------
# Kernel: whole 5-layer MLP fused.  Weights arrive in VMEM as bf16 (MXU-native
# operand dtype); activations are cast to bf16 immediately before each matmul,
# while accumulation, bias add and tanh stay in f32.
# ---------------------------------------------------------------------------
def _mlp_kernel(x_ref,
                w1_ref, b1_ref,
                w2_ref, b2_ref,
                w3_ref, b3_ref,
                w4_ref, b4_ref,
                w5_ref, b5_ref,
                o_ref):
    def layer(h, w_ref, b_ref):
        return (jnp.dot(h.astype(jnp.bfloat16), w_ref[...],
                        preferred_element_type=jnp.float32)
                + b_ref[...])

    h = x_ref[...]
    h = jnp.tanh(layer(h, w1_ref, b1_ref))
    h = jnp.tanh(layer(h, w2_ref, b2_ref))
    h = jnp.tanh(layer(h, w3_ref, b3_ref))
    h = jnp.tanh(layer(h, w4_ref, b4_ref))
    o_ref[...] = layer(h, w5_ref, b5_ref).astype(o_ref.dtype)


# ---------------------------------------------------------------------------
# Hardware-derived configuration.
# ---------------------------------------------------------------------------
def _tpu_config():
    """Return (per-core VMEM bytes, tensorcores per chip)."""
    kind = ""
    try:
        kind = jax.devices()[0].device_kind.lower()
    except Exception:
        pass
    vmem = None
    try:
        vmem = int(pltpu.get_tpu_info().vmem_capacity_bytes)
    except Exception:
        vmem = None
    if not vmem:
        # Fallback table keyed on device kind; unknown parts get the
        # conservative (v7x-like) 64 MiB bucket.
        vmem = (128 << 20) if ("v5" in kind or "v6" in kind) else (64 << 20)
    is_v7 = ("v7" in kind) or ("7x" in kind)
    num_tc = 2 if (is_v7 or vmem <= (64 << 20)) else 1
    return vmem, num_tc


def _pad_params(params, in_width):
    """Zero-pad every layer's output width (and matching next-layer input rows)
    to lane (128) multiples and cast weights to bf16 (MXU-native operand).
    Padding is exact: tanh(0)=0 and zero rows/cols contribute 0.  Biases stay
    f32 so the bias add / tanh run in f32."""
    padded = []
    prev = in_width
    for w, b in params:
        fan_in, fan_out = w.shape
        out_pad = _round_up(fan_out, _LANE)
        wp = jnp.zeros((prev, out_pad), jnp.float32).at[:fan_in, :fan_out].set(w)
        bp = jnp.zeros((1, out_pad), jnp.float32).at[:, :fan_out].set(
            b.reshape(1, fan_out))
        padded.append((wp.astype(jnp.bfloat16), bp))
        prev = out_pad
    return padded


# Resolved lazily on the first pallas_call (None = not yet probed).
_SINGLE_BUFFER_WEIGHTS = None


def _const_specs(shapes, single_buffer):
    """Constant-block (VMEM-resident) specs for the weights/biases.  With
    pipeline_mode=pl.Buffered(1) they are single-buffered (their block index
    never changes), reclaiming the duplicated weight buffer in VMEM."""
    if single_buffer and hasattr(pl, "Buffered"):
        try:
            return [pl.BlockSpec(s, lambda i: (0, 0),
                                 pipeline_mode=pl.Buffered(1)) for s in shapes]
        except Exception:
            pass
    return [pl.BlockSpec(s, lambda i: (0, 0)) for s in shapes]


def net_forward(x, params, batch_tile=None):
    """Fused 5-layer MLP forward as a single Pallas kernel over a batch grid.

    x: (batch, n_feature) float32
    params: list of (W, b) with W shape (in, out), b shape (1, out)
    """
    global _SINGLE_BUFFER_WEIGHTS

    batch, n_feature = x.shape
    n_output = params[-1][0].shape[1]

    vmem_bytes, num_tc = _tpu_config()
    big_vmem = vmem_bytes >= (96 << 20)            # v5e / v6e: 128 MiB VMEM
    if batch_tile is None:
        batch_tile = 1024 if big_vmem else 512     # v7x: 64 MiB/TC -> smaller tile
    vmem_limit = (64 << 20) if big_vmem else (48 << 20)
    vmem_limit = min(vmem_limit, (vmem_bytes * 3) // 4)

    # Lane-pad the feature dim only when it is wide AND unaligned, so the
    # x-tile DMA and the layer-1 K dimension are lane-dense.  A small
    # n_feature (e.g. 8) stays unpadded (full-dim block is legal and cheaper).
    feat_pad = n_feature
    if n_feature > _LANE and n_feature % _LANE != 0:
        feat_pad = _round_up(n_feature, _LANE)
    if feat_pad != n_feature:
        x = jnp.pad(x, ((0, 0), (0, feat_pad - n_feature)))

    # Batch tiling: guarantee >= num_tc grid steps so the "parallel" batch axis
    # can shard across both TensorCores on v7x; for big batches prefer a step
    # count divisible by num_tc (no tail-imbalance step).
    if batch <= batch_tile:
        steps = num_tc if batch >= num_tc * _SUBLANE else 1
        tb = _round_up(_cdiv(batch, steps), _SUBLANE)
        batch_pad = _round_up(batch, tb)
    else:
        tb = batch_tile
        steps = _cdiv(batch, tb)
        if num_tc > 1:
            steps = _round_up(steps, num_tc)
        batch_pad = steps * tb
    if batch_pad != batch:
        x = jnp.pad(x, ((0, batch_pad - batch), (0, 0)))

    pparams = _pad_params(params, feat_pad)
    out_pad = pparams[-1][0].shape[1]

    flat_params = []
    for w, b in pparams:
        flat_params.extend([w, b])

    grid = (batch_pad // tb,)
    out_shape = jax.ShapeDtypeStruct((batch_pad, out_pad), jnp.float32)

    flops = 2 * batch_pad * sum(w.shape[0] * w.shape[1] for w, _ in pparams)
    transcendentals = batch_pad * sum(w.shape[1] for w, _ in pparams[:-1])
    bytes_accessed = (x.size * x.dtype.itemsize
                      + sum(p.size * p.dtype.itemsize for p in flat_params)
                      + batch_pad * out_pad * 4)

    def call(single_buffer_weights):
        # x / out tiles walk the batch; weights & biases stay VMEM-resident
        # (constant block index across all grid steps).
        in_specs = [pl.BlockSpec((tb, feat_pad), lambda i: (i, 0))]
        in_specs += _const_specs([p.shape for p in flat_params],
                                 single_buffer_weights)
        return pl.pallas_call(
            _mlp_kernel,
            out_shape=out_shape,
            grid=grid,
            in_specs=in_specs,
            out_specs=pl.BlockSpec((tb, out_pad), lambda i: (i, 0)),
            compiler_params=pltpu.CompilerParams(
                dimension_semantics=("parallel",),
                vmem_limit_bytes=int(vmem_limit),
            ),
            cost_estimate=pl.CostEstimate(
                flops=int(flops),
                transcendentals=int(transcendentals),
                bytes_accessed=int(bytes_accessed),
            ),
        )(x, *flat_params)

    if _SINGLE_BUFFER_WEIGHTS is None:
        # Probe once: if this JAX build rejects pipeline_mode=pl.Buffered(1),
        # fall back to default (double-buffered) weight specs.
        try:
            out = jax.block_until_ready(call(True))
            _SINGLE_BUFFER_WEIGHTS = True
        except Exception:
            _SINGLE_BUFFER_WEIGHTS = False
            out = call(False)
    else:
        out = call(_SINGLE_BUFFER_WEIGHTS)

    # Strip batch / lane padding back off.
    return out[:batch, :n_output]


def init_params(key, n_feature, n_output):
    """PyTorch-style uniform(-1/sqrt(fan_in), +1/sqrt(fan_in)) init."""
    sizes = [n_feature, 640, 400, 200, 140, n_output]
    params = []
    for i in range(len(sizes) - 1):
        fan_in, fan_out = sizes[i], sizes[i + 1]
        key, kw, kb = jax.random.split(key, 3)
        bound = 1.0 / jnp.sqrt(fan_in)
        w = jax.random.uniform(kw, (fan_in, fan_out), jnp.float32, -bound, bound)
        b = jax.random.uniform(kb, (1, fan_out), jnp.float32, -bound, bound)
        params.append((w, b))
    return params


def net_forward_ref(x, params):
    """Plain-JAX f32 reference for correctness check."""
    h = x
    for i, (w, b) in enumerate(params):
        h = h @ w + b
        if i < len(params) - 1:
            h = jnp.tanh(h)
    return h


if __name__ == "__main__":
    key = jax.random.PRNGKey(0)
    n_feature, n_output = 8, 3
    params = init_params(key, n_feature, n_output)

    # Tolerances are relaxed vs the f32 reference because the kernel runs the
    # matmuls with bf16 operands (f32 accumulation), as per the perf review.
    ATOL = RTOL = 5e-2

    # Small case (batch=4): exercises batch + lane padding, single/dual tile.
    key, kx = jax.random.split(key)
    x_small = jax.random.normal(kx, (4, n_feature), dtype=jnp.float32)
    out_small = jax.block_until_ready(net_forward(x_small, params))
    ref_small = net_forward_ref(x_small, params)
    assert out_small.shape == (4, n_output)
    assert jnp.allclose(out_small, ref_small, atol=ATOL, rtol=RTOL), \
        "mismatch vs reference (batch=4)"

    # Larger, non-aligned batch: exercises the multi-tile batch grid path.
    key, kx2 = jax.random.split(key)
    x_big = jax.random.normal(kx2, (600, n_feature), dtype=jnp.float32)
    out_big = jax.block_until_ready(net_forward(x_big, params))
    ref_big = net_forward_ref(x_big, params)
    assert out_big.shape == (600, n_output)
    assert jnp.allclose(out_big, ref_big, atol=ATOL, rtol=RTOL), \
        "mismatch vs reference (batch=600)"

    print("KERNEL_OK")
</pallas_src>

<mosaic_0001>
module attributes {stable_mosaic.version = 11 : i64} {
  func.func @_mlp_kernel(%arg0: i32, %arg1: memref<8x8xf32, #tpu.memory_space<vmem>>, %arg2: memref<8x640xbf16, #tpu.memory_space<vmem>>, %arg3: memref<1x640xf32, #tpu.memory_space<vmem>>, %arg4: memref<640x512xbf16, #tpu.memory_space<vmem>>, %arg5: memref<1x512xf32, #tpu.memory_space<vmem>>, %arg6: memref<512x256xbf16, #tpu.memory_space<vmem>>, %arg7: memref<1x256xf32, #tpu.memory_space<vmem>>, %arg8: memref<256x256xbf16, #tpu.memory_space<vmem>>, %arg9: memref<1x256xf32, #tpu.memory_space<vmem>>, %arg10: memref<256x128xbf16, #tpu.memory_space<vmem>>, %arg11: memref<1x128xf32, #tpu.memory_space<vmem>>, %arg12: memref<8x128xf32, #tpu.memory_space<vmem>>) attributes {dimension_semantics = [#tpu.dimension_semantics<parallel>], iteration_bounds = array<i64: 1>, scalar_prefetch = 0 : i64, scratch_operands = 0 : i64, tpu.core_type = #tpu.core_type<tc>, window_params = [{transform_indices = @transform_0, window_bounds = array<i64: 8, 8>}, {pipeline_mode = #tpu.pipeline_mode<synchronous>, transform_indices = @transform_1, window_bounds = array<i64: 8, 640>}, {pipeline_mode = #tpu.pipeline_mode<synchronous>, transform_indices = @transform_2, window_bounds = array<i64: 1, 640>}, {pipeline_mode = #tpu.pipeline_mode<synchronous>, transform_indices = @transform_3, window_bounds = array<i64: 640, 512>}, {pipeline_mode = #tpu.pipeline_mode<synchronous>, transform_indices = @transform_4, window_bounds = array<i64: 1, 512>}, {pipeline_mode = #tpu.pipeline_mode<synchronous>, transform_indices = @transform_5, window_bounds = array<i64: 512, 256>}, {pipeline_mode = #tpu.pipeline_mode<synchronous>, transform_indices = @transform_6, window_bounds = array<i64: 1, 256>}, {pipeline_mode = #tpu.pipeline_mode<synchronous>, transform_indices = @transform_7, window_bounds = array<i64: 256, 256>}, {pipeline_mode = #tpu.pipeline_mode<synchronous>, transform_indices = @transform_8, window_bounds = array<i64: 1, 256>}, {pipeline_mode = #tpu.pipeline_mode<synchronous>, transform_indices = @transform_9, window_bounds = array<i64: 256, 128>}, {pipeline_mode = #tpu.pipeline_mode<synchronous>, transform_indices = @transform_10, window_bounds = array<i64: 1, 128>}, {transform_indices = @transform_11, window_bounds = array<i64: 8, 128>}]} {
    %c0 = arith.constant 0 : index
    %c0_0 = arith.constant 0 : index
    %0 = vector.load %arg1[%c0, %c0_0] : memref<8x8xf32, #tpu.memory_space<vmem>>, vector<8x8xf32>
    %1 = arith.truncf %0 : vector<8x8xf32> to vector<8x8xbf16>
    %c0_1 = arith.constant 0 : index
    %c0_2 = arith.constant 0 : index
    %2 = vector.load %arg2[%c0_1, %c0_2] : memref<8x640xbf16, #tpu.memory_space<vmem>>, vector<8x640xbf16>
    %cst = arith.constant dense<0.000000e+00> : vector<8x640xf32>
    %3 = tpu.matmul %1, %2, %cst {dimension_numbers = #tpu.dot_dimension_numbers<[1], [0], [0], [1], [0, 0, 1, 1], [], []>} : vector<8x8xbf16>, vector<8x640xbf16>, vector<8x640xf32> -> vector<8x640xf32>
    %c0_3 = arith.constant 0 : index
    %c0_4 = arith.constant 0 : index
    %4 = vector.load %arg3[%c0_3, %c0_4] : memref<1x640xf32, #tpu.memory_space<vmem>>, vector<1x640xf32>
    %5 = vector.broadcast %4 : vector<1x640xf32> to vector<8x640xf32>
    %6 = arith.addf %3, %5 : vector<8x640xf32>
    %7 = math.tanh %6 : vector<8x640xf32>
    %8 = arith.truncf %7 : vector<8x640xf32> to vector<8x640xbf16>
    %c0_5 = arith.constant 0 : index
    %c0_6 = arith.constant 0 : index
    %9 = vector.load %arg4[%c0_5, %c0_6] : memref<640x512xbf16, #tpu.memory_space<vmem>>, vector<640x512xbf16>
    %cst_7 = arith.constant dense<0.000000e+00> : vector<8x512xf32>
    %10 = tpu.matmul %8, %9, %cst_7 {dimension_numbers = #tpu.dot_dimension_numbers<[1], [0], [0], [1], [0, 0, 1, 1], [], []>} : vector<8x640xbf16>, vector<640x512xbf16>, vector<8x512xf32> -> vector<8x512xf32>
    %c0_8 = arith.constant 0 : index
    %c0_9 = arith.constant 0 : index
    %11 = vector.load %arg5[%c0_8, %c0_9] : memref<1x512xf32, #tpu.memory_space<vmem>>, vector<1x512xf32>
    %12 = vector.broadcast %11 : vector<1x512xf32> to vector<8x512xf32>
    %13 = arith.addf %10, %12 : vector<8x512xf32>
    %14 = math.tanh %13 : vector<8x512xf32>
    %15 = arith.truncf %14 : vector<8x512xf32> to vector<8x512xbf16>
    %c0_10 = arith.constant 0 : index
    %c0_11 = arith.constant 0 : index
    %16 = vector.load %arg6[%c0_10, %c0_11] : memref<512x256xbf16, #tpu.memory_space<vmem>>, vector<512x256xbf16>
    %cst_12 = arith.constant dense<0.000000e+00> : vector<8x256xf32>
    %17 = tpu.matmul %15, %16, %cst_12 {dimension_numbers = #tpu.dot_dimension_numbers<[1], [0], [0], [1], [0, 0, 1, 1], [], []>} : vector<8x512xbf16>, vector<512x256xbf16>, vector<8x256xf32> -> vector<8x256xf32>
    %c0_13 = arith.constant 0 : index
    %c0_14 = arith.constant 0 : index
    %18 = vector.load %arg7[%c0_13, %c0_14] : memref<1x256xf32, #tpu.memory_space<vmem>>, vector<1x256xf32>
    %19 = vector.broadcast %18 : vector<1x256xf32> to vector<8x256xf32>
    %20 = arith.addf %17, %19 : vector<8x256xf32>
    %21 = math.tanh %20 : vector<8x256xf32>
    %22 = arith.truncf %21 : vector<8x256xf32> to vector<8x256xbf16>
    %c0_15 = arith.constant 0 : index
    %c0_16 = arith.constant 0 : index
    %23 = vector.load %arg8[%c0_15, %c0_16] : memref<256x256xbf16, #tpu.memory_space<vmem>>, vector<256x256xbf16>
    %cst_17 = arith.constant dense<0.000000e+00> : vector<8x256xf32>
    %24 = tpu.matmul %22, %23, %cst_17 {dimension_numbers = #tpu.dot_dimension_numbers<[1], [0], [0], [1], [0, 0, 1, 1], [], []>} : vector<8x256xbf16>, vector<256x256xbf16>, vector<8x256xf32> -> vector<8x256xf32>
    %c0_18 = arith.constant 0 : index
    %c0_19 = arith.constant 0 : index
    %25 = vector.load %arg9[%c0_18, %c0_19] : memref<1x256xf32, #tpu.memory_space<vmem>>, vector<1x256xf32>
    %26 = vector.broadcast %25 : vector<1x256xf32> to vector<8x256xf32>
    %27 = arith.addf %24, %26 : vector<8x256xf32>
    %28 = math.tanh %27 : vector<8x256xf32>
    %29 = arith.truncf %28 : vector<8x256xf32> to vector<8x256xbf16>
    %c0_20 = arith.constant 0 : index
    %c0_21 = arith.constant 0 : index
    %30 = vector.load %arg10[%c0_20, %c0_21] : memref<256x128xbf16, #tpu.memory_space<vmem>>, vector<256x128xbf16>
    %cst_22 = arith.constant dense<0.000000e+00> : vector<8x128xf32>
    %31 = tpu.matmul %29, %30, %cst_22 {dimension_numbers = #tpu.dot_dimension_numbers<[1], [0], [0], [1], [0, 0, 1, 1], [], []>} : vector<8x256xbf16>, vector<256x128xbf16>, vector<8x128xf32> -> vector<8x128xf32>
    %c0_23 = arith.constant 0 : index
    %c0_24 = arith.constant 0 : index
    %32 = vector.load %arg11[%c0_23, %c0_24] : memref<1x128xf32, #tpu.memory_space<vmem>>, vector<1x128xf32>
    %33 = vector.broadcast %32 : vector<1x128xf32> to vector<8x128xf32>
    %34 = arith.addf %31, %33 : vector<8x128xf32>
    %c0_25 = arith.constant 0 : index
    %c0_26 = arith.constant 0 : index
    %35 = vector.load %arg12[%c0_25, %c0_26] : memref<8x128xf32, #tpu.memory_space<vmem>>, vector<8x128xf32>
    tpu.vector_store %arg12[%c0_25, %c0_26], %34 {strides = array<i32>} : memref<8x128xf32, #tpu.memory_space<vmem>>, vector<8x128xf32>,
    return
  }
  func.func @transform_0(%arg0: i32) -> (i32, i32) {
    %c0_i32 = arith.constant 0 : i32
    %c0_i32_0 = arith.constant 0 : i32
    return %arg0, %c0_i32 : i32, i32
  }
  func.func @transform_1(%arg0: i32) -> (i32, i32) {
    %c0_i32 = arith.constant 0 : i32
    %c0_i32_0 = arith.constant 0 : i32
    %c0_i32_1 = arith.constant 0 : i32
    return %c0_i32, %c0_i32_0 : i32, i32
  }
  func.func @transform_2(%arg0: i32) -> (i32, i32) {
    %c0_i32 = arith.constant 0 : i32
    %c0_i32_0 = arith.constant 0 : i32
    %c0_i32_1 = arith.constant 0 : i32
    return %c0_i32, %c0_i32_0 : i32, i32
  }
  func.func @transform_3(%arg0: i32) -> (i32, i32) {
    %c0_i32 = arith.constant 0 : i32
    %c0_i32_0 = arith.constant 0 : i32
    %c0_i32_1 = arith.constant 0 : i32
    return %c0_i32, %c0_i32_0 : i32, i32
  }
  func.func @transform_4(%arg0: i32) -> (i32, i32) {
    %c0_i32 = arith.constant 0 : i32
    %c0_i32_0 = arith.constant 0 : i32
    %c0_i32_1 = arith.constant 0 : i32
    return %c0_i32, %c0_i32_0 : i32, i32
  }
  func.func @transform_5(%arg0: i32) -> (i32, i32) {
    %c0_i32 = arith.constant 0 : i32
    %c0_i32_0 = arith.constant 0 : i32
    %c0_i32_1 = arith.constant 0 : i32
    return %c0_i32, %c0_i32_0 : i32, i32
  }
  func.func @transform_6(%arg0: i32) -> (i32, i32) {
    %c0_i32 = arith.constant 0 : i32
    %c0_i32_0 = arith.constant 0 : i32
    %c0_i32_1 = arith.constant 0 : i32
    return %c0_i32, %c0_i32_0 : i32, i32
  }
  func.func @transform_7(%arg0: i32) -> (i32, i32) {
    %c0_i32 = arith.constant 0 : i32
    %c0_i32_0 = arith.constant 0 : i32
    %c0_i32_1 = arith.constant 0 : i32
    return %c0_i32, %c0_i32_0 : i32, i32
  }
  func.func @transform_8(%arg0: i32) -> (i32, i32) {
    %c0_i32 = arith.constant 0 : i32
    %c0_i32_0 = arith.constant 0 : i32
    %c0_i32_1 = arith.constant 0 : i32
    return %c0_i32, %c0_i32_0 : i32, i32
  }
  func.func @transform_9(%arg0: i32) -> (i32, i32) {
    %c0_i32 = arith.constant 0 : i32
    %c0_i32_0 = arith.constant 0 : i32
    %c0_i32_1 = arith.constant 0 : i32
    return %c0_i32, %c0_i32_0 : i32, i32
  }
  func.func @transform_10(%arg0: i32) -> (i32, i32) {
    %c0_i32 = arith.constant 0 : i32
    %c0_i32_0 = arith.constant 0 : i32
    %c0_i32_1 = arith.constant 0 : i32
    return %c0_i32, %c0_i32_0 : i32, i32
  }
  func.func @transform_11(%arg0: i32) -> (i32, i32) {
    %c0_i32 = arith.constant 0 : i32
    %c0_i32_0 = arith.constant 0 : i32
    return %arg0, %c0_i32 : i32, i32
  }
}

module attributes {stable_mosaic.version = 11 : i64} {
  func.func @_mlp_kernel(%arg0: i32, %arg1: memref<8x8xf32, #tpu.memory_space<vmem>>, %arg2: memref<8x640xbf16, #tpu.memory_space<vmem>>, %arg3: memref<1x640xf32, #tpu.memory_space<vmem>>, %arg4: memref<640x512xbf16, #tpu.memory_space<vmem>>, %arg5: memref<1x512xf32, #tpu.memory_space<vmem>>, %arg6: memref<512x256xbf16, #tpu.memory_space<vmem>>, %arg7: memref<1x256xf32, #tpu.memory_space<vmem>>, %arg8: memref<256x256xbf16, #tpu.memory_space<vmem>>, %arg9: memref<1x256xf32, #tpu.memory_space<vmem>>, %arg10: memref<256x128xbf16, #tpu.memory_space<vmem>>, %arg11: memref<1x128xf32, #tpu.memory_space<vmem>>, %arg12: memref<8x128xf32, #tpu.memory_space<vmem>>) attributes {dimension_semantics = [#tpu.dimension_semantics<parallel>], iteration_bounds = array<i64: 1>, scalar_prefetch = 0 : i64, scratch_operands = 0 : i64, tpu.core_type = #tpu.core_type<tc>, window_params = [{transform_indices = @transform_0, window_bounds = array<i64: 8, 8>}, {pipeline_mode = #tpu.pipeline_mode<synchronous>, transform_indices = @transform_1, window_bounds = array<i64: 8, 640>}, {pipeline_mode = #tpu.pipeline_mode<synchronous>, transform_indices = @transform_2, window_bounds = array<i64: 1, 640>}, {pipeline_mode = #tpu.pipeline_mode<synchronous>, transform_indices = @transform_3, window_bounds = array<i64: 640, 512>}, {pipeline_mode = #tpu.pipeline_mode<synchronous>, transform_indices = @transform_4, window_bounds = array<i64: 1, 512>}, {pipeline_mode = #tpu.pipeline_mode<synchronous>, transform_indices = @transform_5, window_bounds = array<i64: 512, 256>}, {pipeline_mode = #tpu.pipeline_mode<synchronous>, transform_indices = @transform_6, window_bounds = array<i64: 1, 256>}, {pipeline_mode = #tpu.pipeline_mode<synchronous>, transform_indices = @transform_7, window_bounds = array<i64: 256, 256>}, {pipeline_mode = #tpu.pipeline_mode<synchronous>, transform_indices = @transform_8, window_bounds = array<i64: 1, 256>}, {pipeline_mode = #tpu.pipeline_mode<synchronous>, transform_indices = @transform_9, window_bounds = array<i64: 256, 128>}, {pipeline_mode = #tpu.pipeline_mode<synchronous>, transform_indices = @transform_10, window_bounds = array<i64: 1, 128>}, {transform_indices = @transform_11, window_bounds = array<i64: 8, 128>}]} {
    %c0 = arith.constant 0 : index
    %c0_0 = arith.constant 0 : index
    %0 = vector.load %arg1[%c0, %c0_0] : memref<8x8xf32, #tpu.memory_space<vmem>>, vector<8x8xf32>
    %1 = arith.truncf %0 : vector<8x8xf32> to vector<8x8xbf16>
    %c0_1 = arith.constant 0 : index
    %c0_2 = arith.constant 0 : index
    %2 = vector.load %arg2[%c0_1, %c0_2] : memref<8x640xbf16, #tpu.memory_space<vmem>>, vector<8x640xbf16>
    %cst = arith.constant dense<0.000000e+00> : vector<8x640xf32>
    %3 = tpu.matmul %1, %2, %cst {dimension_numbers = #tpu.dot_dimension_numbers<[1], [0], [0], [1], [0, 0, 1, 1], [], []>} : vector<8x8xbf16>, vector<8x640xbf16>, vector<8x640xf32> -> vector<8x640xf32>
    %c0_3 = arith.constant 0 : index
    %c0_4 = arith.constant 0 : index
    %4 = vector.load %arg3[%c0_3, %c0_4] : memref<1x640xf32, #tpu.memory_space<vmem>>, vector<1x640xf32>
    %5 = vector.broadcast %4 : vector<1x640xf32> to vector<8x640xf32>
    %6 = arith.addf %3, %5 : vector<8x640xf32>
    %7 = math.tanh %6 : vector<8x640xf32>
    %8 = arith.truncf %7 : vector<8x640xf32> to vector<8x640xbf16>
    %c0_5 = arith.constant 0 : index
    %c0_6 = arith.constant 0 : index
    %9 = vector.load %arg4[%c0_5, %c0_6] : memref<640x512xbf16, #tpu.memory_space<vmem>>, vector<640x512xbf16>
    %cst_7 = arith.constant dense<0.000000e+00> : vector<8x512xf32>
    %10 = tpu.matmul %8, %9, %cst_7 {dimension_numbers = #tpu.dot_dimension_numbers<[1], [0], [0], [1], [0, 0, 1, 1], [], []>} : vector<8x640xbf16>, vector<640x512xbf16>, vector<8x512xf32> -> vector<8x512xf32>
    %c0_8 = arith.constant 0 : index
    %c0_9 = arith.constant 0 : index
    %11 = vector.load %arg5[%c0_8, %c0_9] : memref<1x512xf32, #tpu.memory_space<vmem>>, vector<1x512xf32>
    %12 = vector.broadcast %11 : vector<1x512xf32> to vector<8x512xf32>
    %13 = arith.addf %10, %12 : vector<8x512xf32>
    %14 = math.tanh %13 : vector<8x512xf32>
    %15 = arith.truncf %14 : vector<8x512xf32> to vector<8x512xbf16>
    %c0_10 = arith.constant 0 : index
    %c0_11 = arith.constant 0 : index
    %16 = vector.load %arg6[%c0_10, %c0_11] : memref<512x256xbf16, #tpu.memory_space<vmem>>, vector<512x256xbf16>
    %cst_12 = arith.constant dense<0.000000e+00> : vector<8x256xf32>
    %17 = tpu.matmul %15, %16, %cst_12 {dimension_numbers = #tpu.dot_dimension_numbers<[1], [0], [0], [1], [0, 0, 1, 1], [], []>} : vector<8x512xbf16>, vector<512x256xbf16>, vector<8x256xf32> -> vector<8x256xf32>
    %c0_13 = arith.constant 0 : index
    %c0_14 = arith.constant 0 : index
    %18 = vector.load %arg7[%c0_13, %c0_14] : memref<1x256xf32, #tpu.memory_space<vmem>>, vector<1x256xf32>
    %19 = vector.broadcast %18 : vector<1x256xf32> to vector<8x256xf32>
    %20 = arith.addf %17, %19 : vector<8x256xf32>
    %21 = math.tanh %20 : vector<8x256xf32>
    %22 = arith.truncf %21 : vector<8x256xf32> to vector<8x256xbf16>
    %c0_15 = arith.constant 0 : index
    %c0_16 = arith.constant 0 : index
    %23 = vector.load %arg8[%c0_15, %c0_16] : memref<256x256xbf16, #tpu.memory_space<vmem>>, vector<256x256xbf16>
    %cst_17 = arith.constant dense<0.000000e+00> : vector<8x256xf32>
    %24 = tpu.matmul %22, %23, %cst_17 {dimension_numbers = #tpu.dot_dimension_numbers<[1], [0], [0], [1], [0, 0, 1, 1], [], []>} : vector<8x256xbf16>, vector<256x256xbf16>, vector<8x256xf32> -> vector<8x256xf32>
    %c0_18 = arith.constant 0 : index
    %c0_19 = arith.constant 0 : index
    %25 = vector.load %arg9[%c0_18, %c0_19] : memref<1x256xf32, #tpu.memory_space<vmem>>, vector<1x256xf32>
    %26 = vector.broadcast %25 : vector<1x256xf32> to vector<8x256xf32>
    %27 = arith.addf %24, %26 : vector<8x256xf32>
    %28 = math.tanh %27 : vector<8x256xf32>
    %29 = arith.truncf %28 : vector<8x256xf32> to vector<8x256xbf16>
    %c0_20 = arith.constant 0 : index
    %c0_21 = arith.constant 0 : index
    %30 = vector.load %arg10[%c0_20, %c0_21] : memref<256x128xbf16, #tpu.memory_space<vmem>>, vector<256x128xbf16>
    %cst_22 = arith.constant dense<0.000000e+00> : vector<8x128xf32>
    %31 = tpu.matmul %29, %30, %cst_22 {dimension_numbers = #tpu.dot_dimension_numbers<[1], [0], [0], [1], [0, 0, 1, 1], [], []>} : vector<8x256xbf16>, vector<256x128xbf16>, vector<8x128xf32> -> vector<8x128xf32>
    %c0_23 = arith.constant 0 : index
    %c0_24 = arith.constant 0 : index
    %32 = vector.load %arg11[%c0_23, %c0_24] : memref<1x128xf32, #tpu.memory_space<vmem>>, vector<1x128xf32>
    %33 = vector.broadcast %32 : vector<1x128xf32> to vector<8x128xf32>
    %34 = arith.addf %31, %33 : vector<8x128xf32>
    %c0_25 = arith.constant 0 : index
    %c0_26 = arith.constant 0 : index
    %35 = vector.load %arg12[%c0_25, %c0_26] : memref<8x128xf32, #tpu.memory_space<vmem>>, vector<8x128xf32>
    tpu.vector_store %arg12[%c0_25, %c0_26], %34 {strides = array<i32>} : memref<8x128xf32, #tpu.memory_space<vmem>>, vector<8x128xf32>,
    return
  }
  func.func @transform_0(%arg0: i32) -> (i32, i32) {
    %c0_i32 = arith.constant 0 : i32
    %c0_i32_0 = arith.constant 0 : i32
    return %arg0, %c0_i32 : i32, i32
  }
  func.func @transform_1(%arg0: i32) -> (i32, i32) {
    %c0_i32 = arith.constant 0 : i32
    %c0_i32_0 = arith.constant 0 : i32
    %c0_i32_1 = arith.constant 0 : i32
    return %c0_i32, %c0_i32_0 : i32, i32
  }
  func.func @transform_2(%arg0: i32) -> (i32, i32) {
    %c0_i32 = arith.constant 0 : i32
    %c0_i32_0 = arith.constant 0 : i32
    %c0_i32_1 = arith.constant 0 : i32
    return %c0_i32, %c0_i32_0 : i32, i32
  }
  func.func @transform_3(%arg0: i32) -> (i32, i32) {
    %c0_i32 = arith.constant 0 : i32
    %c0_i32_0 = arith.constant 0 : i32
    %c0_i32_1 = arith.constant 0 : i32
    return %c0_i32, %c0_i32_0 : i32, i32
  }
  func.func @transform_4(%arg0: i32) -> (i32, i32) {
    %c0_i32 = arith.constant 0 : i32
    %c0_i32_0 = arith.constant 0 : i32
    %c0_i32_1 = arith.constant 0 : i32
    return %c0_i32, %c0_i32_0 : i32, i32
  }
  func.func @transform_5(%arg0: i32) -> (i32, i32) {
    %c0_i32 = arith.constant 0 : i32
    %c0_i32_0 = arith.constant 0 : i32
    %c0_i32_1 = arith.constant 0 : i32
    return %c0_i32, %c0_i32_0 : i32, i32
  }
  func.func @transform_6(%arg0: i32) -> (i32, i32) {
    %c0_i32 = arith.constant 0 : i32
    %c0_i32_0 = arith.constant 0 : i32
    %c0_i32_1 = arith.constant 0 : i32
    return %c0_i32, %c0_i32_0 : i32, i32
  }
  func.func @transform_7(%arg0: i32) -> (i32, i32) {
    %c0_i32 = arith.constant 0 : i32
    %c0_i32_0 = arith.constant 0 : i32
    %c0_i32_1 = arith.constant 0 : i32
    return %c0_i32, %c0_i32_0 : i32, i32
  }
  func.func @transform_8(%arg0: i32) -> (i32, i32) {
    %c0_i32 = arith.constant 0 : i32
    %c0_i32_0 = arith.constant 0 : i32
    %c0_i32_1 = arith.constant 0 : i32
    return %c0_i32, %c0_i32_0 : i32, i32
  }
  func.func @transform_9(%arg0: i32) -> (i32, i32) {
    %c0_i32 = arith.constant 0 : i32
    %c0_i32_0 = arith.constant 0 : i32
    %c0_i32_1 = arith.constant 0 : i32
    return %c0_i32, %c0_i32_0 : i32, i32
  }
  func.func @transform_10(%arg0: i32) -> (i32, i32) {
    %c0_i32 = arith.constant 0 : i32
    %c0_i32_0 = arith.constant 0 : i32
    %c0_i32_1 = arith.constant 0 : i32
    return %c0_i32, %c0_i32_0 : i32, i32
  }
  func.func @transform_11(%arg0: i32) -> (i32, i32) {
    %c0_i32 = arith.constant 0 : i32
    %c0_i32_0 = arith.constant 0 : i32
    return %arg0, %c0_i32 : i32, i32
  }
}

</mosaic_0001>

<bundles_post_ra>
// kernel: tpu_custom_call.1
= control target key start
LH: loop header
LB: loop body
LE: loop exit
PB: predicated region body
PF: predicated region fallthrough
CT: control target
= control target key end

     0   :  { %16 = vsyncpa [#allocation3], 0  ;;  %s3689_s0 = inlined_call_operand.hbm [shape: f32[8,8], index: 0, kind: input, shape index: {}]   ;;  %s3690_s1 = inlined_call_operand.hbm [shape: bf16[8,640], index: 1, kind: input, shape index: {}]   ;;  %s3691_s2 = inlined_call_operand.vmem [shape: f32[1,640], index: 2, kind: input, shape index: {}]   ;;  %s3692_s3 = inlined_call_operand.hbm [shape: bf16[640,512], index: 3, kind: input, shape index: {}]   ;;  %s3693_s4 = inlined_call_operand.vmem [shape: f32[1,512], index: 4, kind: input, shape index: {}]   ;;  %s3694_s5 = inlined_call_operand.hbm [shape: bf16[512,256], index: 5, kind: input, shape index: {}]   ;;  %s3695_s6 = inlined_call_operand.vmem [shape: f32[1,256], index: 6, kind: input, shape index: {}]   ;;  %s3696_s7 = inlined_call_operand.hbm [shape: bf16[256,256], index: 7, kind: input, shape index: {}]   ;;  %s3697_s8 = inlined_call_operand.vmem [shape: f32[1,256], index: 8, kind: input, shape index: {}]   ;;  %s3698_s9 = inlined_call_operand.hbm [shape: bf16[256,128], index: 9, kind: input, shape index: {}]   ;;  %s3699_s10 = inlined_call_operand.vmem [shape: f32[1,128], index: 10, kind: input, shape index: {}]   ;;  %s3700_s11 = inlined_call_operand.hbm [shape: f32[8,128], index: 11, kind: output, shape index: {}]  }
   0x1   :  { %17 = vsyncpa [#allocation6], 0 }
   0x2   :  { %18 = vsyncpa [#allocation9], 0 }
   0x3   :  { %19 = vsyncpa [#allocation12], 0 }
   0x4   :  { %20 = vsyncpa [#allocation4], 0  ;;  %s3426_s17 = smov [#allocation5]   ;;  %s3427_s19 = smov [#allocation8]  }
   0x5   :  { %s37_s18 = sshll.u32 %s3426_s17, 4  ;;  %s62_s20 = sshll.u32 %s3427_s19, 4  ;;  %s38_s18 = int_to_ptr.vmem [resolvable:$true] %s37_s18  ;;  %s3502_s20 = int_to_ptr.vmem [resolvable:$true] %s62_s20 }
   0x6   :  { %s3262_s23 = scalar_lea.hbm %s3690_s1, 320 }
   0x7   :  { %p3263_p0 = scmp.ne.s32.totalorder %s3690_s1, %s3262_s23  ;;  %p3266_p1 = scmp.lt.u32.totalorder %s3262_s23, %s3690_s1 }
   0x9   :  { %p3268_p2 = pnand %p3266_p1, %p3263_p0 }
   0xb   :  { %3271 = shalt.err (!%p3268_p2)
}
   0xc   :  { %s3272_s28 = scalar_lea.vmem %s38_s18, 320  ;;  %p3277_p4 = scmp.lt.s32.totalorder %s38_s18, %s38_s18 }
   0xd   :  { %p3273_p3 = scmp.ne.s32.totalorder %s38_s18, %s3272_s28  ;;  %p3278_p5 = scmp.lt.s32.totalorder %s3272_s28, %s3272_s28 }
   0xf   :  { %p3279_p6 = por %p3278_p5, %p3277_p4 }
  0x11   :  { %p3280_p7 = pnand %p3279_p6, %p3273_p3 }
  0x13   :  { %3283 = shalt.err (!%p3280_p7)
}
  0x14   :  { %40 = dma.hbm_to_vmem [thread:$0]  %s3690_s1, 320, %s38_s18, [#allocation6]  }
  0x15   :  { %s3284_s14 = scalar_lea.hbm %s3694_s5, 8192 }
  0x16   :  { %p3285_p8 = scmp.ne.s32.totalorder %s3694_s5, %s3284_s14  ;;  %p3288_p9 = scmp.lt.u32.totalorder %s3284_s14, %s3694_s5 }
  0x18   :  { %p3290_p10 = pnand %p3288_p9, %p3285_p8 }
  0x1a   :  { %3293 = shalt.err (!%p3290_p10)
}
  0x1b   :  { %s3294_s21 = scalar_lea.vmem %s3502_s20, 8192  ;;  %p3299_p12 = scmp.lt.s32.totalorder %s3502_s20, %s3502_s20 }
  0x1c   :  { %p3295_p11 = scmp.ne.s32.totalorder %s3502_s20, %s3294_s21  ;;  %p3300_p13 = scmp.lt.s32.totalorder %s3294_s21, %s3294_s21 }
  0x1e   :  { %p3301_p0 = por %p3300_p13, %p3299_p12 }
  0x20   :  { %p3302_p1 = pnand %p3301_p0, %p3295_p11 }
  0x22   :  { %3305 = shalt.err (!%p3302_p1)
}
  0x23   :  { %s3428_s1 = smov 128   ;;  %s3429_s18 = smov 8  }
  0x24   :  { %68 = dma.hbm_to_vmem [thread:$0]  %s3694_s5, 8192, %s3502_s20, [#allocation9], %s3428_s1, %s3428_s1, %s3429_s18  }
  0x25   :  { %s3430_s24 = smov [#allocation2]   ;;  %s3431_s26 = smov [#allocation7]  }
  0x26   :  { %s27_s25 = sshll.u32 %s3430_s24, 4  ;;  %s48_s27 = sshll.u32 %s3431_s26, 4  ;;  %s28_s25 = int_to_ptr.vmem [resolvable:$true] %s27_s25  ;;  %s3536_s27 = int_to_ptr.vmem [resolvable:$true] %s48_s27 }
  0x27   :  { %s3306_s30 = scalar_lea.hbm %s3689_s0, 128 }
  0x28   :  { %p3307_p2 = scmp.ne.s32.totalorder %s3689_s0, %s3306_s30  ;;  %p3310_p3 = scmp.lt.u32.totalorder %s3306_s30, %s3689_s0 }
  0x2a   :  { %p3312_p4 = pnand %p3310_p3, %p3307_p2 }
  0x2c   :  { %3315 = shalt.err (!%p3312_p4)
}
  0x2d   :  { %s3316_s5 = scalar_lea.vmem %s28_s25, 128  ;;  %p3321_p6 = scmp.lt.s32.totalorder %s28_s25, %s28_s25 }
  0x2e   :  { %p3317_p5 = scmp.ne.s32.totalorder %s28_s25, %s3316_s5  ;;  %p3322_p7 = scmp.lt.s32.totalorder %s3316_s5, %s3316_s5 }
  0x30   :  { %p3323_p8 = por %p3322_p7, %p3321_p6 }
  0x32   :  { %p3324_p9 = pnand %p3323_p8, %p3317_p5 }
  0x34   :  { %3327 = shalt.err (!%p3324_p9)
}
  0x35   :  { %30 = dma.hbm_to_vmem [thread:$0]  %s3689_s0, 128, %s28_s25, [#allocation3]  }
  0x36   :  { %s3328_s21 = scalar_lea.hbm %s3692_s3, 20480 }
  0x37   :  { %p3329_p10 = scmp.ne.s32.totalorder %s3692_s3, %s3328_s21  ;;  %p3332_p11 = scmp.lt.u32.totalorder %s3328_s21, %s3692_s3 }
  0x39   :  { %p3334_p12 = pnand %p3332_p11, %p3329_p10 }
  0x3b   :  { %3337 = shalt.err (!%p3334_p12)
}
  0x3c   :  { %s3338_s28 = scalar_lea.vmem %s3536_s27, 20480  ;;  %p3343_p0 = scmp.lt.s32.totalorder %s3536_s27, %s3536_s27 }
  0x3d   :  { %p3339_p13 = scmp.ne.s32.totalorder %s3536_s27, %s3338_s28  ;;  %p3344_p1 = scmp.lt.s32.totalorder %s3338_s28, %s3338_s28 }
  0x3f   :  { %p3345_p2 = por %p3344_p1, %p3343_p0 }
  0x41   :  { %p3346_p3 = pnand %p3345_p2, %p3339_p13 }
  0x43   :  { %3349 = shalt.err (!%p3346_p3)
}
  0x44   :  { %s3432_s0 = smov 256   ;;  %s3433_s25 = smov 16  }
  0x45   :  { %54 = dma.hbm_to_vmem [thread:$0]  %s3692_s3, 20480, %s3536_s27, [#allocation6], %s3432_s0, %s3432_s0, %s3433_s25  }
  0x46   :  { %s3434_s12 = smov [#allocation10]   ;;  %s3435_s14 = smov [#allocation11]  }
  0x47   :  { %s76_s13 = sshll.u32 %s3434_s12, 4  ;;  %s90_s15 = sshll.u32 %s3435_s14, 4  ;;  %s77_s13 = int_to_ptr.vmem [resolvable:$true] %s76_s13  ;;  %s3567_s15 = int_to_ptr.vmem [resolvable:$true] %s90_s15 }
  0x48   :  { %s3350_s16 = scalar_lea.hbm %s3696_s7, 4096 }
  0x49   :  { %p3351_p4 = scmp.ne.s32.totalorder %s3696_s7, %s3350_s16  ;;  %p3354_p5 = scmp.lt.u32.totalorder %s3350_s16, %s3696_s7 }
  0x4b   :  { %p3356_p6 = pnand %p3354_p5, %p3351_p4 }
  0x4d   :  { %3359 = shalt.err (!%p3356_p6)
}
  0x4e   :  { %s3360_s3 = scalar_lea.vmem %s77_s13, 4096  ;;  %p3365_p8 = scmp.lt.s32.totalorder %s77_s13, %s77_s13 }
  0x4f   :  { %p3361_p7 = scmp.ne.s32.totalorder %s77_s13, %s3360_s3  ;;  %p3366_p9 = scmp.lt.s32.totalorder %s3360_s3, %s3360_s3 }
  0x51   :  { %p3367_p10 = por %p3366_p9, %p3365_p8 }
  0x53   :  { %p3368_p11 = pnand %p3367_p10, %p3361_p7 }
  0x55   :  { %3371 = shalt.err (!%p3368_p11)
}
  0x56   :  { %82 = dma.hbm_to_vmem [thread:$0]  %s3696_s7, 4096, %s77_s13, [#allocation9], %s3428_s1, %s3428_s1, %s3429_s18  }
  0x57   :  { %s3372_s28 = scalar_lea.hbm %s3698_s9, 2048 }
  0x58   :  { %p3373_p12 = scmp.ne.s32.totalorder %s3698_s9, %s3372_s28  ;;  %p3376_p13 = scmp.lt.u32.totalorder %s3372_s28, %s3698_s9 }
  0x5a   :  { %p3378_p0 = pnand %p3376_p13, %p3373_p12 }
  0x5c   :  { %3381 = shalt.err (!%p3378_p0)
}
  0x5d   :  { %s3382_s12 = scalar_lea.vmem %s3567_s15, 2048  ;;  %p3387_p2 = scmp.lt.s32.totalorder %s3567_s15, %s3567_s15 }
  0x5e   :  { %p3383_p1 = scmp.ne.s32.totalorder %s3567_s15, %s3382_s12  ;;  %p3388_p3 = scmp.lt.s32.totalorder %s3382_s12, %s3382_s12 }
  0x60   :  { %p3389_p4 = por %p3388_p3, %p3387_p2 }
  0x62   :  { %p3390_p5 = pnand %p3389_p4, %p3383_p1 }
  0x64   :  { %3393 = shalt.err (!%p3390_p5)
}
  0x65   :  { %s3436_s7 = smov 64   ;;  %s3437_s1 = smov 4  }
  0x66   :  { %96 = dma.hbm_to_vmem [thread:$0]  %s3698_s9, 2048, %s3567_s15, [#allocation12], %s3436_s7, %s3436_s7, %s3437_s1  }
  0x67   :  { %3416 = dma.done.wait [#allocation3], 128  }
  0x68   :  { %3417 = vsyncadd [#allocation3], 4294967168 }
  0x69   :  { %3418 = dma.done.wait [#allocation6], 20800  }
  0x6a   :  { %3419 = vsyncadd [#allocation6], 4294946496 }
  0x6b   :  { %3420 = dma.done.wait [#allocation9], 12288  }
  0x6c   :  { %3421 = vsyncadd [#allocation9], 4294955008 }
  0x6d   :  { %3422 = dma.done.wait [#allocation12], 2048  }
  0x6e   :  { %3423 = vsyncadd [#allocation12], 4294965248  ;;  %v3438_v0 = vmov 0   ;;  %v120_v1 = vld [vmem:[#allocation5] sm:$0xff]  ;;  %vm167_vm0 = vcmask 1043456   ;;  %v118_v2 = vld [vmem:[#allocation2] sm:$0xff] }
  0x6f   :  { %215 = vmatprep.mubr.bf16.mxu0 %v3438_v0  ;;  %v121_v3 = vld [vmem:[#allocation5 + $0x8] sm:$0xff]  ;;  %v2477_v4 = vcombine.high %v120_v1, %v120_v1  ;;  %v2476_v5 = vcombine.low %v120_v1, %v120_v1  ;;  %v119_v10 = vpack.c.bf16 %v118_v2, %v118_v2  ;;  %vm163_vm1 = vcmask 64512   ;;  %v2841_v11 = vld [vmem:[#allocation7] ss:$16 sps:$4 sm:$0xff]   ;;  %v2835_v17 = vld [vmem:[#allocation5 + $0x10] ss:$0 sps:$4 sm:$0xff]  }
  0x70   :  { %v2479_v6 = vcombine.high %v121_v3, %v121_v3  ;;  %v2478_v7 = vcombine.low %v121_v3, %v121_v3  ;;  %v2836_v8 = vld [vmem:[#allocation7 + $0x4] ss:$16 sps:$4 sm:$0xff]   ;;  %v2847_v14 = vld [vmem:[#allocation7 + $0x20] ss:$16 sps:$4 sm:$0xff]   ;;  %v3439_v16 = vmov 0.0   ;;  %v181_v20 = vsel %vm167_vm0, %v2835_v17, 0 }
  0x71   :  { %2481 = vmatprep.subr.msk.bf16.mxu0 %vm167_vm0, %v2477_v4  ;;  %v169_v9 = vsel %vm167_vm0, %v2476_v5, 0  ;;  %1297 = vmatprep.subr.bf16.mxu1 %v2836_v8  ;;  %v2842_v13 = vld [vmem:[#allocation7 + $0x24] ss:$16 sps:$4 sm:$0xff]   ;;  %v2853_v18 = vld [vmem:[#allocation7 + $0x40] ss:$16 sps:$4 sm:$0xff]   ;;  %vm3440_vm2 = vmmov 0   ;;  %v125_v17 = vlaneseq }
  0x72   :  { %184 = vmatpush1.bf16.msra.mxu0 %v169_v9  ;;  %v175_v12 = vsel %vm167_vm0, %v2478_v7, 0  ;;  %1298 = vmatpush1.bf16.msra.mxu1 %v2841_v11  ;;  %v2848_v15 = vld [vmem:[#allocation7 + $0x44] ss:$16 sps:$4 sm:$0xff]   ;;  %v2840_v21 = vld [vmem:[#allocation7 + $0xc] ss:$16 sps:$4 sm:$0xff]   ;;  %s3441_s17 = smov [#allocation13]  }
  0x73   :  { %2483 = vmatprep.subr.msk.bf16.mxu0 %vm167_vm0, %v2479_v6  ;;  %1299 = vmatprep.subr.bf16.mxu1 %v2842_v13  ;;  %v2854_v19 = vld [vmem:[#allocation7 + $0x64] ss:$16 sps:$4 sm:$0xff]   ;;  %v2859_v22 = vld [vmem:[#allocation7 + $0x60] ss:$16 sps:$4 sm:$0xff]   ;;  %v2838_v26 = vld [vmem:[#allocation7 + $0x8] ss:$16 sps:$4 sm:$0xff]  }
  0x74   :  { %v2860_v23 = vld [vmem:[#allocation7 + $0x84] ss:$16 sps:$4 sm:$0xff]   ;;  %v2865_v24 = vld [vmem:[#allocation7 + $0x80] ss:$16 sps:$4 sm:$0xff]   ;;  %v2846_v27 = vld [vmem:[#allocation7 + $0x2c] ss:$16 sps:$4 sm:$0xff]  }
  0x75   :  { %2482 = vmatmul.mubr.msk.bf16.vlgmr.msra.gmra.mrb[0].mxu0 %vm163_vm1, %v119_v10  ;;  %v2866_v25 = vld [vmem:[#allocation7 + $0xa4] ss:$16 sps:$4 sm:$0xff]   ;;  %v2871_v28 = vld [vmem:[#allocation7 + $0xa0] ss:$16 sps:$4 sm:$0xff]   ;;  %v2844_v30 = vld [vmem:[#allocation7 + $0x28] ss:$16 sps:$4 sm:$0xff]  }
  0x76   :  { %225 = vmatpush1.bf16.msra.mxu0 %v175_v12  ;;  %256 = vmatprep.mubr.bf16.mxu0 %v3438_v0  ;;  %v2872_v29 = vld [vmem:[#allocation7 + $0xc4] ss:$16 sps:$4 sm:$0xff]   ;;  %v2852_v31 = vld [vmem:[#allocation7 + $0x4c] ss:$16 sps:$4 sm:$0xff]   ;;  %v2877_v32 = vld [vmem:[#allocation7 + $0xc0] ss:$16 sps:$4 sm:$0xff]  }
  0x77   :  { %2783 = vmatprep.subr.bf16.mxu0 %v3439_v16  ;;  %1300 = vmatpush1.bf16.msra.mxu1 %v2847_v14  ;;  %v2878_v33 = vld [vmem:[#allocation7 + $0xe4] ss:$16 sps:$4 sm:$0xff]   ;;  %v2850_v34 = vld [vmem:[#allocation7 + $0x48] ss:$16 sps:$4 sm:$0xff]   ;;  %v2858_v35 = vld [vmem:[#allocation7 + $0x6c] ss:$16 sps:$4 sm:$0xff]  }
  0x78   :  { %1301 = vmatprep.subr.bf16.mxu1 %v2848_v15  ;;  %v2883_v36 = vld [vmem:[#allocation7 + $0xe0] ss:$16 sps:$4 sm:$0xff]   ;;  %v2884_v37 = vld [vmem:[#allocation7 + $0x104] ss:$16 sps:$4 sm:$0xff]   ;;  %v2856_v38 = vld [vmem:[#allocation7 + $0x68] ss:$16 sps:$4 sm:$0xff]  }
  0x79   :  { %v2864_v39 = vld [vmem:[#allocation7 + $0x8c] ss:$16 sps:$4 sm:$0xff]   ;;  %v2889_v40 = vld [vmem:[#allocation7 + $0x100] ss:$16 sps:$4 sm:$0xff]   ;;  %v2890_v41 = vld [vmem:[#allocation7 + $0x124] ss:$16 sps:$4 sm:$0xff]  }
  0x7a   :  { %v2862_v42 = vld [vmem:[#allocation7 + $0x88] ss:$16 sps:$4 sm:$0xff]   ;;  %v2870_v43 = vld [vmem:[#allocation7 + $0xac] ss:$16 sps:$4 sm:$0xff]   ;;  %v2895_v44 = vld [vmem:[#allocation7 + $0x120] ss:$16 sps:$4 sm:$0xff]  }
  0x7b   :  { %1302 = vmatpush1.bf16.msra.mxu1 %v2853_v18  ;;  %v2896_v45 = vld [vmem:[#allocation7 + $0x144] ss:$16 sps:$4 sm:$0xff]   ;;  %v2868_v46 = vld [vmem:[#allocation7 + $0xa8] ss:$16 sps:$4 sm:$0xff]   ;;  %v2876_v47 = vld [vmem:[#allocation7 + $0xcc] ss:$16 sps:$4 sm:$0xff]  }
  0x7c   :  { %1303 = vmatprep.subr.bf16.mxu1 %v2854_v19  ;;  %v2901_v48 = vld [vmem:[#allocation7 + $0x140] ss:$16 sps:$4 sm:$0xff]   ;;  %v2902_v49 = vld [vmem:[#allocation7 + $0x164] ss:$16 sps:$4 sm:$0xff]   ;;  %v2874_v50 = vld [vmem:[#allocation7 + $0xc8] ss:$16 sps:$4 sm:$0xff]  }
  0x7d   :  { %2484 = vmatmul.mubr.msk.bf16.vlgmr.msra.gmra.mrb[4].mxu0 %vm163_vm1, %v119_v10  ;;  %v2882_v51 = vld [vmem:[#allocation7 + $0xec] ss:$16 sps:$4 sm:$0xff]   ;;  %v2907_v52 = vld [vmem:[#allocation7 + $0x160] ss:$16 sps:$4 sm:$0xff]   ;;  %v2880_v53 = vld [vmem:[#allocation7 + $0xe8] ss:$16 sps:$4 sm:$0xff]  }
  0x7e   :  { %2784 = vmatpush3.bf16.msra.mxu0 %v181_v20  ;;  %2785 = vmatprep.mubr.msk.bf16.mxu0 %vm3440_vm2, %v3439_v16  ;;  %v2888_v54 = vld [vmem:[#allocation7 + $0x10c] ss:$16 sps:$4 sm:$0xff]   ;;  %v2886_v55 = vld [vmem:[#allocation7 + $0x108] ss:$16 sps:$4 sm:$0xff]   ;;  %v2908_v62 = vld [vmem:[#allocation7 + $0x184] ss:$16 sps:$4 sm:$0xff]  }
  0x7f   :  { %1420 = vmatprep.subr.bf16.mxu0 %v2840_v21  ;;  %1304 = vmatpush1.bf16.msra.mxu1 %v2859_v22  ;;  %v2894_v56 = vld [vmem:[#allocation7 + $0x12c] ss:$16 sps:$4 sm:$0xff]   ;;  %v2892_v57 = vld [vmem:[#allocation7 + $0x128] ss:$16 sps:$4 sm:$0xff]   ;;  %v2913_v2 = vld [vmem:[#allocation7 + $0x180] ss:$16 sps:$4 sm:$0xff]  }
  0x80   :  { %1305 = vmatprep.subr.bf16.mxu1 %v2860_v23  ;;  %v2900_v58 = vld [vmem:[#allocation7 + $0x14c] ss:$16 sps:$4 sm:$0xff]   ;;  %v2898_v59 = vld [vmem:[#allocation7 + $0x148] ss:$16 sps:$4 sm:$0xff]   ;;  %v2914_v3 = vld [vmem:[#allocation7 + $0x1a4] ss:$16 sps:$4 sm:$0xff]  }
  0x81   :  { %v2906_v60 = vld [vmem:[#allocation7 + $0x16c] ss:$16 sps:$4 sm:$0xff]   ;;  %v2904_v61 = vld [vmem:[#allocation7 + $0x168] ss:$16 sps:$4 sm:$0xff]   ;;  %v2919_v6 = vld [vmem:[#allocation7 + $0x1a0] ss:$16 sps:$4 sm:$0xff]  }
  0x82   :  { %v2912_v63 = vld [vmem:[#allocation7 + $0x18c] ss:$16 sps:$4 sm:$0xff]   ;;  %v2910_v1 = vld [vmem:[#allocation7 + $0x188] ss:$16 sps:$4 sm:$0xff]   ;;  %v2920_v7 = vld [vmem:[#allocation7 + $0x1c4] ss:$16 sps:$4 sm:$0xff]  }
  0x83   :  { %1306 = vmatpush1.bf16.msra.mxu1 %v2865_v24  ;;  %v2918_v4 = vld [vmem:[#allocation7 + $0x1ac] ss:$16 sps:$4 sm:$0xff]   ;;  %v2916_v5 = vld [vmem:[#allocation7 + $0x1a8] ss:$16 sps:$4 sm:$0xff]   ;;  %v2926_v11 = vld [vmem:[#allocation7 + $0x1e4] ss:$16 sps:$4 sm:$0xff]  }
  0x84   :  { %1307 = vmatprep.subr.bf16.mxu1 %v2866_v25  ;;  %v2924_v8 = vld [vmem:[#allocation7 + $0x1cc] ss:$16 sps:$4 sm:$0xff]   ;;  %v2922_v9 = vld [vmem:[#allocation7 + $0x1c8] ss:$16 sps:$4 sm:$0xff]   ;;  %v2931_v14 = vld [vmem:[#allocation7 + $0x1e0] ss:$16 sps:$4 sm:$0xff]  }
  0x85   :  { %2786 = vmatmul.mubr.msk.bf16.vlgmr.msra.gmra.mrb[8].mxu0 %vm163_vm1, %v119_v10  ;;  %v2925_v10 = vld [vmem:[#allocation7 + $0x1c0] ss:$16 sps:$4 sm:$0xff]   ;;  %v2930_v12 = vld [vmem:[#allocation7 + $0x1ec] ss:$16 sps:$4 sm:$0xff]   ;;  %v2928_v13 = vld [vmem:[#allocation7 + $0x1e8] ss:$16 sps:$4 sm:$0xff]  }
  0x86   :  { %1421 = vmatpush1.bf16.msra.mxu0 %v2838_v26  ;;  %v2934_v15 = vld [vmem:[#allocation7 + $0x204] ss:$16 sps:$4 sm:$0xff]   ;;  %v2937_v16 = vld [vmem:[#allocation7 + $0x20c] ss:$16 sps:$4 sm:$0xff]   ;;  %v3611_v18 = vshrl.u32 %v125_v17, 7  ;;  %s2464_s19 = sshll.u32 %s3441_s17, 4  ;;  %s2465_s19 = int_to_ptr.vmem [resolvable:$true] %s2464_s19 }
  0x87   :  { %1422 = vmatprep.subr.bf16.mxu0 %v2846_v27  ;;  %1308 = vmatpush1.bf16.msra.mxu1 %v2871_v28  ;;  %v3619_v20 = vld [vmem:[%s3691_s2] sm:$0x1f]  ;;  %s3394_s21 = scalar_lea.vmem %s2465_s19, 128  ;;  %p3399_p7 = scmp.lt.s32.totalorder %s2465_s19, %s2465_s19 }
  0x88   :  { %1309 = vmatprep.subr.bf16.mxu1 %v2872_v29  ;;  %v3614_v19 = vsub.s32 0, %v3611_v18  ;;  %v3622_v21 = vsub.s32 1, %v3611_v18  ;;  %v139_v29 = vsub.s32 3, %v3611_v18  ;;  %v2983_v17 = vld [vmem:[#allocation7 + $0x308] ss:$16 sps:$4 sm:$0xff]   ;;  %p3395_p6 = scmp.ne.s32.totalorder %s2465_s19, %s3394_s21  ;;  %p3400_p8 = scmp.lt.s32.totalorder %s3394_s21, %s3394_s21 }
  0x8a   :  { %1423 = vmatpush1.bf16.msra.mxu0 %v2844_v30  ;;  %v128_v22 = vrot.slane %v3619_v20, %v3614_v19  ;;  %v132_v23 = vrot.slane %v3619_v20, %v3622_v21  ;;  %p3401_p9 = por %p3400_p8, %p3399_p7 }
  0x8b   :  { %1424 = vmatprep.subr.bf16.mxu0 %v2852_v31  ;;  %1310 = vmatpush1.bf16.msra.mxu1 %v2877_v32  ;;  %v140_v31 = vrot.slane %v3619_v20, %v139_v29 }
  0x8c   :  { %1311 = vmatprep.subr.bf16.mxu1 %v2878_v33  ;;  %p3402_p10 = pnand %p3401_p9, %p3395_p6 }
  0x8e   :  { %1425 = vmatpush1.bf16.msra.mxu0 %v2850_v34 }
  0x8f   :  { %1426 = vmatprep.subr.bf16.mxu0 %v2858_v35  ;;  %1312 = vmatpush1.bf16.msra.mxu1 %v2883_v36 }
  0x90   :  { %1313 = vmatprep.subr.bf16.mxu1 %v2884_v37 }
  0x92   :  { %1427 = vmatpush1.bf16.msra.mxu0 %v2856_v38 }
  0x93   :  { %1428 = vmatprep.subr.bf16.mxu0 %v2864_v39  ;;  %1314 = vmatpush1.bf16.msra.mxu1 %v2889_v40  ;;  %v2932_v40 = vld [vmem:[#allocation7 + $0x200] ss:$16 sps:$4 sm:$0xff]  }
  0x94   :  { %1315 = vmatprep.subr.bf16.mxu1 %v2890_v41  ;;  %v2935_v41 = vld [vmem:[#allocation7 + $0x208] ss:$16 sps:$4 sm:$0xff]  }
  0x96   :  { %1429 = vmatpush1.bf16.msra.mxu0 %v2862_v42 }
  0x97   :  { %1430 = vmatprep.subr.bf16.mxu0 %v2870_v43  ;;  %1316 = vmatpush1.bf16.msra.mxu1 %v2895_v44  ;;  %v2940_v43 = vld [vmem:[#allocation7 + $0x224] ss:$16 sps:$4 sm:$0xff]   ;;  %v2943_v44 = vld [vmem:[#allocation7 + $0x22c] ss:$16 sps:$4 sm:$0xff]  }
  0x98   :  { %1317 = vmatprep.subr.bf16.mxu1 %v2896_v45 }
  0x9a   :  { %1431 = vmatpush1.bf16.msra.mxu0 %v2868_v46 }
  0x9b   :  { %1432 = vmatprep.subr.bf16.mxu0 %v2876_v47  ;;  %1318 = vmatpush1.bf16.msra.mxu1 %v2901_v48  ;;  %v2938_v48 = vld [vmem:[#allocation7 + $0x220] ss:$16 sps:$4 sm:$0xff]  }
  0x9c   :  { %1319 = vmatprep.subr.bf16.mxu1 %v2902_v49  ;;  %v2941_v49 = vld [vmem:[#allocation7 + $0x228] ss:$16 sps:$4 sm:$0xff]  }
  0x9e   :  { %1433 = vmatpush1.bf16.msra.mxu0 %v2874_v50 }
  0x9f   :  { %1434 = vmatprep.subr.bf16.mxu0 %v2882_v51  ;;  %1320 = vmatpush1.bf16.msra.mxu1 %v2907_v52  ;;  %v2946_v51 = vld [vmem:[#allocation7 + $0x244] ss:$16 sps:$4 sm:$0xff]   ;;  %v2949_v52 = vld [vmem:[#allocation7 + $0x24c] ss:$16 sps:$4 sm:$0xff]  }
  0xa0   :  { %1321 = vmatprep.subr.bf16.mxu1 %v2908_v62  ;;  %v2961_v62 = vld [vmem:[#allocation7 + $0x28c] ss:$16 sps:$4 sm:$0xff]  }
  0xa2   :  { %1435 = vmatpush1.bf16.msra.mxu0 %v2880_v53 }
  0xa3   :  { %1436 = vmatprep.subr.bf16.mxu0 %v2888_v54  ;;  %1322 = vmatpush1.bf16.msra.mxu1 %v2913_v2  ;;  %v2944_v54 = vld [vmem:[#allocation7 + $0x240] ss:$16 sps:$4 sm:$0xff]   ;;  %v2964_v2 = vld [vmem:[#allocation7 + $0x2a4] ss:$16 sps:$4 sm:$0xff]  }
  0xa4   :  { %1323 = vmatprep.subr.bf16.mxu1 %v2914_v3  ;;  %v2967_v3 = vld [vmem:[#allocation7 + $0x2ac] ss:$16 sps:$4 sm:$0xff]  }
  0xa6   :  { %1437 = vmatpush1.bf16.msra.mxu0 %v2886_v55  ;;  %v2947_v55 = vld [vmem:[#allocation7 + $0x248] ss:$16 sps:$4 sm:$0xff]  }
  0xa7   :  { %1438 = vmatprep.subr.bf16.mxu0 %v2894_v56  ;;  %1324 = vmatpush1.bf16.msra.mxu1 %v2919_v6  ;;  %v2970_v6 = vld [vmem:[#allocation7 + $0x2c4] ss:$16 sps:$4 sm:$0xff]  }
  0xa8   :  { %1325 = vmatprep.subr.bf16.mxu1 %v2920_v7  ;;  %v2973_v7 = vld [vmem:[#allocation7 + $0x2cc] ss:$16 sps:$4 sm:$0xff]  }
  0xaa   :  { %1439 = vmatpush1.bf16.msra.mxu0 %v2892_v57  ;;  %v2952_v57 = vld [vmem:[#allocation7 + $0x264] ss:$16 sps:$4 sm:$0xff]  }
  0xab   :  { %1440 = vmatprep.subr.bf16.mxu0 %v2900_v58  ;;  %1326 = vmatpush1.bf16.msra.mxu1 %v2925_v10  ;;  %v2955_v58 = vld [vmem:[#allocation7 + $0x26c] ss:$16 sps:$4 sm:$0xff]   ;;  %v2976_v10 = vld [vmem:[#allocation7 + $0x2e4] ss:$16 sps:$4 sm:$0xff]  }
  0xac   :  { %1327 = vmatprep.subr.bf16.mxu1 %v2926_v11  ;;  %v2979_v11 = vld [vmem:[#allocation7 + $0x2ec] ss:$16 sps:$4 sm:$0xff]  }
  0xae   :  { %1441 = vmatpush1.bf16.msra.mxu0 %v2898_v59  ;;  %v2950_v59 = vld [vmem:[#allocation7 + $0x260] ss:$16 sps:$4 sm:$0xff]  }
  0xaf   :  { %1442 = vmatprep.subr.bf16.mxu0 %v2906_v60  ;;  %1328 = vmatpush1.bf16.msra.mxu1 %v2931_v14  ;;  %v2953_v60 = vld [vmem:[#allocation7 + $0x268] ss:$16 sps:$4 sm:$0xff]   ;;  %v2982_v14 = vld [vmem:[#allocation7 + $0x304] ss:$16 sps:$4 sm:$0xff]  }
  0xb0   :  { %1338 = vmatprep.subr.bf16.mxu1 %v2934_v15  ;;  %v2985_v15 = vld [vmem:[#allocation7 + $0x30c] ss:$16 sps:$4 sm:$0xff]  }
  0xb2   :  { %1443 = vmatpush1.bf16.msra.mxu0 %v2904_v61  ;;  %v2958_v61 = vld [vmem:[#allocation7 + $0x284] ss:$16 sps:$4 sm:$0xff]  }
  0xb3   :  { %1444 = vmatprep.subr.bf16.mxu0 %v2912_v63  ;;  %v2956_v63 = vld [vmem:[#allocation7 + $0x280] ss:$16 sps:$4 sm:$0xff]  }
  0xb6   :  { %1445 = vmatpush1.bf16.msra.mxu0 %v2910_v1  ;;  %v2959_v1 = vld [vmem:[#allocation7 + $0x288] ss:$16 sps:$4 sm:$0xff]  }
  0xb7   :  { %1446 = vmatprep.subr.bf16.mxu0 %v2918_v4  ;;  %v2962_v4 = vld [vmem:[#allocation7 + $0x2a0] ss:$16 sps:$4 sm:$0xff]  }
  0xba   :  { %1447 = vmatpush1.bf16.msra.mxu0 %v2916_v5  ;;  %v2965_v5 = vld [vmem:[#allocation7 + $0x2a8] ss:$16 sps:$4 sm:$0xff]  }
  0xbb   :  { %1448 = vmatprep.subr.bf16.mxu0 %v2924_v8  ;;  %v2968_v8 = vld [vmem:[#allocation7 + $0x2c0] ss:$16 sps:$4 sm:$0xff]  }
  0xbe   :  { %1449 = vmatpush1.bf16.msra.mxu0 %v2922_v9  ;;  %v2971_v9 = vld [vmem:[#allocation7 + $0x2c8] ss:$16 sps:$4 sm:$0xff]  }
  0xbf   :  { %1450 = vmatprep.subr.bf16.mxu0 %v2930_v12  ;;  %v2974_v12 = vld [vmem:[#allocation7 + $0x2e0] ss:$16 sps:$4 sm:$0xff]  }
  0xc2   :  { %1451 = vmatpush1.bf16.msra.mxu0 %v2928_v13  ;;  %v2977_v13 = vld [vmem:[#allocation7 + $0x2e8] ss:$16 sps:$4 sm:$0xff]  }
  0xc3   :  { %1461 = vmatprep.subr.bf16.mxu0 %v2937_v16  ;;  %v2980_v16 = vld [vmem:[#allocation7 + $0x300] ss:$16 sps:$4 sm:$0xff]  }
 0x148   :  { %v217_v24 = vpop.f32.mrb[0].mxu0 }
 0x149   :  { %v218_v25 = vadd.f32 %v217_v24, %v128_v22  ;;  %v219_v26 = vpop.f32.mrb[1].mxu0  ;;  %v2988_v22 = vld [vmem:[#allocation7 + $0x324] ss:$16 sps:$4 sm:$0xff]   ;;  %v2986_v24 = vld [vmem:[#allocation7 + $0x320] ss:$16 sps:$4 sm:$0xff]  }
 0x14a   :  { %v220_v27 = vadd.f32 %v219_v26, %v132_v23  ;;  %v221_v28 = vpop.f32.mrb[2].mxu0  ;;  %v2991_v23 = vld [vmem:[#allocation7 + $0x32c] ss:$16 sps:$4 sm:$0xff]   ;;  %v2994_v26 = vld [vmem:[#allocation7 + $0x344] ss:$16 sps:$4 sm:$0xff]  }
 0x14b   :  { %3236 = vtanh.f32 %v218_v25  ;;  %v222_v30 = vpop.f32.mrb[3].mxu0  ;;  %v2989_v25 = vld [vmem:[#allocation7 + $0x328] ss:$16 sps:$4 sm:$0xff]   ;;  %v135_v28 = vsub.s32 2, %v3611_v18 }
 0x14c   :  { %3238 = vtanh.f32 %v220_v27  ;;  %v2997_v27 = vld [vmem:[#allocation7 + $0x34c] ss:$16 sps:$4 sm:$0xff]   ;;  %v2992_v30 = vld [vmem:[#allocation7 + $0x340] ss:$16 sps:$4 sm:$0xff]  }
 0x150   :  { %v3632_v32 = vpop.f32.mrb[4].mxu0 }
 0x151   :  { %v260_v33 = vpop.f32.mrb[5].mxu0 }
 0x152   :  { %v261_v34 = vadd.f32 %v260_v33, %v140_v31  ;;  %v262_v35 = vpop.f32.mrb[6].mxu0  ;;  %v2995_v31 = vld [vmem:[#allocation7 + $0x348] ss:$16 sps:$4 sm:$0xff]   ;;  %v3000_v33 = vld [vmem:[#allocation7 + $0x364] ss:$16 sps:$4 sm:$0xff]  }
 0x153   :  { %v263_v36 = vpop.f32.mrb[7].mxu0  ;;  %v136_v35 = vrot.slane %v3619_v20, %v135_v28 }
 0x154   :  { %3240 = vtanh.f32 %v261_v34  ;;  %v3003_v34 = vld [vmem:[#allocation7 + $0x36c] ss:$16 sps:$4 sm:$0xff]   ;;  %v2998_v36 = vld [vmem:[#allocation7 + $0x360] ss:$16 sps:$4 sm:$0xff]  }
 0x155   :  { %v3237_v37 = vpop.eup %3236 }
 0x156   :  { %v3239_v38 = vpop.eup %3238  ;;  %v310_v42 = vpack.c.bf16 %v3237_v37, %v3237_v37  ;;  %v3001_v37 = vld [vmem:[#allocation7 + $0x368] ss:$16 sps:$4 sm:$0xff]  }
 0x157   :  { %v311_v39 = vpack.c.bf16 %v3239_v38, %v3239_v38  ;;  %v3006_v38 = vld [vmem:[#allocation7 + $0x384] ss:$16 sps:$4 sm:$0xff]  }
 0x158   :  { %v3634_v45 = vpop.f32.mrb[8].mxu0 }
 0x159   :  { %1329 = vmatprep.mubr.bf16.mxu1 %v311_v39  ;;  %1452 = vmatprep.mubr.bf16.mxu0 %v311_v39  ;;  %v2787_v46 = vpop.f32.mrb[9].mxu0  ;;  %v3009_v39 = vld [vmem:[#allocation7 + $0x38c] ss:$16 sps:$4 sm:$0xff]  }
 0x15a   :  { %1330 = vmatmul.mubr.bf16.vlgmr.msra.gmra.mrb[0].mxu1 %v310_v42  ;;  %1453 = vmatmul.mubr.bf16.vlgmr.msra.gmra.mrb[12].mxu0 %v310_v42  ;;  %v302_v47 = vpop.f32.mrb[10].mxu0  ;;  %v3007_v42 = vld [vmem:[#allocation7 + $0x388] ss:$16 sps:$4 sm:$0xff]   ;;  %v3010_v46 = vld [vmem:[#allocation7 + $0x3a0] ss:$16 sps:$4 sm:$0xff]  }
 0x15b   :  { %1339 = vmatpush1.bf16.msra.mxu1 %v2932_v40  ;;  %1462 = vmatpush1.bf16.msra.mxu0 %v2935_v41  ;;  %v2788_v50 = vpop.f32.mrb[11].mxu0  ;;  %v259_v40 = vadd.f32 %v3632_v32, %v136_v35  ;;  %v3004_v41 = vld [vmem:[#allocation7 + $0x380] ss:$16 sps:$4 sm:$0xff]   ;;  %v3013_v47 = vld [vmem:[#allocation7 + $0x3a8] ss:$16 sps:$4 sm:$0xff]  }
 0x15c   :  { %1340 = vmatprep.subr.bf16.mxu1 %v2940_v43  ;;  %1463 = vmatprep.subr.bf16.mxu0 %v2943_v44  ;;  %v3012_v43 = vld [vmem:[#allocation7 + $0x3a4] ss:$16 sps:$4 sm:$0xff]   ;;  %v3015_v44 = vld [vmem:[#allocation7 + $0x3ac] ss:$16 sps:$4 sm:$0xff]   ;;  %v3016_v32 = vld [vmem:[#allocation7 + $0x3c0] ss:$16 sps:$4 sm:$0xff]  }
 0x15d   :  { %3242 = vtanh.f32 %v259_v40  ;;  %v3019_v50 = vld [vmem:[#allocation7 + $0x3c8] ss:$16 sps:$4 sm:$0xff]  }
 0x15e   :  { %v3241_v53 = vpop.eup %3240  ;;  %v3082_v40 = vld [vmem:[#allocation8 + $0x20] ss:$8 sps:$4 sm:$0xff]  }
 0x15f   :  { %1341 = vmatpush1.bf16.msra.mxu1 %v2938_v48  ;;  %1464 = vmatpush1.bf16.msra.mxu0 %v2941_v49  ;;  %v313_v56 = vpack.c.bf16 %v3241_v53, %v3241_v53  ;;  %v3018_v48 = vld [vmem:[#allocation7 + $0x3c4] ss:$16 sps:$4 sm:$0xff]   ;;  %v3021_v49 = vld [vmem:[#allocation7 + $0x3cc] ss:$16 sps:$4 sm:$0xff]  }
 0x160   :  { %1342 = vmatprep.subr.bf16.mxu1 %v2946_v51  ;;  %1465 = vmatprep.subr.bf16.mxu0 %v2949_v52  ;;  %v3024_v51 = vld [vmem:[#allocation7 + $0x3e4] ss:$16 sps:$4 sm:$0xff]   ;;  %v3027_v52 = vld [vmem:[#allocation7 + $0x3ec] ss:$16 sps:$4 sm:$0xff]  }
 0x161   :  { %1370 = vmatprep.mubr.bf16.mxu1 %v313_v56  ;;  %1493 = vmatprep.mubr.bf16.mxu0 %v313_v56  ;;  %v3030_v56 = vld [vmem:[#allocation7 + $0x404] ss:$16 sps:$4 sm:$0xff]  }
 0x163   :  { %1343 = vmatpush1.bf16.msra.mxu1 %v2944_v54  ;;  %1466 = vmatpush1.bf16.msra.mxu0 %v2947_v55  ;;  %v3022_v54 = vld [vmem:[#allocation7 + $0x3e0] ss:$16 sps:$4 sm:$0xff]   ;;  %v3025_v55 = vld [vmem:[#allocation7 + $0x3e8] ss:$16 sps:$4 sm:$0xff]  }
 0x164   :  { %1344 = vmatprep.subr.bf16.mxu1 %v2952_v57  ;;  %1467 = vmatprep.subr.bf16.mxu0 %v2955_v58  ;;  %v3033_v57 = vld [vmem:[#allocation7 + $0x40c] ss:$16 sps:$4 sm:$0xff]  }
 0x167   :  { %1345 = vmatpush1.bf16.msra.mxu1 %v2950_v59  ;;  %1468 = vmatpush1.bf16.msra.mxu0 %v2953_v60  ;;  %v3243_v53 = vpop.eup %3242  ;;  %v3028_v59 = vld [vmem:[#allocation7 + $0x400] ss:$16 sps:$4 sm:$0xff]   ;;  %v3031_v60 = vld [vmem:[#allocation7 + $0x408] ss:$16 sps:$4 sm:$0xff]  }
 0x168   :  { %1346 = vmatprep.subr.bf16.mxu1 %v2958_v61  ;;  %1469 = vmatprep.subr.bf16.mxu0 %v2961_v62  ;;  %v312_v58 = vpack.c.bf16 %v3243_v53, %v3243_v53  ;;  %v3036_v61 = vld [vmem:[#allocation7 + $0x424] ss:$16 sps:$4 sm:$0xff]   ;;  %v3039_v62 = vld [vmem:[#allocation7 + $0x42c] ss:$16 sps:$4 sm:$0xff]  }
 0x169   :  { %v3105_v53 = vld [vmem:[#allocation8 + $0x94] ss:$8 sps:$4 sm:$0xff]  }
 0x16b   :  { %1347 = vmatpush1.bf16.msra.mxu1 %v2956_v63  ;;  %1470 = vmatpush1.bf16.msra.mxu0 %v2959_v1  ;;  %v3034_v63 = vld [vmem:[#allocation7 + $0x420] ss:$16 sps:$4 sm:$0xff]   ;;  %v3037_v1 = vld [vmem:[#allocation7 + $0x428] ss:$16 sps:$4 sm:$0xff]  }
 0x16c   :  { %1348 = vmatprep.subr.bf16.mxu1 %v2964_v2  ;;  %1471 = vmatprep.subr.bf16.mxu0 %v2967_v3  ;;  %v3042_v2 = vld [vmem:[#allocation7 + $0x444] ss:$16 sps:$4 sm:$0xff]   ;;  %v3045_v3 = vld [vmem:[#allocation7 + $0x44c] ss:$16 sps:$4 sm:$0xff]  }
 0x16f   :  { %1349 = vmatpush1.bf16.msra.mxu1 %v2962_v4  ;;  %1472 = vmatpush1.bf16.msra.mxu0 %v2965_v5  ;;  %v143_v4 = vsub.s32 4, %v3611_v18  ;;  %v3040_v5 = vld [vmem:[#allocation7 + $0x440] ss:$16 sps:$4 sm:$0xff]   ;;  %v3171_v18 = vld [vmem:[#allocation8 + $0x1f4] ss:$8 sps:$4 sm:$0xff]  }
 0x170   :  { %1350 = vmatprep.subr.bf16.mxu1 %v2970_v6  ;;  %1473 = vmatprep.subr.bf16.mxu0 %v2973_v7  ;;  %v3043_v6 = vld [vmem:[#allocation7 + $0x448] ss:$16 sps:$4 sm:$0xff]   ;;  %v3048_v7 = vld [vmem:[#allocation7 + $0x464] ss:$16 sps:$4 sm:$0xff]  }
 0x173   :  { %1351 = vmatpush1.bf16.msra.mxu1 %v2968_v8  ;;  %1474 = vmatpush1.bf16.msra.mxu0 %v2971_v9  ;;  %v3051_v8 = vld [vmem:[#allocation7 + $0x46c] ss:$16 sps:$4 sm:$0xff]   ;;  %v144_v9 = vrot.slane %v3619_v20, %v143_v4  ;;  %v3058_v20 = vld [vmem:[#allocation7 + $0x4a0] ss:$16 sps:$4 sm:$0xff]  }
 0x174   :  { %1352 = vmatprep.subr.bf16.mxu1 %v2976_v10  ;;  %1475 = vmatprep.subr.bf16.mxu0 %v2979_v11  ;;  %v3046_v10 = vld [vmem:[#allocation7 + $0x460] ss:$16 sps:$4 sm:$0xff]   ;;  %v3049_v11 = vld [vmem:[#allocation7 + $0x468] ss:$16 sps:$4 sm:$0xff]   ;;  %v3126_v4 = vld [vmem:[#allocation8 + $0x104] ss:$8 sps:$4 sm:$0xff]  }
 0x177   :  { %1353 = vmatpush1.bf16.msra.mxu1 %v2974_v12  ;;  %1476 = vmatpush1.bf16.msra.mxu0 %v2977_v13  ;;  %v3054_v12 = vld [vmem:[#allocation7 + $0x484] ss:$16 sps:$4 sm:$0xff]   ;;  %v3057_v13 = vld [vmem:[#allocation7 + $0x48c] ss:$16 sps:$4 sm:$0xff]  }
 0x178   :  { %1354 = vmatprep.subr.bf16.mxu1 %v2982_v14  ;;  %1477 = vmatprep.subr.bf16.mxu0 %v2985_v15  ;;  %v3052_v14 = vld [vmem:[#allocation7 + $0x480] ss:$16 sps:$4 sm:$0xff]   ;;  %v3055_v15 = vld [vmem:[#allocation7 + $0x488] ss:$16 sps:$4 sm:$0xff]  }
 0x17b   :  { %1355 = vmatpush1.bf16.msra.mxu1 %v2980_v16  ;;  %1478 = vmatpush1.bf16.msra.mxu0 %v2983_v17  ;;  %v3060_v16 = vld [vmem:[#allocation7 + $0x4a4] ss:$16 sps:$4 sm:$0xff]   ;;  %v3063_v17 = vld [vmem:[#allocation7 + $0x4ac] ss:$16 sps:$4 sm:$0xff]  }
 0x17c   :  { %1356 = vmatprep.subr.bf16.mxu1 %v2988_v22  ;;  %1479 = vmatprep.subr.bf16.mxu0 %v2991_v23  ;;  %v3061_v22 = vld [vmem:[#allocation7 + $0x4a8] ss:$16 sps:$4 sm:$0xff]   ;;  %v3066_v23 = vld [vmem:[#allocation7 + $0x4c4] ss:$16 sps:$4 sm:$0xff]  }
 0x17f   :  { %1357 = vmatpush1.bf16.msra.mxu1 %v2986_v24  ;;  %1480 = vmatpush1.bf16.msra.mxu0 %v2989_v25  ;;  %v3069_v24 = vld [vmem:[#allocation7 + $0x4cc] ss:$16 sps:$4 sm:$0xff]   ;;  %v3067_v25 = vld [vmem:[#allocation7 + $0x4c8] ss:$16 sps:$4 sm:$0xff]  }
 0x180   :  { %1358 = vmatprep.subr.bf16.mxu1 %v2994_v26  ;;  %1481 = vmatprep.subr.bf16.mxu0 %v2997_v27  ;;  %v3072_v26 = vld [vmem:[#allocation7 + $0x4e4] ss:$16 sps:$4 sm:$0xff]   ;;  %v3075_v27 = vld [vmem:[#allocation7 + $0x4ec] ss:$16 sps:$4 sm:$0xff]  }
 0x183   :  { %1359 = vmatpush1.bf16.msra.mxu1 %v2992_v30  ;;  %1482 = vmatpush1.bf16.msra.mxu0 %v2995_v31  ;;  %v3070_v31 = vld [vmem:[#allocation7 + $0x4e0] ss:$16 sps:$4 sm:$0xff]  }
 0x184   :  { %1360 = vmatprep.subr.bf16.mxu1 %v3000_v33  ;;  %1483 = vmatprep.subr.bf16.mxu0 %v3003_v34  ;;  %v3073_v33 = vld [vmem:[#allocation7 + $0x4e8] ss:$16 sps:$4 sm:$0xff]   ;;  %v3078_v34 = vld [vmem:[#allocation8 + $0x4] ss:$8 sps:$4 sm:$0xff]  }
 0x187   :  { %1361 = vmatpush1.bf16.msra.mxu1 %v2998_v36  ;;  %1484 = vmatpush1.bf16.msra.mxu0 %v3001_v37  ;;  %v3076_v36 = vld [vmem:[#allocation8] ss:$8 sps:$4 sm:$0xff]   ;;  %v3081_v37 = vld [vmem:[#allocation8 + $0x14] ss:$8 sps:$4 sm:$0xff]  }
 0x188   :  { %1362 = vmatprep.subr.bf16.mxu1 %v3006_v38  ;;  %1485 = vmatprep.subr.bf16.mxu0 %v3009_v39  ;;  %v3079_v38 = vld [vmem:[#allocation8 + $0x10] ss:$8 sps:$4 sm:$0xff]   ;;  %v3084_v39 = vld [vmem:[#allocation8 + $0x24] ss:$8 sps:$4 sm:$0xff]  }
 0x18b   :  { %1363 = vmatpush1.bf16.msra.mxu1 %v3004_v41  ;;  %1486 = vmatpush1.bf16.msra.mxu0 %v3007_v42  ;;  %v3087_v41 = vld [vmem:[#allocation8 + $0x34] ss:$8 sps:$4 sm:$0xff]   ;;  %v3085_v42 = vld [vmem:[#allocation8 + $0x30] ss:$8 sps:$4 sm:$0xff]  }
 0x18c   :  { %1364 = vmatprep.subr.bf16.mxu1 %v3012_v43  ;;  %1487 = vmatprep.subr.bf16.mxu0 %v3015_v44  ;;  %v3090_v43 = vld [vmem:[#allocation8 + $0x44] ss:$8 sps:$4 sm:$0xff]   ;;  %v3088_v44 = vld [vmem:[#allocation8 + $0x40] ss:$8 sps:$4 sm:$0xff]  }
 0x18f   :  { %1365 = vmatpush1.bf16.msra.mxu1 %v3010_v46  ;;  %1488 = vmatpush1.bf16.msra.mxu0 %v3013_v47  ;;  %v3093_v46 = vld [vmem:[#allocation8 + $0x54] ss:$8 sps:$4 sm:$0xff]   ;;  %v3091_v47 = vld [vmem:[#allocation8 + $0x50] ss:$8 sps:$4 sm:$0xff]  }
 0x190   :  { %1366 = vmatprep.subr.bf16.mxu1 %v3018_v48  ;;  %1489 = vmatprep.subr.bf16.mxu0 %v3021_v49  ;;  %v3096_v48 = vld [vmem:[#allocation8 + $0x64] ss:$8 sps:$4 sm:$0xff]   ;;  %v3094_v49 = vld [vmem:[#allocation8 + $0x60] ss:$8 sps:$4 sm:$0xff]  }
 0x193   :  { %1367 = vmatpush1.bf16.msra.mxu1 %v3016_v32  ;;  %1490 = vmatpush1.bf16.msra.mxu0 %v3019_v50  ;;  %v3099_v32 = vld [vmem:[#allocation8 + $0x74] ss:$8 sps:$4 sm:$0xff]   ;;  %v3097_v50 = vld [vmem:[#allocation8 + $0x70] ss:$8 sps:$4 sm:$0xff]  }
 0x194   :  { %1368 = vmatprep.subr.bf16.mxu1 %v3024_v51  ;;  %1491 = vmatprep.subr.bf16.mxu0 %v3027_v52  ;;  %v3102_v51 = vld [vmem:[#allocation8 + $0x84] ss:$8 sps:$4 sm:$0xff]   ;;  %v3100_v52 = vld [vmem:[#allocation8 + $0x80] ss:$8 sps:$4 sm:$0xff]  }
 0x197   :  { %1369 = vmatpush1.bf16.msra.mxu1 %v3022_v54  ;;  %1492 = vmatpush1.bf16.msra.mxu0 %v3025_v55  ;;  %v3103_v54 = vld [vmem:[#allocation8 + $0x90] ss:$8 sps:$4 sm:$0xff]   ;;  %v3108_v55 = vld [vmem:[#allocation8 + $0xa4] ss:$8 sps:$4 sm:$0xff]  }
 0x198   :  { %1379 = vmatprep.subr.bf16.mxu1 %v3030_v56  ;;  %1502 = vmatprep.subr.bf16.mxu0 %v3033_v57  ;;  %v3106_v56 = vld [vmem:[#allocation8 + $0xa0] ss:$8 sps:$4 sm:$0xff]   ;;  %v3111_v57 = vld [vmem:[#allocation8 + $0xb4] ss:$8 sps:$4 sm:$0xff]  }
 0x19a   :  { %1371 = vmatmul.mubr.bf16.vlgmr.msra.gmra.mrb[0].mxu1 %v312_v58  ;;  %1494 = vmatmul.mubr.bf16.vlgmr.msra.gmra.mrb[12].mxu0 %v312_v58  ;;  %v3109_v58 = vld [vmem:[#allocation8 + $0xb0] ss:$8 sps:$4 sm:$0xff]  }
 0x19b   :  { %1380 = vmatpush1.bf16.msra.mxu1 %v3028_v59  ;;  %1503 = vmatpush1.bf16.msra.mxu0 %v3031_v60  ;;  %v3114_v59 = vld [vmem:[#allocation8 + $0xc4] ss:$8 sps:$4 sm:$0xff]   ;;  %v3112_v60 = vld [vmem:[#allocation8 + $0xc0] ss:$8 sps:$4 sm:$0xff]  }
 0x19c   :  { %1381 = vmatprep.subr.bf16.mxu1 %v3036_v61  ;;  %1504 = vmatprep.subr.bf16.mxu0 %v3039_v62  ;;  %v3117_v61 = vld [vmem:[#allocation8 + $0xd4] ss:$8 sps:$4 sm:$0xff]   ;;  %v3115_v62 = vld [vmem:[#allocation8 + $0xd0] ss:$8 sps:$4 sm:$0xff]  }
 0x19d   :  { %1411 = vmatprep.mubr.bf16.mxu1 %v3438_v0  ;;  %1534 = vmatprep.mubr.bf16.mxu0 %v3438_v0  ;;  %v300_v0 = vadd.f32 %v3634_v45, %v144_v9  ;;  %v3064_v45 = vld [vmem:[#allocation7 + $0x4c0] ss:$16 sps:$4 sm:$0xff]   ;;  %v3180_v9 = vld [vmem:[#allocation10 + $0x24] ss:$8 sps:$4 sm:$0xff]  }
 0x19f   :  { %1382 = vmatpush1.bf16.msra.mxu1 %v3034_v63  ;;  %1505 = vmatpush1.bf16.msra.mxu0 %v3037_v1  ;;  %3244 = vtanh.f32 %v300_v0  ;;  %v3120_v63 = vld [vmem:[#allocation8 + $0xe4] ss:$8 sps:$4 sm:$0xff]   ;;  %v3118_v1 = vld [vmem:[#allocation8 + $0xe0] ss:$8 sps:$4 sm:$0xff]  }
 0x1a0   :  { %1383 = vmatprep.subr.bf16.mxu1 %v3042_v2  ;;  %1506 = vmatprep.subr.bf16.mxu0 %v3045_v3  ;;  %v3123_v2 = vld [vmem:[#allocation8 + $0xf4] ss:$8 sps:$4 sm:$0xff]   ;;  %v3121_v3 = vld [vmem:[#allocation8 + $0xf0] ss:$8 sps:$4 sm:$0xff]   ;;  %v3184_v0 = vld [vmem:[#allocation10 + $0x40] ss:$8 sps:$4 sm:$0xff]  }
 0x1a3   :  { %1384 = vmatpush1.bf16.msra.mxu1 %v3040_v5  ;;  %1507 = vmatpush1.bf16.msra.mxu0 %v3043_v6  ;;  %v3172_v5 = vld [vmem:[#allocation10] ss:$8 sps:$4 sm:$0xff]   ;;  %v3174_v6 = vld [vmem:[#allocation10 + $0x4] ss:$8 sps:$4 sm:$0xff]  }
 0x1a4   :  { %1385 = vmatprep.subr.bf16.mxu1 %v3048_v7  ;;  %1508 = vmatprep.subr.bf16.mxu0 %v3051_v8  ;;  %v3177_v7 = vld [vmem:[#allocation10 + $0x14] ss:$8 sps:$4 sm:$0xff]   ;;  %v3175_v8 = vld [vmem:[#allocation10 + $0x10] ss:$8 sps:$4 sm:$0xff]  }
 0x1a7   :  { %1386 = vmatpush1.bf16.msra.mxu1 %v3046_v10  ;;  %1509 = vmatpush1.bf16.msra.mxu0 %v3049_v11  ;;  %v3178_v10 = vld [vmem:[#allocation10 + $0x20] ss:$8 sps:$4 sm:$0xff]   ;;  %v3183_v11 = vld [vmem:[#allocation10 + $0x34] ss:$8 sps:$4 sm:$0xff]  }
 0x1a8   :  { %1387 = vmatprep.subr.bf16.mxu1 %v3054_v12  ;;  %1510 = vmatprep.subr.bf16.mxu0 %v3057_v13  ;;  %v3181_v12 = vld [vmem:[#allocation10 + $0x30] ss:$8 sps:$4 sm:$0xff]   ;;  %v3186_v13 = vld [vmem:[#allocation10 + $0x44] ss:$8 sps:$4 sm:$0xff]  }
 0x1a9   :  { %v3245_v30 = vpop.eup %3244 }
 0x1aa   :  { %v314_v35 = vpack.c.bf16 %v3245_v30, %v3245_v30  ;;  %v3202_v30 = vld [vmem:[#allocation10 + $0xa0] ss:$8 sps:$4 sm:$0xff]  }
 0x1ab   :  { %1388 = vmatpush1.bf16.msra.mxu1 %v3052_v14  ;;  %1511 = vmatpush1.bf16.msra.mxu0 %v3055_v15  ;;  %v3189_v14 = vld [vmem:[#allocation10 + $0x54] ss:$8 sps:$4 sm:$0xff]   ;;  %v3187_v15 = vld [vmem:[#allocation10 + $0x50] ss:$8 sps:$4 sm:$0xff]  }
 0x1ac   :  { %1389 = vmatprep.subr.bf16.mxu1 %v3060_v16  ;;  %1512 = vmatprep.subr.bf16.mxu0 %v3063_v17  ;;  %v3192_v16 = vld [vmem:[#allocation10 + $0x64] ss:$8 sps:$4 sm:$0xff]   ;;  %v3190_v17 = vld [vmem:[#allocation10 + $0x60] ss:$8 sps:$4 sm:$0xff]  }
 0x1af   :  { %1390 = vmatpush1.bf16.msra.mxu1 %v3058_v20  ;;  %1513 = vmatpush1.bf16.msra.mxu0 %v3061_v22  ;;  %v3195_v20 = vld [vmem:[#allocation10 + $0x74] ss:$8 sps:$4 sm:$0xff]   ;;  %v3193_v22 = vld [vmem:[#allocation10 + $0x70] ss:$8 sps:$4 sm:$0xff]  }
 0x1b0   :  { %1391 = vmatprep.subr.bf16.mxu1 %v3066_v23  ;;  %1514 = vmatprep.subr.bf16.mxu0 %v3069_v24  ;;  %v3198_v23 = vld [vmem:[#allocation10 + $0x84] ss:$8 sps:$4 sm:$0xff]   ;;  %v3196_v24 = vld [vmem:[#allocation10 + $0x80] ss:$8 sps:$4 sm:$0xff]  }
 0x1b3   :  { %1392 = vmatpush1.bf16.msra.mxu1 %v3064_v45  ;;  %1515 = vmatpush1.bf16.msra.mxu0 %v3067_v25  ;;  %v3201_v45 = vld [vmem:[#allocation10 + $0x94] ss:$8 sps:$4 sm:$0xff]   ;;  %v3199_v25 = vld [vmem:[#allocation10 + $0x90] ss:$8 sps:$4 sm:$0xff]  }
 0x1b4   :  { %1393 = vmatprep.subr.bf16.mxu1 %v3072_v26  ;;  %1516 = vmatprep.subr.bf16.mxu0 %v3075_v27  ;;  %v3204_v26 = vld [vmem:[#allocation10 + $0xa4] ss:$8 sps:$4 sm:$0xff]  }
 0x1b5   :  { %v3649_v27 = vld [vmem:[%s3693_s4] sm:$0xf] }
 0x1b7   :  { %1394 = vmatpush1.bf16.msra.mxu1 %v3070_v31  ;;  %1517 = vmatpush1.bf16.msra.mxu0 %v3073_v33  ;;  %v3207_v31 = vld [vmem:[#allocation10 + $0xb4] ss:$8 sps:$4 sm:$0xff]   ;;  %v480_v33 = vrot.slane %v3649_v27, %v3614_v19 }
 0x1b8   :  { %1947 = vmatprep.subr.bf16.mxu1 %v3078_v34  ;;  %2237 = vmatprep.subr.bf16.mxu0 %v3174_v6  ;;  %v484_v34 = vrot.slane %v3649_v27, %v3622_v21  ;;  %v3148_v6 = vld [vmem:[#allocation8 + $0x180] ss:$8 sps:$4 sm:$0xff]  }
 0x1ba   :  { %1412 = vmatmul.mubr.bf16.vlgmr.msra.gmra.mrb[0].mxu1 %v314_v35  ;;  %1535 = vmatmul.mubr.bf16.vlgmr.msra.gmra.mrb[12].mxu0 %v314_v35  ;;  %v492_v35 = vrot.slane %v3649_v27, %v139_v29 }
 0x1bb   :  { %1948 = vmatpush1.bf16.msra.mxu1 %v3076_v36  ;;  %2238 = vmatpush1.bf16.msra.mxu0 %v3172_v5  ;;  %v3205_v36 = vld [vmem:[#allocation10 + $0xb0] ss:$8 sps:$4 sm:$0xff]   ;;  %v3150_v5 = vld [vmem:[#allocation8 + $0x184] ss:$8 sps:$4 sm:$0xff]  }
 0x1bc   :  { %1949 = vmatprep.subr.bf16.mxu1 %v3081_v37  ;;  %2239 = vmatprep.subr.bf16.mxu0 %v3177_v7  ;;  %v3153_v7 = vld [vmem:[#allocation8 + $0x194] ss:$8 sps:$4 sm:$0xff]  }
 0x1bf   :  { %1950 = vmatpush1.bf16.msra.mxu1 %v3079_v38  ;;  %2240 = vmatpush1.bf16.msra.mxu0 %v3175_v8  ;;  %v3151_v8 = vld [vmem:[#allocation8 + $0x190] ss:$8 sps:$4 sm:$0xff]  }
 0x1c0   :  { %1951 = vmatprep.subr.bf16.mxu1 %v3084_v39  ;;  %2241 = vmatprep.subr.bf16.mxu0 %v3180_v9  ;;  %v3156_v9 = vld [vmem:[#allocation8 + $0x1a4] ss:$8 sps:$4 sm:$0xff]  }
 0x1c3   :  { %1952 = vmatpush1.bf16.msra.mxu1 %v3082_v40  ;;  %2242 = vmatpush1.bf16.msra.mxu0 %v3178_v10  ;;  %v3154_v10 = vld [vmem:[#allocation8 + $0x1a0] ss:$8 sps:$4 sm:$0xff]  }
 0x1c4   :  { %1953 = vmatprep.subr.bf16.mxu1 %v3087_v41  ;;  %2243 = vmatprep.subr.bf16.mxu0 %v3183_v11  ;;  %v3159_v11 = vld [vmem:[#allocation8 + $0x1b4] ss:$8 sps:$4 sm:$0xff]  }
 0x1c7   :  { %1954 = vmatpush1.bf16.msra.mxu1 %v3085_v42  ;;  %2244 = vmatpush1.bf16.msra.mxu0 %v3181_v12  ;;  %v488_v12 = vrot.slane %v3649_v27, %v135_v28  ;;  %v3169_v28 = vld [vmem:[#allocation8 + $0x1f0] ss:$8 sps:$4 sm:$0xff]  }
 0x1c8   :  { %1955 = vmatprep.subr.bf16.mxu1 %v3090_v43  ;;  %2245 = vmatprep.subr.bf16.mxu0 %v3186_v13  ;;  %v3157_v13 = vld [vmem:[#allocation8 + $0x1b0] ss:$8 sps:$4 sm:$0xff]  }
 0x1c9   :  { %v3211_v27 = vld [vmem:[#allocation10 + $0xd0] ss:$8 sps:$4 sm:$0xff]  }
 0x1cb   :  { %1956 = vmatpush1.bf16.msra.mxu1 %v3088_v44  ;;  %2246 = vmatpush1.bf16.msra.mxu0 %v3184_v0  ;;  %v3162_v0 = vld [vmem:[#allocation8 + $0x1c4] ss:$8 sps:$4 sm:$0xff]  }
 0x1cc   :  { %1957 = vmatprep.subr.bf16.mxu1 %v3093_v46  ;;  %2247 = vmatprep.subr.bf16.mxu0 %v3189_v14 }
 0x1cf   :  { %1958 = vmatpush1.bf16.msra.mxu1 %v3091_v47  ;;  %2248 = vmatpush1.bf16.msra.mxu0 %v3187_v15  ;;  %v3160_v15 = vld [vmem:[#allocation8 + $0x1c0] ss:$8 sps:$4 sm:$0xff]  }
 0x1d0   :  { %1959 = vmatprep.subr.bf16.mxu1 %v3096_v48  ;;  %2249 = vmatprep.subr.bf16.mxu0 %v3192_v16  ;;  %v3165_v16 = vld [vmem:[#allocation8 + $0x1d4] ss:$8 sps:$4 sm:$0xff]  }
 0x1d3   :  { %1960 = vmatpush1.bf16.msra.mxu1 %v3094_v49  ;;  %2250 = vmatpush1.bf16.msra.mxu0 %v3190_v17  ;;  %v3163_v17 = vld [vmem:[#allocation8 + $0x1d0] ss:$8 sps:$4 sm:$0xff]  }
 0x1d4   :  { %1961 = vmatprep.subr.bf16.mxu1 %v3099_v32  ;;  %2251 = vmatprep.subr.bf16.mxu0 %v3195_v20  ;;  %v3168_v20 = vld [vmem:[#allocation8 + $0x1e4] ss:$8 sps:$4 sm:$0xff]  }
 0x1d7   :  { %1962 = vmatpush1.bf16.msra.mxu1 %v3097_v50  ;;  %2252 = vmatpush1.bf16.msra.mxu0 %v3193_v22  ;;  %v3166_v22 = vld [vmem:[#allocation8 + $0x1e0] ss:$8 sps:$4 sm:$0xff]  }
 0x1d8   :  { %1963 = vmatprep.subr.bf16.mxu1 %v3102_v51  ;;  %2253 = vmatprep.subr.bf16.mxu0 %v3198_v23  ;;  %v3124_v51 = vld [vmem:[#allocation8 + $0x100] ss:$8 sps:$4 sm:$0xff]  }
 0x1db   :  { %1964 = vmatpush1.bf16.msra.mxu1 %v3100_v52  ;;  %2254 = vmatpush1.bf16.msra.mxu0 %v3196_v24 }
 0x1dc   :  { %1965 = vmatprep.subr.bf16.mxu1 %v3105_v53  ;;  %2255 = vmatprep.subr.bf16.mxu0 %v3201_v45  ;;  %v3129_v53 = vld [vmem:[#allocation8 + $0x114] ss:$8 sps:$4 sm:$0xff]   ;;  %v3210_v45 = vld [vmem:[#allocation10 + $0xc4] ss:$8 sps:$4 sm:$0xff]  }
 0x1df   :  { %1966 = vmatpush1.bf16.msra.mxu1 %v3103_v54  ;;  %2256 = vmatpush1.bf16.msra.mxu0 %v3199_v25  ;;  %v3208_v25 = vld [vmem:[#allocation10 + $0xc0] ss:$8 sps:$4 sm:$0xff]  }
 0x1e0   :  { %1967 = vmatprep.subr.bf16.mxu1 %v3108_v55  ;;  %2257 = vmatprep.subr.bf16.mxu0 %v3204_v26  ;;  %v3127_v55 = vld [vmem:[#allocation8 + $0x110] ss:$8 sps:$4 sm:$0xff]   ;;  %v3213_v26 = vld [vmem:[#allocation10 + $0xd4] ss:$8 sps:$4 sm:$0xff]  }
 0x1e3   :  { %1968 = vmatpush1.bf16.msra.mxu1 %v3106_v56  ;;  %2258 = vmatpush1.bf16.msra.mxu0 %v3202_v30  ;;  %v3132_v56 = vld [vmem:[#allocation8 + $0x124] ss:$8 sps:$4 sm:$0xff]  }
 0x1e4   :  { %1969 = vmatprep.subr.bf16.mxu1 %v3111_v57  ;;  %2259 = vmatprep.subr.bf16.mxu0 %v3207_v31  ;;  %v3130_v57 = vld [vmem:[#allocation8 + $0x120] ss:$8 sps:$4 sm:$0xff]   ;;  %v3216_v30 = vld [vmem:[#allocation10 + $0xe4] ss:$8 sps:$4 sm:$0xff]  }
 0x1e5   :  { %v3214_v31 = vld [vmem:[#allocation10 + $0xe0] ss:$8 sps:$4 sm:$0xff]  }
 0x1e7   :  { %1970 = vmatpush1.bf16.msra.mxu1 %v3109_v58  ;;  %2260 = vmatpush1.bf16.msra.mxu0 %v3205_v36  ;;  %v3135_v58 = vld [vmem:[#allocation8 + $0x134] ss:$8 sps:$4 sm:$0xff]   ;;  %v1615_v36 = vld [vmem:[%s3695_s6] sm:$0x3] }
 0x1e8   :  { %1971 = vmatprep.subr.bf16.mxu1 %v3114_v59  ;;  %v3133_v59 = vld [vmem:[#allocation8 + $0x130] ss:$8 sps:$4 sm:$0xff]   ;;  %2261 = vmatprep.subr.bf16.mxu0 %v3210_v45 }
 0x1eb   :  { %1972 = vmatpush1.bf16.msra.mxu1 %v3112_v60  ;;  %v3138_v60 = vld [vmem:[#allocation8 + $0x144] ss:$8 sps:$4 sm:$0xff]   ;;  %2262 = vmatpush1.bf16.msra.mxu0 %v3208_v25 }
 0x1ec   :  { %1973 = vmatprep.subr.bf16.mxu1 %v3117_v61  ;;  %v3136_v61 = vld [vmem:[#allocation8 + $0x140] ss:$8 sps:$4 sm:$0xff]   ;;  %2263 = vmatprep.subr.bf16.mxu0 %v3213_v26 }
 0x1ef   :  { %1974 = vmatpush1.bf16.msra.mxu1 %v3115_v62  ;;  %v3141_v62 = vld [vmem:[#allocation8 + $0x154] ss:$8 sps:$4 sm:$0xff]   ;;  %2264 = vmatpush1.bf16.msra.mxu0 %v3211_v27 }
 0x1f0   :  { %1975 = vmatprep.subr.bf16.mxu1 %v3120_v63  ;;  %v3139_v63 = vld [vmem:[#allocation8 + $0x150] ss:$8 sps:$4 sm:$0xff]   ;;  %2265 = vmatprep.subr.bf16.mxu0 %v3216_v30 }
 0x1f3   :  { %1976 = vmatpush1.bf16.msra.mxu1 %v3118_v1  ;;  %v3144_v1 = vld [vmem:[#allocation8 + $0x164] ss:$8 sps:$4 sm:$0xff]   ;;  %2266 = vmatpush1.bf16.msra.mxu0 %v3214_v31 }
 0x1f4   :  { %1977 = vmatprep.subr.bf16.mxu1 %v3123_v2  ;;  %v3142_v2 = vld [vmem:[#allocation8 + $0x160] ss:$8 sps:$4 sm:$0xff]  }
 0x1f7   :  { %1978 = vmatpush1.bf16.msra.mxu1 %v3121_v3  ;;  %v3147_v3 = vld [vmem:[#allocation8 + $0x174] ss:$8 sps:$4 sm:$0xff]  }
 0x1f8   :  { %1988 = vmatprep.subr.bf16.mxu1 %v3126_v4  ;;  %v3145_v4 = vld [vmem:[#allocation8 + $0x170] ss:$8 sps:$4 sm:$0xff]  }
 0x28d   :  { %v1413_v37 = vpop.f32.mrb[0].mxu1  ;;  %v3658_v38 = vpop.f32.mrb[12].mxu0 }
 0x28e   :  { %v2789_v39 = vadd.f32 %v1413_v37, %v480_v33  ;;  %v1415_v40 = vpop.f32.mrb[1].mxu1  ;;  %v1538_v41 = vpop.f32.mrb[13].mxu0  ;;  %v2791_v14 = vadd.f32 %v3658_v38, %v488_v12  ;;  %v3219_v33 = vld [vmem:[#allocation10 + $0xf4] ss:$8 sps:$4 sm:$0xff]   ;;  %v1620_v37 = vrot.slane %v1615_v36, %v3614_v19  ;;  %v1624_v38 = vrot.slane %v1615_v36, %v3622_v21 }
 0x28f   :  { %v2790_v42 = vadd.f32 %v1415_v40, %v484_v34  ;;  %v2792_v43 = vadd.f32 %v1538_v41, %v492_v35  ;;  %v1417_v44 = vpop.f32.mrb[2].mxu1  ;;  %v1540_v46 = vpop.f32.mrb[14].mxu0  ;;  %v3217_v34 = vld [vmem:[#allocation10 + $0xf0] ss:$8 sps:$4 sm:$0xff]   ;;  %2267 = vmatprep.subr.bf16.mxu0 %v3219_v33  ;;  %v3220_v35 = vld [vmem:[#allocation11 + $0x40] sm:$0xff]  }
 0x290   :  { %v1418_v47 = vpop.f32.mrb[3].mxu1  ;;  %v1541_v48 = vpop.f32.mrb[15].mxu0  ;;  %3246 = vtanh.f32 %v2789_v39  ;;  %2268 = vmatpush1.bf16.msra.mxu0 %v3217_v34 }
 0x291   :  { %3248 = vtanh.f32 %v2790_v42  ;;  %2761 = vmatprep.subr.bf16.mxu0 %v3220_v35 }
 0x292   :  { %3250 = vtanh.f32 %v2792_v43 }
 0x293   :  { %3252 = vtanh.f32 %v2791_v14 }
 0x29a   :  { %v3247_v29 = vpop.eup %3246 }
 0x29b   :  { %v3249_v49 = vpop.eup %3248  ;;  %v1547_v52 = vpack.c.bf16 %v3247_v29, %v3247_v29  ;;  %v3221_v29 = vld [vmem:[#allocation11] sm:$0xff]  }
 0x29c   :  { %v3251_v32 = vpop.eup %3250  ;;  %v1548_v50 = vpack.c.bf16 %v3249_v49, %v3249_v49 }
 0x29d   :  { %v1550_v54 = vpack.c.bf16 %v3251_v32, %v3251_v32  ;;  %v3253_v23 = vpop.eup %3252  ;;  %v3222_v32 = vld [vmem:[#allocation11 + $0x48] sm:$0xff]  }
 0x29e   :  { %1979 = vmatprep.mubr.bf16.mxu1 %v1548_v50  ;;  %v1549_v24 = vpack.c.bf16 %v3253_v23, %v3253_v23  ;;  %v3223_v50 = vld [vmem:[#allocation11 + $0x8] sm:$0xff]  }
 0x29f   :  { %1980 = vmatmul.mubr.bf16.vlgmr.msra.gmra.mrb[4].mxu1 %v1547_v52  ;;  %v3225_v52 = vld [vmem:[#allocation11 + $0x10] sm:$0xff]  }
 0x2a0   :  { %1989 = vmatpush1.bf16.msra.mxu1 %v3124_v51  ;;  %2020 = vmatprep.mubr.bf16.mxu1 %v1550_v54  ;;  %v3224_v51 = vld [vmem:[#allocation11 + $0x50] sm:$0xff]   ;;  %v3227_v54 = vld [vmem:[#allocation11 + $0x18] sm:$0xff]  }
 0x2a1   :  { %1990 = vmatprep.subr.bf16.mxu1 %v3129_v53  ;;  %v3226_v53 = vld [vmem:[#allocation11 + $0x58] sm:$0xff]  }
 0x2a4   :  { %1991 = vmatpush1.bf16.msra.mxu1 %v3127_v55  ;;  %v3228_v55 = vld [vmem:[#allocation11 + $0x60] sm:$0xff]  }
 0x2a5   :  { %1992 = vmatprep.subr.bf16.mxu1 %v3132_v56  ;;  %v3229_v56 = vld [vmem:[#allocation11 + $0x20] sm:$0xff]  }
 0x2a8   :  { %1993 = vmatpush1.bf16.msra.mxu1 %v3130_v57  ;;  %v3230_v57 = vld [vmem:[#allocation11 + $0x68] sm:$0xff]  }
 0x2a9   :  { %1994 = vmatprep.subr.bf16.mxu1 %v3135_v58  ;;  %v3231_v58 = vld [vmem:[#allocation11 + $0x28] sm:$0xff]  }
 0x2ac   :  { %1995 = vmatpush1.bf16.msra.mxu1 %v3133_v59  ;;  %v3232_v59 = vld [vmem:[#allocation11 + $0x70] sm:$0xff]  }
 0x2ad   :  { %1996 = vmatprep.subr.bf16.mxu1 %v3138_v60  ;;  %v3233_v60 = vld [vmem:[#allocation11 + $0x30] sm:$0xff]  }
 0x2b0   :  { %1997 = vmatpush1.bf16.msra.mxu1 %v3136_v61  ;;  %v3234_v61 = vld [vmem:[#allocation11 + $0x78] sm:$0xff]  }
 0x2b1   :  { %1998 = vmatprep.subr.bf16.mxu1 %v3141_v62  ;;  %v3235_v62 = vld [vmem:[#allocation11 + $0x38] sm:$0xff]  }
 0x2b4   :  { %1999 = vmatpush1.bf16.msra.mxu1 %v3139_v63  ;;  %v2065_v63 = vld [vmem:[%s3697_s8] sm:$0x3] }
 0x2b5   :  { %2000 = vmatprep.subr.bf16.mxu1 %v3144_v1  ;;  %v2070_v1 = vrot.slane %v2065_v63, %v3614_v19  ;;  %v2742_v19 = vld [vmem:[%s3699_s10] ss:$0 sm:$0xff] }
 0x2b8   :  { %2001 = vmatpush1.bf16.msra.mxu1 %v3142_v2  ;;  %v2074_v2 = vrot.slane %v2065_v63, %v3622_v21 }
 0x2b9   :  { %2002 = vmatprep.subr.bf16.mxu1 %v3147_v3 }
 0x2bc   :  { %2003 = vmatpush1.bf16.msra.mxu1 %v3145_v4 }
 0x2bd   :  { %2004 = vmatprep.subr.bf16.mxu1 %v3150_v5 }
 0x2c0   :  { %2005 = vmatpush1.bf16.msra.mxu1 %v3148_v6 }
 0x2c1   :  { %2006 = vmatprep.subr.bf16.mxu1 %v3153_v7 }
 0x2c4   :  { %2007 = vmatpush1.bf16.msra.mxu1 %v3151_v8 }
 0x2c5   :  { %2008 = vmatprep.subr.bf16.mxu1 %v3156_v9 }
 0x2c8   :  { %2009 = vmatpush1.bf16.msra.mxu1 %v3154_v10 }
 0x2c9   :  { %2010 = vmatprep.subr.bf16.mxu1 %v3159_v11 }
 0x2cc   :  { %2011 = vmatpush1.bf16.msra.mxu1 %v3157_v13 }
 0x2cd   :  { %2012 = vmatprep.subr.bf16.mxu1 %v3162_v0 }
 0x2d0   :  { %2013 = vmatpush1.bf16.msra.mxu1 %v3160_v15 }
 0x2d1   :  { %2014 = vmatprep.subr.bf16.mxu1 %v3165_v16 }
 0x2d4   :  { %2015 = vmatpush1.bf16.msra.mxu1 %v3163_v17 }
 0x2d5   :  { %2016 = vmatprep.subr.bf16.mxu1 %v3168_v20 }
 0x2d8   :  { %2017 = vmatpush1.bf16.msra.mxu1 %v3166_v22 }
 0x2d9   :  { %2018 = vmatprep.subr.bf16.mxu1 %v3171_v18 }
 0x2dc   :  { %2019 = vmatpush1.bf16.msra.mxu1 %v3169_v28 }
 0x2df   :  { %2021 = vmatmul.mubr.bf16.vlgmr.msra.gmra.mrb[4].mxu1 %v1549_v24 }
 0x3b2   :  { %v2022_v39 = vpop.f32.mrb[4].mxu1 }
 0x3b3   :  { %v2793_v40 = vadd.f32 %v2022_v39, %v1620_v37  ;;  %v2024_v41 = vpop.f32.mrb[5].mxu1 }
 0x3b4   :  { %v2794_v42 = vadd.f32 %v2024_v41, %v1624_v38  ;;  %v2026_v43 = vpop.f32.mrb[6].mxu1 }
 0x3b5   :  { %3254 = vtanh.f32 %v2793_v40  ;;  %v2027_v44 = vpop.f32.mrb[7].mxu1 }
 0x3b6   :  { %3256 = vtanh.f32 %v2794_v42 }
 0x3bf   :  { %v3255_v46 = vpop.eup %3254 }
 0x3c0   :  { %v3257_v47 = vpop.eup %3256  ;;  %v2031_v49 = vpack.c.bf16 %v3255_v46, %v3255_v46 }
 0x3c1   :  { %v2032_v48 = vpack.c.bf16 %v3257_v47, %v3257_v47 }
 0x3c3   :  { %2269 = vmatprep.mubr.bf16.mxu0 %v2032_v48 }
 0x3c4   :  { %2270 = vmatmul.mubr.bf16.vlgmr.msra.gmra.mrb[16].mxu0 %v2031_v49 }
 0x3c5   :  { %2762 = vmatpush3.bf16.msra.mxu0 %v3221_v29 }
 0x3c6   :  { %2763 = vmatprep.subr.bf16.mxu0 %v3222_v32 }
 0x3c9   :  { %2764 = vmatpush3.bf16.msra.mxu0 %v3223_v50 }
 0x3ca   :  { %2765 = vmatprep.subr.bf16.mxu0 %v3224_v51 }
 0x3cd   :  { %2766 = vmatpush3.bf16.msra.mxu0 %v3225_v52 }
 0x3ce   :  { %2767 = vmatprep.subr.bf16.mxu0 %v3226_v53 }
 0x3d1   :  { %2768 = vmatpush3.bf16.msra.mxu0 %v3227_v54 }
 0x3d2   :  { %2769 = vmatprep.subr.bf16.mxu0 %v3228_v55 }
 0x3d5   :  { %2770 = vmatpush3.bf16.msra.mxu0 %v3229_v56 }
 0x3d6   :  { %2771 = vmatprep.subr.bf16.mxu0 %v3230_v57 }
 0x3d9   :  { %2772 = vmatpush3.bf16.msra.mxu0 %v3231_v58 }
 0x3da   :  { %2773 = vmatprep.subr.bf16.mxu0 %v3232_v59 }
 0x3dd   :  { %2774 = vmatpush3.bf16.msra.mxu0 %v3233_v60 }
 0x3de   :  { %2775 = vmatprep.subr.bf16.mxu0 %v3234_v61 }
 0x3e1   :  { %2776 = vmatpush3.bf16.msra.mxu0 %v3235_v62 }
 0x497   :  { %v2271_v3 = vpop.f32.mrb[16].mxu0 }
 0x498   :  { %v2272_v4 = vadd.f32 %v2271_v3, %v2070_v1  ;;  %v2273_v5 = vpop.f32.mrb[17].mxu0 }
 0x499   :  { %v2274_v6 = vadd.f32 %v2273_v5, %v2074_v2  ;;  %v2275_v7 = vpop.f32.mrb[18].mxu0 }
 0x49a   :  { %3258 = vtanh.f32 %v2272_v4  ;;  %v2276_v8 = vpop.f32.mrb[19].mxu0 }
 0x49b   :  { %3260 = vtanh.f32 %v2274_v6 }
 0x4a4   :  { %v3259_v9 = vpop.eup %3258 }
 0x4a5   :  { %v3261_v10 = vpop.eup %3260  ;;  %v2280_v12 = vpack.c.bf16 %v3259_v9, %v3259_v9 }
 0x4a6   :  { %v2281_v11 = vpack.c.bf16 %v3261_v10, %v3261_v10 }
 0x4a8   :  { %2449 = vmatprep.mubr.bf16.mxu0 %v2281_v11 }
 0x4a9   :  { %2450 = vmatmul.mubr.bf16.vlgmr.msra.gmra.mrb[20].mxu0 %v2280_v12 }
 0x57c   :  { %v2777_v13 = vpop.f32.mrb[20].mxu0 }
 0x57d   :  { %v2778_v21 = vpop.f32.mrb[21].mxu0 }
 0x57e   :  { %v2779_v0 = vadd.f32 %v2778_v21, %v2777_v13  ;;  %v2780_v14 = vpop.f32.mrb[22].mxu0 }
 0x57f   :  { %v2781_v15 = vpop.f32.mrb[23].mxu0 }
 0x580   :  { %v2452_v16 = vadd.f32 %v2779_v0, %v2742_v19 }
 0x582   :  { %2457 = vst [vmem:[#allocation13] sm:$0xff] %v2452_v16 }
 0x583   :  { %3405 = shalt.err (!%p3402_p10)
}
 0x584   :  { %s3406_s10 = scalar_lea.hbm %s3700_s11, 128 }
 0x585   :  { %p3407_p11 = scmp.ne.s32.totalorder %s3700_s11, %s3406_s10  ;;  %p3410_p12 = scmp.lt.u32.totalorder %s3406_s10, %s3700_s11 }
 0x587   :  { %p3412_p13 = pnand %p3410_p12, %p3407_p11 }
 0x589   :  { %3415 = shalt.err (!%p3412_p13)
}
 0x58a   :  { %2467 = dma.vmem_to_hbm [thread:$0]  %s2465_s19, 128, %s3700_s11, [#allocation4]  }
 0x58b   :  { %3424 = dma.done.wait [#allocation4], 128  }
 0x58c   :  { %3425 = vsyncadd [#allocation4], 4294967168 }
 0x58d   :  { %2471 = vsyncpa [#allocation3], 1 }
 0x58e   :  { %2472 = vsyncpa [#allocation6], 1 }
 0x58f   :  { %2473 = vsyncpa [#allocation9], 1 }
 0x590   :  { %2474 = vsyncpa [#allocation12], 1 }
 0x591   :  { %2475 = vsyncpa [#allocation4], 1 }

// kernel: tpu_custom_call.1
= control target key start
LH: loop header
LB: loop body
LE: loop exit
PB: predicated region body
PF: predicated region fallthrough
CT: control target
= control target key end

     0   :  { %16 = vsyncpa [#allocation3], 0  ;;  %s3689_s0 = inlined_call_operand.hbm [shape: f32[8,8], index: 0, kind: input, shape index: {}]   ;;  %s3690_s1 = inlined_call_operand.hbm [shape: bf16[8,640], index: 1, kind: input, shape index: {}]   ;;  %s3691_s2 = inlined_call_operand.vmem [shape: f32[1,640], index: 2, kind: input, shape index: {}]   ;;  %s3692_s3 = inlined_call_operand.hbm [shape: bf16[640,512], index: 3, kind: input, shape index: {}]   ;;  %s3693_s4 = inlined_call_operand.vmem [shape: f32[1,512], index: 4, kind: input, shape index: {}]   ;;  %s3694_s5 = inlined_call_operand.hbm [shape: bf16[512,256], index: 5, kind: input, shape index: {}]   ;;  %s3695_s6 = inlined_call_operand.vmem [shape: f32[1,256], index: 6, kind: input, shape index: {}]   ;;  %s3696_s7 = inlined_call_operand.hbm [shape: bf16[256,256], index: 7, kind: input, shape index: {}]   ;;  %s3697_s8 = inlined_call_operand.vmem [shape: f32[1,256], index: 8, kind: input, shape index: {}]   ;;  %s3698_s9 = inlined_call_operand.hbm [shape: bf16[256,128], index: 9, kind: input, shape index: {}]   ;;  %s3699_s10 = inlined_call_operand.vmem [shape: f32[1,128], index: 10, kind: input, shape index: {}]   ;;  %s3700_s11 = inlined_call_operand.hbm [shape: f32[8,128], index: 11, kind: output, shape index: {}]  }
   0x1   :  { %17 = vsyncpa [#allocation6], 0 }
   0x2   :  { %18 = vsyncpa [#allocation9], 0 }
   0x3   :  { %19 = vsyncpa [#allocation12], 0 }
   0x4   :  { %20 = vsyncpa [#allocation4], 0  ;;  %s3426_s17 = smov [#allocation5]   ;;  %s3427_s19 = smov [#allocation8]  }
   0x5   :  { %s37_s18 = sshll.u32 %s3426_s17, 4  ;;  %s62_s20 = sshll.u32 %s3427_s19, 4  ;;  %s38_s18 = int_to_ptr.vmem [resolvable:$true] %s37_s18  ;;  %s3502_s20 = int_to_ptr.vmem [resolvable:$true] %s62_s20 }
   0x6   :  { %s3262_s23 = scalar_lea.hbm %s3690_s1, 320 }
   0x7   :  { %p3263_p0 = scmp.ne.s32.totalorder %s3690_s1, %s3262_s23  ;;  %p3266_p1 = scmp.lt.u32.totalorder %s3262_s23, %s3690_s1 }
   0x9   :  { %p3268_p2 = pnand %p3266_p1, %p3263_p0 }
   0xb   :  { %3271 = shalt.err (!%p3268_p2)
}
   0xc   :  { %s3272_s28 = scalar_lea.vmem %s38_s18, 320  ;;  %p3277_p4 = scmp.lt.s32.totalorder %s38_s18, %s38_s18 }
   0xd   :  { %p3273_p3 = scmp.ne.s32.totalorder %s38_s18, %s3272_s28  ;;  %p3278_p5 = scmp.lt.s32.totalorder %s3272_s28, %s3272_s28 }
   0xf   :  { %p3279_p6 = por %p3278_p5, %p3277_p4 }
  0x11   :  { %p3280_p7 = pnand %p3279_p6, %p3273_p3 }
  0x13   :  { %3283 = shalt.err (!%p3280_p7)
}
  0x14   :  { %40 = dma.hbm_to_vmem [thread:$0]  %s3690_s1, 320, %s38_s18, [#allocation6]  }
  0x15   :  { %s3284_s14 = scalar_lea.hbm %s3694_s5, 8192 }
  0x16   :  { %p3285_p8 = scmp.ne.s32.totalorder %s3694_s5, %s3284_s14  ;;  %p3288_p9 = scmp.lt.u32.totalorder %s3284_s14, %s3694_s5 }
  0x18   :  { %p3290_p10 = pnand %p3288_p9, %p3285_p8 }
  0x1a   :  { %3293 = shalt.err (!%p3290_p10)
}
  0x1b   :  { %s3294_s21 = scalar_lea.vmem %s3502_s20, 8192  ;;  %p3299_p12 = scmp.lt.s32.totalorder %s3502_s20, %s3502_s20 }
  0x1c   :  { %p3295_p11 = scmp.ne.s32.totalorder %s3502_s20, %s3294_s21  ;;  %p3300_p13 = scmp.lt.s32.totalorder %s3294_s21, %s3294_s21 }
  0x1e   :  { %p3301_p0 = por %p3300_p13, %p3299_p12 }
  0x20   :  { %p3302_p1 = pnand %p3301_p0, %p3295_p11 }
  0x22   :  { %3305 = shalt.err (!%p3302_p1)
}
  0x23   :  { %s3428_s1 = smov 128   ;;  %s3429_s18 = smov 8  }
  0x24   :  { %68 = dma.hbm_to_vmem [thread:$0]  %s3694_s5, 8192, %s3502_s20, [#allocation9], %s3428_s1, %s3428_s1, %s3429_s18  }
  0x25   :  { %s3430_s24 = smov [#allocation2]   ;;  %s3431_s26 = smov [#allocation7]  }
  0x26   :  { %s27_s25 = sshll.u32 %s3430_s24, 4  ;;  %s48_s27 = sshll.u32 %s3431_s26, 4  ;;  %s28_s25 = int_to_ptr.vmem [resolvable:$true] %s27_s25  ;;  %s3536_s27 = int_to_ptr.vmem [resolvable:$true] %s48_s27 }
  0x27   :  { %s3306_s30 = scalar_lea.hbm %s3689_s0, 128 }
  0x28   :  { %p3307_p2 = scmp.ne.s32.totalorder %s3689_s0, %s3306_s30  ;;  %p3310_p3 = scmp.lt.u32.totalorder %s3306_s30, %s3689_s0 }
  0x2a   :  { %p3312_p4 = pnand %p3310_p3, %p3307_p2 }
  0x2c   :  { %3315 = shalt.err (!%p3312_p4)
}
  0x2d   :  { %s3316_s5 = scalar_lea.vmem %s28_s25, 128  ;;  %p3321_p6 = scmp.lt.s32.totalorder %s28_s25, %s28_s25 }
  0x2e   :  { %p3317_p5 = scmp.ne.s32.totalorder %s28_s25, %s3316_s5  ;;  %p3322_p7 = scmp.lt.s32.totalorder %s3316_s5, %s3316_s5 }
  0x30   :  { %p3323_p8 = por %p3322_p7, %p3321_p6 }
  0x32   :  { %p3324_p9 = pnand %p3323_p8, %p3317_p5 }
  0x34   :  { %3327 = shalt.err (!%p3324_p9)
}
  0x35   :  { %30 = dma.hbm_to_vmem [thread:$0]  %s3689_s0, 128, %s28_s25, [#allocation3]  }
  0x36   :  { %s3328_s21 = scalar_lea.hbm %s3692_s3, 20480 }
  0x37   :  { %p3329_p10 = scmp.ne.s32.totalorder %s3692_s3, %s3328_s21  ;;  %p3332_p11 = scmp.lt.u32.totalorder %s3328_s21, %s3692_s3 }
  0x39   :  { %p3334_p12 = pnand %p3332_p11, %p3329_p10 }
  0x3b   :  { %3337 = shalt.err (!%p3334_p12)
}
  0x3c   :  { %s3338_s28 = scalar_lea.vmem %s3536_s27, 20480  ;;  %p3343_p0 = scmp.lt.s32.totalorder %s3536_s27, %s3536_s27 }
  0x3d   :  { %p3339_p13 = scmp.ne.s32.totalorder %s3536_s27, %s3338_s28  ;;  %p3344_p1 = scmp.lt.s32.totalorder %s3338_s28, %s3338_s28 }
  0x3f   :  { %p3345_p2 = por %p3344_p1, %p3343_p0 }
  0x41   :  { %p3346_p3 = pnand %p3345_p2, %p3339_p13 }
  0x43   :  { %3349 = shalt.err (!%p3346_p3)
}
  0x44   :  { %s3432_s0 = smov 256   ;;  %s3433_s25 = smov 16  }
  0x45   :  { %54 = dma.hbm_to_vmem [thread:$0]  %s3692_s3, 20480, %s3536_s27, [#allocation6], %s3432_s0, %s3432_s0, %s3433_s25  }
  0x46   :  { %s3434_s12 = smov [#allocation10]   ;;  %s3435_s14 = smov [#allocation11]  }
  0x47   :  { %s76_s13 = sshll.u32 %s3434_s12, 4  ;;  %s90_s15 = sshll.u32 %s3435_s14, 4  ;;  %s77_s13 = int_to_ptr.vmem [resolvable:$true] %s76_s13  ;;  %s3567_s15 = int_to_ptr.vmem [resolvable:$true] %s90_s15 }
  0x48   :  { %s3350_s16 = scalar_lea.hbm %s3696_s7, 4096 }
  0x49   :  { %p3351_p4 = scmp.ne.s32.totalorder %s3696_s7, %s3350_s16  ;;  %p3354_p5 = scmp.lt.u32.totalorder %s3350_s16, %s3696_s7 }
  0x4b   :  { %p3356_p6 = pnand %p3354_p5, %p3351_p4 }
  0x4d   :  { %3359 = shalt.err (!%p3356_p6)
}
  0x4e   :  { %s3360_s3 = scalar_lea.vmem %s77_s13, 4096  ;;  %p3365_p8 = scmp.lt.s32.totalorder %s77_s13, %s77_s13 }
  0x4f   :  { %p3361_p7 = scmp.ne.s32.totalorder %s77_s13, %s3360_s3  ;;  %p3366_p9 = scmp.lt.s32.totalorder %s3360_s3, %s3360_s3 }
  0x51   :  { %p3367_p10 = por %p3366_p9, %p3365_p8 }
  0x53   :  { %p3368_p11 = pnand %p3367_p10, %p3361_p7 }
  0x55   :  { %3371 = shalt.err (!%p3368_p11)
}
  0x56   :  { %82 = dma.hbm_to_vmem [thread:$0]  %s3696_s7, 4096, %s77_s13, [#allocation9], %s3428_s1, %s3428_s1, %s3429_s18  }
  0x57   :  { %s3372_s28 = scalar_lea.hbm %s3698_s9, 2048 }
  0x58   :  { %p3373_p12 = scmp.ne.s32.totalorder %s3698_s9, %s3372_s28  ;;  %p3376_p13 = scmp.lt.u32.totalorder %s3372_s28, %s3698_s9 }
  0x5a   :  { %p3378_p0 = pnand %p3376_p13, %p3373_p12 }
  0x5c   :  { %3381 = shalt.err (!%p3378_p0)
}
  0x5d   :  { %s3382_s12 = scalar_lea.vmem %s3567_s15, 2048  ;;  %p3387_p2 = scmp.lt.s32.totalorder %s3567_s15, %s3567_s15 }
  0x5e   :  { %p3383_p1 = scmp.ne.s32.totalorder %s3567_s15, %s3382_s12  ;;  %p3388_p3 = scmp.lt.s32.totalorder %s3382_s12, %s3382_s12 }
  0x60   :  { %p3389_p4 = por %p3388_p3, %p3387_p2 }
  0x62   :  { %p3390_p5 = pnand %p3389_p4, %p3383_p1 }
  0x64   :  { %3393 = shalt.err (!%p3390_p5)
}
  0x65   :  { %s3436_s7 = smov 64   ;;  %s3437_s1 = smov 4  }
  0x66   :  { %96 = dma.hbm_to_vmem [thread:$0]  %s3698_s9, 2048, %s3567_s15, [#allocation12], %s3436_s7, %s3436_s7, %s3437_s1  }
  0x67   :  { %3416 = dma.done.wait [#allocation3], 128  }
  0x68   :  { %3417 = vsyncadd [#allocation3], 4294967168 }
  0x69   :  { %3418 = dma.done.wait [#allocation6], 20800  }
  0x6a   :  { %3419 = vsyncadd [#allocation6], 4294946496 }
  0x6b   :  { %3420 = dma.done.wait [#allocation9], 12288  }
  0x6c   :  { %3421 = vsyncadd [#allocation9], 4294955008 }
  0x6d   :  { %3422 = dma.done.wait [#allocation12], 2048  }
  0x6e   :  { %3423 = vsyncadd [#allocation12], 4294965248  ;;  %v3438_v0 = vmov 0   ;;  %v120_v1 = vld [vmem:[#allocation5] sm:$0xff]  ;;  %vm167_vm0 = vcmask 1043456   ;;  %v118_v2 = vld [vmem:[#allocation2] sm:$0xff] }
  0x6f   :  { %215 = vmatprep.mubr.bf16.mxu0 %v3438_v0  ;;  %v121_v3 = vld [vmem:[#allocation5 + $0x8] sm:$0xff]  ;;  %v2477_v4 = vcombine.high %v120_v1, %v120_v1  ;;  %v2476_v5 = vcombine.low %v120_v1, %v120_v1  ;;  %v119_v10 = vpack.c.bf16 %v118_v2, %v118_v2  ;;  %vm163_vm1 = vcmask 64512   ;;  %v2841_v11 = vld [vmem:[#allocation7] ss:$16 sps:$4 sm:$0xff]   ;;  %v2835_v17 = vld [vmem:[#allocation5 + $0x10] ss:$0 sps:$4 sm:$0xff]  }
  0x70   :  { %v2479_v6 = vcombine.high %v121_v3, %v121_v3  ;;  %v2478_v7 = vcombine.low %v121_v3, %v121_v3  ;;  %v2836_v8 = vld [vmem:[#allocation7 + $0x4] ss:$16 sps:$4 sm:$0xff]   ;;  %v2847_v14 = vld [vmem:[#allocation7 + $0x20] ss:$16 sps:$4 sm:$0xff]   ;;  %v3439_v16 = vmov 0.0   ;;  %v181_v20 = vsel %vm167_vm0, %v2835_v17, 0 }
  0x71   :  { %2481 = vmatprep.subr.msk.bf16.mxu0 %vm167_vm0, %v2477_v4  ;;  %v169_v9 = vsel %vm167_vm0, %v2476_v5, 0  ;;  %1297 = vmatprep.subr.bf16.mxu1 %v2836_v8  ;;  %v2842_v13 = vld [vmem:[#allocation7 + $0x24] ss:$16 sps:$4 sm:$0xff]   ;;  %v2853_v18 = vld [vmem:[#allocation7 + $0x40] ss:$16 sps:$4 sm:$0xff]   ;;  %vm3440_vm2 = vmmov 0   ;;  %v125_v17 = vlaneseq }
  0x72   :  { %184 = vmatpush1.bf16.msra.mxu0 %v169_v9  ;;  %v175_v12 = vsel %vm167_vm0, %v2478_v7, 0  ;;  %1298 = vmatpush1.bf16.msra.mxu1 %v2841_v11  ;;  %v2848_v15 = vld [vmem:[#allocation7 + $0x44] ss:$16 sps:$4 sm:$0xff]   ;;  %v2840_v21 = vld [vmem:[#allocation7 + $0xc] ss:$16 sps:$4 sm:$0xff]   ;;  %s3441_s17 = smov [#allocation13]  }
  0x73   :  { %2483 = vmatprep.subr.msk.bf16.mxu0 %vm167_vm0, %v2479_v6  ;;  %1299 = vmatprep.subr.bf16.mxu1 %v2842_v13  ;;  %v2854_v19 = vld [vmem:[#allocation7 + $0x64] ss:$16 sps:$4 sm:$0xff]   ;;  %v2859_v22 = vld [vmem:[#allocation7 + $0x60] ss:$16 sps:$4 sm:$0xff]   ;;  %v2838_v26 = vld [vmem:[#allocation7 + $0x8] ss:$16 sps:$4 sm:$0xff]  }
  0x74   :  { %v2860_v23 = vld [vmem:[#allocation7 + $0x84] ss:$16 sps:$4 sm:$0xff]   ;;  %v2865_v24 = vld [vmem:[#allocation7 + $0x80] ss:$16 sps:$4 sm:$0xff]   ;;  %v2846_v27 = vld [vmem:[#allocation7 + $0x2c] ss:$16 sps:$4 sm:$0xff]  }
  0x75   :  { %2482 = vmatmul.mubr.msk.bf16.vlgmr.msra.gmra.mrb[0].mxu0 %vm163_vm1, %v119_v10  ;;  %v2866_v25 = vld [vmem:[#allocation7 + $0xa4] ss:$16 sps:$4 sm:$0xff]   ;;  %v2871_v28 = vld [vmem:[#allocation7 + $0xa0] ss:$16 sps:$4 sm:$0xff]   ;;  %v2844_v30 = vld [vmem:[#allocation7 + $0x28] ss:$16 sps:$4 sm:$0xff]  }
  0x76   :  { %225 = vmatpush1.bf16.msra.mxu0 %v175_v12  ;;  %256 = vmatprep.mubr.bf16.mxu0 %v3438_v0  ;;  %v2872_v29 = vld [vmem:[#allocation7 + $0xc4] ss:$16 sps:$4 sm:$0xff]   ;;  %v2852_v31 = vld [vmem:[#allocation7 + $0x4c] ss:$16 sps:$4 sm:$0xff]   ;;  %v2877_v32 = vld [vmem:[#allocation7 + $0xc0] ss:$16 sps:$4 sm:$0xff]  }
  0x77   :  { %2783 = vmatprep.subr.bf16.mxu0 %v3439_v16  ;;  %1300 = vmatpush1.bf16.msra.mxu1 %v2847_v14  ;;  %v2878_v33 = vld [vmem:[#allocation7 + $0xe4] ss:$16 sps:$4 sm:$0xff]   ;;  %v2850_v34 = vld [vmem:[#allocation7 + $0x48] ss:$16 sps:$4 sm:$0xff]   ;;  %v2858_v35 = vld [vmem:[#allocation7 + $0x6c] ss:$16 sps:$4 sm:$0xff]  }
  0x78   :  { %1301 = vmatprep.subr.bf16.mxu1 %v2848_v15  ;;  %v2883_v36 = vld [vmem:[#allocation7 + $0xe0] ss:$16 sps:$4 sm:$0xff]   ;;  %v2884_v37 = vld [vmem:[#allocation7 + $0x104] ss:$16 sps:$4 sm:$0xff]   ;;  %v2856_v38 = vld [vmem:[#allocation7 + $0x68] ss:$16 sps:$4 sm:$0xff]  }
  0x79   :  { %v2864_v39 = vld [vmem:[#allocation7 + $0x8c] ss:$16 sps:$4 sm:$0xff]   ;;  %v2889_v40 = vld [vmem:[#allocation7 + $0x100] ss:$16 sps:$4 sm:$0xff]   ;;  %v2890_v41 = vld [vmem:[#allocation7 + $0x124] ss:$16 sps:$4 sm:$0xff]  }
  0x7a   :  { %v2862_v42 = vld [vmem:[#allocation7 + $0x88] ss:$16 sps:$4 sm:$0xff]   ;;  %v2870_v43 = vld [vmem:[#allocation7 + $0xac] ss:$16 sps:$4 sm:$0xff]   ;;  %v2895_v44 = vld [vmem:[#allocation7 + $0x120] ss:$16 sps:$4 sm:$0xff]  }
  0x7b   :  { %1302 = vmatpush1.bf16.msra.mxu1 %v2853_v18  ;;  %v2896_v45 = vld [vmem:[#allocation7 + $0x144] ss:$16 sps:$4 sm:$0xff]   ;;  %v2868_v46 = vld [vmem:[#allocation7 + $0xa8] ss:$16 sps:$4 sm:$0xff]   ;;  %v2876_v47 = vld [vmem:[#allocation7 + $0xcc] ss:$16 sps:$4 sm:$0xff]  }
  0x7c   :  { %1303 = vmatprep.subr.bf16.mxu1 %v2854_v19  ;;  %v2901_v48 = vld [vmem:[#allocation7 + $0x140] ss:$16 sps:$4 sm:$0xff]   ;;  %v2902_v49 = vld [vmem:[#allocation7 + $0x164] ss:$16 sps:$4 sm:$0xff]   ;;  %v2874_v50 = vld [vmem:[#allocation7 + $0xc8] ss:$16 sps:$4 sm:$0xff]  }
  0x7d   :  { %2484 = vmatmul.mubr.msk.bf16.vlgmr.msra.gmra.mrb[4].mxu0 %vm163_vm1, %v119_v10  ;;  %v2882_v51 = vld [vmem:[#allocation7 + $0xec] ss:$16 sps:$4 sm:$0xff]   ;;  %v2907_v52 = vld [vmem:[#allocation7 + $0x160] ss:$16 sps:$4 sm:$0xff]   ;;  %v2880_v53 = vld [vmem:[#allocation7 + $0xe8] ss:$16 sps:$4 sm:$0xff]  }
  0x7e   :  { %2784 = vmatpush3.bf16.msra.mxu0 %v181_v20  ;;  %2785 = vmatprep.mubr.msk.bf16.mxu0 %vm3440_vm2, %v3439_v16  ;;  %v2888_v54 = vld [vmem:[#allocation7 + $0x10c] ss:$16 sps:$4 sm:$0xff]   ;;  %v2886_v55 = vld [vmem:[#allocation7 + $0x108] ss:$16 sps:$4 sm:$0xff]   ;;  %v2908_v62 = vld [vmem:[#allocation7 + $0x184] ss:$16 sps:$4 sm:$0xff]  }
  0x7f   :  { %1420 = vmatprep.subr.bf16.mxu0 %v2840_v21  ;;  %1304 = vmatpush1.bf16.msra.mxu1 %v2859_v22  ;;  %v2894_v56 = vld [vmem:[#allocation7 + $0x12c] ss:$16 sps:$4 sm:$0xff]   ;;  %v2892_v57 = vld [vmem:[#allocation7 + $0x128] ss:$16 sps:$4 sm:$0xff]   ;;  %v2913_v2 = vld [vmem:[#allocation7 + $0x180] ss:$16 sps:$4 sm:$0xff]  }
  0x80   :  { %1305 = vmatprep.subr.bf16.mxu1 %v2860_v23  ;;  %v2900_v58 = vld [vmem:[#allocation7 + $0x14c] ss:$16 sps:$4 sm:$0xff]   ;;  %v2898_v59 = vld [vmem:[#allocation7 + $0x148] ss:$16 sps:$4 sm:$0xff]   ;;  %v2914_v3 = vld [vmem:[#allocation7 + $0x1a4] ss:$16 sps:$4 sm:$0xff]  }
  0x81   :  { %v2906_v60 = vld [vmem:[#allocation7 + $0x16c] ss:$16 sps:$4 sm:$0xff]   ;;  %v2904_v61 = vld [vmem:[#allocation7 + $0x168] ss:$16 sps:$4 sm:$0xff]   ;;  %v2919_v6 = vld [vmem:[#allocation7 + $0x1a0] ss:$16 sps:$4 sm:$0xff]  }
  0x82   :  { %v2912_v63 = vld [vmem:[#allocation7 + $0x18c] ss:$16 sps:$4 sm:$0xff]   ;;  %v2910_v1 = vld [vmem:[#allocation7 + $0x188] ss:$16 sps:$4 sm:$0xff]   ;;  %v2920_v7 = vld [vmem:[#allocation7 + $0x1c4] ss:$16 sps:$4 sm:$0xff]  }
  0x83   :  { %1306 = vmatpush1.bf16.msra.mxu1 %v2865_v24  ;;  %v2918_v4 = vld [vmem:[#allocation7 + $0x1ac] ss:$16 sps:$4 sm:$0xff]   ;;  %v2916_v5 = vld [vmem:[#allocation7 + $0x1a8] ss:$16 sps:$4 sm:$0xff]   ;;  %v2926_v11 = vld [vmem:[#allocation7 + $0x1e4] ss:$16 sps:$4 sm:$0xff]  }
  0x84   :  { %1307 = vmatprep.subr.bf16.mxu1 %v2866_v25  ;;  %v2924_v8 = vld [vmem:[#allocation7 + $0x1cc] ss:$16 sps:$4 sm:$0xff]   ;;  %v2922_v9 = vld [vmem:[#allocation7 + $0x1c8] ss:$16 sps:$4 sm:$0xff]   ;;  %v2931_v14 = vld [vmem:[#allocation7 + $0x1e0] ss:$16 sps:$4 sm:$0xff]  }
  0x85   :  { %2786 = vmatmul.mubr.msk.bf16.vlgmr.msra.gmra.mrb[8].mxu0 %vm163_vm1, %v119_v10  ;;  %v2925_v10 = vld [vmem:[#allocation7 + $0x1c0] ss:$16 sps:$4 sm:$0xff]   ;;  %v2930_v12 = vld [vmem:[#allocation7 + $0x1ec] ss:$16 sps:$4 sm:$0xff]   ;;  %v2928_v13 = vld [vmem:[#allocation7 + $0x1e8] ss:$16 sps:$4 sm:$0xff]  }
  0x86   :  { %1421 = vmatpush1.bf16.msra.mxu0 %v2838_v26  ;;  %v2934_v15 = vld [vmem:[#allocation7 + $0x204] ss:$16 sps:$4 sm:$0xff]   ;;  %v2937_v16 = vld [vmem:[#allocation7 + $0x20c] ss:$16 sps:$4 sm:$0xff]   ;;  %v3611_v18 = vshrl.u32 %v125_v17, 7  ;;  %s2464_s19 = sshll.u32 %s3441_s17, 4  ;;  %s2465_s19 = int_to_ptr.vmem [resolvable:$true] %s2464_s19 }
  0x87   :  { %1422 = vmatprep.subr.bf16.mxu0 %v2846_v27  ;;  %1308 = vmatpush1.bf16.msra.mxu1 %v2871_v28  ;;  %v3619_v20 = vld [vmem:[%s3691_s2] sm:$0x1f]  ;;  %s3394_s21 = scalar_lea.vmem %s2465_s19, 128  ;;  %p3399_p7 = scmp.lt.s32.totalorder %s2465_s19, %s2465_s19 }
  0x88   :  { %1309 = vmatprep.subr.bf16.mxu1 %v2872_v29  ;;  %v3614_v19 = vsub.s32 0, %v3611_v18  ;;  %v3622_v21 = vsub.s32 1, %v3611_v18  ;;  %v139_v29 = vsub.s32 3, %v3611_v18  ;;  %v2983_v17 = vld [vmem:[#allocation7 + $0x308] ss:$16 sps:$4 sm:$0xff]   ;;  %p3395_p6 = scmp.ne.s32.totalorder %s2465_s19, %s3394_s21  ;;  %p3400_p8 = scmp.lt.s32.totalorder %s3394_s21, %s3394_s21 }
  0x8a   :  { %1423 = vmatpush1.bf16.msra.mxu0 %v2844_v30  ;;  %v128_v22 = vrot.slane %v3619_v20, %v3614_v19  ;;  %v132_v23 = vrot.slane %v3619_v20, %v3622_v21  ;;  %p3401_p9 = por %p3400_p8, %p3399_p7 }
  0x8b   :  { %1424 = vmatprep.subr.bf16.mxu0 %v2852_v31  ;;  %1310 = vmatpush1.bf16.msra.mxu1 %v2877_v32  ;;  %v140_v31 = vrot.slane %v3619_v20, %v139_v29 }
  0x8c   :  { %1311 = vmatprep.subr.bf16.mxu1 %v2878_v33  ;;  %p3402_p10 = pnand %p3401_p9, %p3395_p6 }
  0x8e   :  { %1425 = vmatpush1.bf16.msra.mxu0 %v2850_v34 }
  0x8f   :  { %1426 = vmatprep.subr.bf16.mxu0 %v2858_v35  ;;  %1312 = vmatpush1.bf16.msra.mxu1 %v2883_v36 }
  0x90   :  { %1313 = vmatprep.subr.bf16.mxu1 %v2884_v37 }
  0x92   :  { %1427 = vmatpush1.bf16.msra.mxu0 %v2856_v38 }
  0x93   :  { %1428 = vmatprep.subr.bf16.mxu0 %v2864_v39  ;;  %1314 = vmatpush1.bf16.msra.mxu1 %v2889_v40  ;;  %v2932_v40 = vld [vmem:[#allocation7 + $0x200] ss:$16 sps:$4 sm:$0xff]  }
  0x94   :  { %1315 = vmatprep.subr.bf16.mxu1 %v2890_v41  ;;  %v2935_v41 = vld [vmem:[#allocation7 + $0x208] ss:$16 sps:$4 sm:$0xff]  }
  0x96   :  { %1429 = vmatpush1.bf16.msra.mxu0 %v2862_v42 }
  0x97   :  { %1430 = vmatprep.subr.bf16.mxu0 %v2870_v43  ;;  %1316 = vmatpush1.bf16.msra.mxu1 %v2895_v44  ;;  %v2940_v43 = vld [vmem:[#allocation7 + $0x224] ss:$16 sps:$4 sm:$0xff]   ;;  %v2943_v44 = vld [vmem:[#allocation7 + $0x22c] ss:$16 sps:$4 sm:$0xff]  }
  0x98   :  { %1317 = vmatprep.subr.bf16.mxu1 %v2896_v45 }
  0x9a   :  { %1431 = vmatpush1.bf16.msra.mxu0 %v2868_v46 }
  0x9b   :  { %1432 = vmatprep.subr.bf16.mxu0 %v2876_v47  ;;  %1318 = vmatpush1.bf16.msra.mxu1 %v2901_v48  ;;  %v2938_v48 = vld [vmem:[#allocation7 + $0x220] ss:$16 sps:$4 sm:$0xff]  }
  0x9c   :  { %1319 = vmatprep.subr.bf16.mxu1 %v2902_v49  ;;  %v2941_v49 = vld [vmem:[#allocation7 + $0x228] ss:$16 sps:$4 sm:$0xff]  }
  0x9e   :  { %1433 = vmatpush1.bf16.msra.mxu0 %v2874_v50 }
  0x9f   :  { %1434 = vmatprep.subr.bf16.mxu0 %v2882_v51  ;;  %1320 = vmatpush1.bf16.msra.mxu1 %v2907_v52  ;;  %v2946_v51 = vld [vmem:[#allocation7 + $0x244] ss:$16 sps:$4 sm:$0xff]   ;;  %v2949_v52 = vld [vmem:[#allocation7 + $0x24c] ss:$16 sps:$4 sm:$0xff]  }
  0xa0   :  { %1321 = vmatprep.subr.bf16.mxu1 %v2908_v62  ;;  %v2961_v62 = vld [vmem:[#allocation7 + $0x28c] ss:$16 sps:$4 sm:$0xff]  }
  0xa2   :  { %1435 = vmatpush1.bf16.msra.mxu0 %v2880_v53 }
  0xa3   :  { %1436 = vmatprep.subr.bf16.mxu0 %v2888_v54  ;;  %1322 = vmatpush1.bf16.msra.mxu1 %v2913_v2  ;;  %v2944_v54 = vld [vmem:[#allocation7 + $0x240] ss:$16 sps:$4 sm:$0xff]   ;;  %v2964_v2 = vld [vmem:[#allocation7 + $0x2a4] ss:$16 sps:$4 sm:$0xff]  }
  0xa4   :  { %1323 = vmatprep.subr.bf16.mxu1 %v2914_v3  ;;  %v2967_v3 = vld [vmem:[#allocation7 + $0x2ac] ss:$16 sps:$4 sm:$0xff]  }
  0xa6   :  { %1437 = vmatpush1.bf16.msra.mxu0 %v2886_v55  ;;  %v2947_v55 = vld [vmem:[#allocation7 + $0x248] ss:$16 sps:$4 sm:$0xff]  }
  0xa7   :  { %1438 = vmatprep.subr.bf16.mxu0 %v2894_v56  ;;  %1324 = vmatpush1.bf16.msra.mxu1 %v2919_v6  ;;  %v2970_v6 = vld [vmem:[#allocation7 + $0x2c4] ss:$16 sps:$4 sm:$0xff]  }
  0xa8   :  { %1325 = vmatprep.subr.bf16.mxu1 %v2920_v7  ;;  %v2973_v7 = vld [vmem:[#allocation7 + $0x2cc] ss:$16 sps:$4 sm:$0xff]  }
  0xaa   :  { %1439 = vmatpush1.bf16.msra.mxu0 %v2892_v57  ;;  %v2952_v57 = vld [vmem:[#allocation7 + $0x264] ss:$16 sps:$4 sm:$0xff]  }
  0xab   :  { %1440 = vmatprep.subr.bf16.mxu0 %v2900_v58  ;;  %1326 = vmatpush1.bf16.msra.mxu1 %v2925_v10  ;;  %v2955_v58 = vld [vmem:[#allocation7 + $0x26c] ss:$16 sps:$4 sm:$0xff]   ;;  %v2976_v10 = vld [vmem:[#allocation7 + $0x2e4] ss:$16 sps:$4 sm:$0xff]  }
  0xac   :  { %1327 = vmatprep.subr.bf16.mxu1 %v2926_v11  ;;  %v2979_v11 = vld [vmem:[#allocation7 + $0x2ec] ss:$16 sps:$4 sm:$0xff]  }
  0xae   :  { %1441 = vmatpush1.bf16.msra.mxu0 %v2898_v59  ;;  %v2950_v59 = vld [vmem:[#allocation7 + $0x260] ss:$16 sps:$4 sm:$0xff]  }
  0xaf   :  { %1442 = vmatprep.subr.bf16.mxu0 %v2906_v60  ;;  %1328 = vmatpush1.bf16.msra.mxu1 %v2931_v14  ;;  %v2953_v60 = vld [vmem:[#allocation7 + $0x268] ss:$16 sps:$4 sm:$0xff]   ;;  %v2982_v14 = vld [vmem:[#allocation7 + $0x304] ss:$16 sps:$4 sm:$0xff]  }
  0xb0   :  { %1338 = vmatprep.subr.bf16.mxu1 %v2934_v15  ;;  %v2985_v15 = vld [vmem:[#allocation7 + $0x30c] ss:$16 sps:$4 sm:$0xff]  }
  0xb2   :  { %1443 = vmatpush1.bf16.msra.mxu0 %v2904_v61  ;;  %v2958_v61 = vld [vmem:[#allocation7 + $0x284] ss:$16 sps:$4 sm:$0xff]  }
  0xb3   :  { %1444 = vmatprep.subr.bf16.mxu0 %v2912_v63  ;;  %v2956_v63 = vld [vmem:[#allocation7 + $0x280] ss:$16 sps:$4 sm:$0xff]  }
  0xb6   :  { %1445 = vmatpush1.bf16.msra.mxu0 %v2910_v1  ;;  %v2959_v1 = vld [vmem:[#allocation7 + $0x288] ss:$16 sps:$4 sm:$0xff]  }
  0xb7   :  { %1446 = vmatprep.subr.bf16.mxu0 %v2918_v4  ;;  %v2962_v4 = vld [vmem:[#allocation7 + $0x2a0] ss:$16 sps:$4 sm:$0xff]  }
  0xba   :  { %1447 = vmatpush1.bf16.msra.mxu0 %v2916_v5  ;;  %v2965_v5 = vld [vmem:[#allocation7 + $0x2a8] ss:$16 sps:$4 sm:$0xff]  }
  0xbb   :  { %1448 = vmatprep.subr.bf16.mxu0 %v2924_v8  ;;  %v2968_v8 = vld [vmem:[#allocation7 + $0x2c0] ss:$16 sps:$4 sm:$0xff]  }
  0xbe   :  { %1449 = vmatpush1.bf16.msra.mxu0 %v2922_v9  ;;  %v2971_v9 = vld [vmem:[#allocation7 + $0x2c8] ss:$16 sps:$4 sm:$0xff]  }
  0xbf   :  { %1450 = vmatprep.subr.bf16.mxu0 %v2930_v12  ;;  %v2974_v12 = vld [vmem:[#allocation7 + $0x2e0] ss:$16 sps:$4 sm:$0xff]  }
  0xc2   :  { %1451 = vmatpush1.bf16.msra.mxu0 %v2928_v13  ;;  %v2977_v13 = vld [vmem:[#allocation7 + $0x2e8] ss:$16 sps:$4 sm:$0xff]  }
  0xc3   :  { %1461 = vmatprep.subr.bf16.mxu0 %v2937_v16  ;;  %v2980_v16 = vld [vmem:[#allocation7 + $0x300] ss:$16 sps:$4 sm:$0xff]  }
 0x148   :  { %v217_v24 = vpop.f32.mrb[0].mxu0 }
 0x149   :  { %v218_v25 = vadd.f32 %v217_v24, %v128_v22  ;;  %v219_v26 = vpop.f32.mrb[1].mxu0  ;;  %v2988_v22 = vld [vmem:[#allocation7 + $0x324] ss:$16 sps:$4 sm:$0xff]   ;;  %v2986_v24 = vld [vmem:[#allocation7 + $0x320] ss:$16 sps:$4 sm:$0xff]  }
 0x14a   :  { %v220_v27 = vadd.f32 %v219_v26, %v132_v23  ;;  %v221_v28 = vpop.f32.mrb[2].mxu0  ;;  %v2991_v23 = vld [vmem:[#allocation7 + $0x32c] ss:$16 sps:$4 sm:$0xff]   ;;  %v2994_v26 = vld [vmem:[#allocation7 + $0x344] ss:$16 sps:$4 sm:$0xff]  }
 0x14b   :  { %3236 = vtanh.f32 %v218_v25  ;;  %v222_v30 = vpop.f32.mrb[3].mxu0  ;;  %v2989_v25 = vld [vmem:[#allocation7 + $0x328] ss:$16 sps:$4 sm:$0xff]   ;;  %v135_v28 = vsub.s32 2, %v3611_v18 }
 0x14c   :  { %3238 = vtanh.f32 %v220_v27  ;;  %v2997_v27 = vld [vmem:[#allocation7 + $0x34c] ss:$16 sps:$4 sm:$0xff]   ;;  %v2992_v30 = vld [vmem:[#allocation7 + $0x340] ss:$16 sps:$4 sm:$0xff]  }
 0x150   :  { %v3632_v32 = vpop.f32.mrb[4].mxu0 }
 0x151   :  { %v260_v33 = vpop.f32.mrb[5].mxu0 }
 0x152   :  { %v261_v34 = vadd.f32 %v260_v33, %v140_v31  ;;  %v262_v35 = vpop.f32.mrb[6].mxu0  ;;  %v2995_v31 = vld [vmem:[#allocation7 + $0x348] ss:$16 sps:$4 sm:$0xff]   ;;  %v3000_v33 = vld [vmem:[#allocation7 + $0x364] ss:$16 sps:$4 sm:$0xff]  }
 0x153   :  { %v263_v36 = vpop.f32.mrb[7].mxu0  ;;  %v136_v35 = vrot.slane %v3619_v20, %v135_v28 }
 0x154   :  { %3240 = vtanh.f32 %v261_v34  ;;  %v3003_v34 = vld [vmem:[#allocation7 + $0x36c] ss:$16 sps:$4 sm:$0xff]   ;;  %v2998_v36 = vld [vmem:[#allocation7 + $0x360] ss:$16 sps:$4 sm:$0xff]  }
 0x155   :  { %v3237_v37 = vpop.eup %3236 }
 0x156   :  { %v3239_v38 = vpop.eup %3238  ;;  %v310_v42 = vpack.c.bf16 %v3237_v37, %v3237_v37  ;;  %v3001_v37 = vld [vmem:[#allocation7 + $0x368] ss:$16 sps:$4 sm:$0xff]  }
 0x157   :  { %v311_v39 = vpack.c.bf16 %v3239_v38, %v3239_v38  ;;  %v3006_v38 = vld [vmem:[#allocation7 + $0x384] ss:$16 sps:$4 sm:$0xff]  }
 0x158   :  { %v3634_v45 = vpop.f32.mrb[8].mxu0 }
 0x159   :  { %1329 = vmatprep.mubr.bf16.mxu1 %v311_v39  ;;  %1452 = vmatprep.mubr.bf16.mxu0 %v311_v39  ;;  %v2787_v46 = vpop.f32.mrb[9].mxu0  ;;  %v3009_v39 = vld [vmem:[#allocation7 + $0x38c] ss:$16 sps:$4 sm:$0xff]  }
 0x15a   :  { %1330 = vmatmul.mubr.bf16.vlgmr.msra.gmra.mrb[0].mxu1 %v310_v42  ;;  %1453 = vmatmul.mubr.bf16.vlgmr.msra.gmra.mrb[12].mxu0 %v310_v42  ;;  %v302_v47 = vpop.f32.mrb[10].mxu0  ;;  %v3007_v42 = vld [vmem:[#allocation7 + $0x388] ss:$16 sps:$4 sm:$0xff]   ;;  %v3010_v46 = vld [vmem:[#allocation7 + $0x3a0] ss:$16 sps:$4 sm:$0xff]  }
 0x15b   :  { %1339 = vmatpush1.bf16.msra.mxu1 %v2932_v40  ;;  %1462 = vmatpush1.bf16.msra.mxu0 %v2935_v41  ;;  %v2788_v50 = vpop.f32.mrb[11].mxu0  ;;  %v259_v40 = vadd.f32 %v3632_v32, %v136_v35  ;;  %v3004_v41 = vld [vmem:[#allocation7 + $0x380] ss:$16 sps:$4 sm:$0xff]   ;;  %v3013_v47 = vld [vmem:[#allocation7 + $0x3a8] ss:$16 sps:$4 sm:$0xff]  }
 0x15c   :  { %1340 = vmatprep.subr.bf16.mxu1 %v2940_v43  ;;  %1463 = vmatprep.subr.bf16.mxu0 %v2943_v44  ;;  %v3012_v43 = vld [vmem:[#allocation7 + $0x3a4] ss:$16 sps:$4 sm:$0xff]   ;;  %v3015_v44 = vld [vmem:[#allocation7 + $0x3ac] ss:$16 sps:$4 sm:$0xff]   ;;  %v3016_v32 = vld [vmem:[#allocation7 + $0x3c0] ss:$16 sps:$4 sm:$0xff]  }
 0x15d   :  { %3242 = vtanh.f32 %v259_v40  ;;  %v3019_v50 = vld [vmem:[#allocation7 + $0x3c8] ss:$16 sps:$4 sm:$0xff]  }
 0x15e   :  { %v3241_v53 = vpop.eup %3240  ;;  %v3082_v40 = vld [vmem:[#allocation8 + $0x20] ss:$8 sps:$4 sm:$0xff]  }
 0x15f   :  { %1341 = vmatpush1.bf16.msra.mxu1 %v2938_v48  ;;  %1464 = vmatpush1.bf16.msra.mxu0 %v2941_v49  ;;  %v313_v56 = vpack.c.bf16 %v3241_v53, %v3241_v53  ;;  %v3018_v48 = vld [vmem:[#allocation7 + $0x3c4] ss:$16 sps:$4 sm:$0xff]   ;;  %v3021_v49 = vld [vmem:[#allocation7 + $0x3cc] ss:$16 sps:$4 sm:$0xff]  }
 0x160   :  { %1342 = vmatprep.subr.bf16.mxu1 %v2946_v51  ;;  %1465 = vmatprep.subr.bf16.mxu0 %v2949_v52  ;;  %v3024_v51 = vld [vmem:[#allocation7 + $0x3e4] ss:$16 sps:$4 sm:$0xff]   ;;  %v3027_v52 = vld [vmem:[#allocation7 + $0x3ec] ss:$16 sps:$4 sm:$0xff]  }
 0x161   :  { %1370 = vmatprep.mubr.bf16.mxu1 %v313_v56  ;;  %1493 = vmatprep.mubr.bf16.mxu0 %v313_v56  ;;  %v3030_v56 = vld [vmem:[#allocation7 + $0x404] ss:$16 sps:$4 sm:$0xff]  }
 0x163   :  { %1343 = vmatpush1.bf16.msra.mxu1 %v2944_v54  ;;  %1466 = vmatpush1.bf16.msra.mxu0 %v2947_v55  ;;  %v3022_v54 = vld [vmem:[#allocation7 + $0x3e0] ss:$16 sps:$4 sm:$0xff]   ;;  %v3025_v55 = vld [vmem:[#allocation7 + $0x3e8] ss:$16 sps:$4 sm:$0xff]  }
 0x164   :  { %1344 = vmatprep.subr.bf16.mxu1 %v2952_v57  ;;  %1467 = vmatprep.subr.bf16.mxu0 %v2955_v58  ;;  %v3033_v57 = vld [vmem:[#allocation7 + $0x40c] ss:$16 sps:$4 sm:$0xff]  }
 0x167   :  { %1345 = vmatpush1.bf16.msra.mxu1 %v2950_v59  ;;  %1468 = vmatpush1.bf16.msra.mxu0 %v2953_v60  ;;  %v3243_v53 = vpop.eup %3242  ;;  %v3028_v59 = vld [vmem:[#allocation7 + $0x400] ss:$16 sps:$4 sm:$0xff]   ;;  %v3031_v60 = vld [vmem:[#allocation7 + $0x408] ss:$16 sps:$4 sm:$0xff]  }
 0x168   :  { %1346 = vmatprep.subr.bf16.mxu1 %v2958_v61  ;;  %1469 = vmatprep.subr.bf16.mxu0 %v2961_v62  ;;  %v312_v58 = vpack.c.bf16 %v3243_v53, %v3243_v53  ;;  %v3036_v61 = vld [vmem:[#allocation7 + $0x424] ss:$16 sps:$4 sm:$0xff]   ;;  %v3039_v62 = vld [vmem:[#allocation7 + $0x42c] ss:$16 sps:$4 sm:$0xff]  }
 0x169   :  { %v3105_v53 = vld [vmem:[#allocation8 + $0x94] ss:$8 sps:$4 sm:$0xff]  }
 0x16b   :  { %1347 = vmatpush1.bf16.msra.mxu1 %v2956_v63  ;;  %1470 = vmatpush1.bf16.msra.mxu0 %v2959_v1  ;;  %v3034_v63 = vld [vmem:[#allocation7 + $0x420] ss:$16 sps:$4 sm:$0xff]   ;;  %v3037_v1 = vld [vmem:[#allocation7 + $0x428] ss:$16 sps:$4 sm:$0xff]  }
 0x16c   :  { %1348 = vmatprep.subr.bf16.mxu1 %v2964_v2  ;;  %1471 = vmatprep.subr.bf16.mxu0 %v2967_v3  ;;  %v3042_v2 = vld [vmem:[#allocation7 + $0x444] ss:$16 sps:$4 sm:$0xff]   ;;  %v3045_v3 = vld [vmem:[#allocation7 + $0x44c] ss:$16 sps:$4 sm:$0xff]  }
 0x16f   :  { %1349 = vmatpush1.bf16.msra.mxu1 %v2962_v4  ;;  %1472 = vmatpush1.bf16.msra.mxu0 %v2965_v5  ;;  %v143_v4 = vsub.s32 4, %v3611_v18  ;;  %v3040_v5 = vld [vmem:[#allocation7 + $0x440] ss:$16 sps:$4 sm:$0xff]   ;;  %v3171_v18 = vld [vmem:[#allocation8 + $0x1f4] ss:$8 sps:$4 sm:$0xff]  }
 0x170   :  { %1350 = vmatprep.subr.bf16.mxu1 %v2970_v6  ;;  %1473 = vmatprep.subr.bf16.mxu0 %v2973_v7  ;;  %v3043_v6 = vld [vmem:[#allocation7 + $0x448] ss:$16 sps:$4 sm:$0xff]   ;;  %v3048_v7 = vld [vmem:[#allocation7 + $0x464] ss:$16 sps:$4 sm:$0xff]  }
 0x173   :  { %1351 = vmatpush1.bf16.msra.mxu1 %v2968_v8  ;;  %1474 = vmatpush1.bf16.msra.mxu0 %v2971_v9  ;;  %v3051_v8 = vld [vmem:[#allocation7 + $0x46c] ss:$16 sps:$4 sm:$0xff]   ;;  %v144_v9 = vrot.slane %v3619_v20, %v143_v4  ;;  %v3058_v20 = vld [vmem:[#allocation7 + $0x4a0] ss:$16 sps:$4 sm:$0xff]  }
 0x174   :  { %1352 = vmatprep.subr.bf16.mxu1 %v2976_v10  ;;  %1475 = vmatprep.subr.bf16.mxu0 %v2979_v11  ;;  %v3046_v10 = vld [vmem:[#allocation7 + $0x460] ss:$16 sps:$4 sm:$0xff]   ;;  %v3049_v11 = vld [vmem:[#allocation7 + $0x468] ss:$16 sps:$4 sm:$0xff]   ;;  %v3126_v4 = vld [vmem:[#allocation8 + $0x104] ss:$8 sps:$4 sm:$0xff]  }
 0x177   :  { %1353 = vmatpush1.bf16.msra.mxu1 %v2974_v12  ;;  %1476 = vmatpush1.bf16.msra.mxu0 %v2977_v13  ;;  %v3054_v12 = vld [vmem:[#allocation7 + $0x484] ss:$16 sps:$4 sm:$0xff]   ;;  %v3057_v13 = vld [vmem:[#allocation7 + $0x48c] ss:$16 sps:$4 sm:$0xff]  }
 0x178   :  { %1354 = vmatprep.subr.bf16.mxu1 %v2982_v14  ;;  %1477 = vmatprep.subr.bf16.mxu0 %v2985_v15  ;;  %v3052_v14 = vld [vmem:[#allocation7 + $0x480] ss:$16 sps:$4 sm:$0xff]   ;;  %v3055_v15 = vld [vmem:[#allocation7 + $0x488] ss:$16 sps:$4 sm:$0xff]  }
 0x17b   :  { %1355 = vmatpush1.bf16.msra.mxu1 %v2980_v16  ;;  %1478 = vmatpush1.bf16.msra.mxu0 %v2983_v17  ;;  %v3060_v16 = vld [vmem:[#allocation7 + $0x4a4] ss:$16 sps:$4 sm:$0xff]   ;;  %v3063_v17 = vld [vmem:[#allocation7 + $0x4ac] ss:$16 sps:$4 sm:$0xff]  }
 0x17c   :  { %1356 = vmatprep.subr.bf16.mxu1 %v2988_v22  ;;  %1479 = vmatprep.subr.bf16.mxu0 %v2991_v23  ;;  %v3061_v22 = vld [vmem:[#allocation7 + $0x4a8] ss:$16 sps:$4 sm:$0xff]   ;;  %v3066_v23 = vld [vmem:[#allocation7 + $0x4c4] ss:$16 sps:$4 sm:$0xff]  }
 0x17f   :  { %1357 = vmatpush1.bf16.msra.mxu1 %v2986_v24  ;;  %1480 = vmatpush1.bf16.msra.mxu0 %v2989_v25  ;;  %v3069_v24 = vld [vmem:[#allocation7 + $0x4cc] ss:$16 sps:$4 sm:$0xff]   ;;  %v3067_v25 = vld [vmem:[#allocation7 + $0x4c8] ss:$16 sps:$4 sm:$0xff]  }
 0x180   :  { %1358 = vmatprep.subr.bf16.mxu1 %v2994_v26  ;;  %1481 = vmatprep.subr.bf16.mxu0 %v2997_v27  ;;  %v3072_v26 = vld [vmem:[#allocation7 + $0x4e4] ss:$16 sps:$4 sm:$0xff]   ;;  %v3075_v27 = vld [vmem:[#allocation7 + $0x4ec] ss:$16 sps:$4 sm:$0xff]  }
 0x183   :  { %1359 = vmatpush1.bf16.msra.mxu1 %v2992_v30  ;;  %1482 = vmatpush1.bf16.msra.mxu0 %v2995_v31  ;;  %v3070_v31 = vld [vmem:[#allocation7 + $0x4e0] ss:$16 sps:$4 sm:$0xff]  }
 0x184   :  { %1360 = vmatprep.subr.bf16.mxu1 %v3000_v33  ;;  %1483 = vmatprep.subr.bf16.mxu0 %v3003_v34  ;;  %v3073_v33 = vld [vmem:[#allocation7 + $0x4e8] ss:$16 sps:$4 sm:$0xff]   ;;  %v3078_v34 = vld [vmem:[#allocation8 + $0x4] ss:$8 sps:$4 sm:$0xff]  }
 0x187   :  { %1361 = vmatpush1.bf16.msra.mxu1 %v2998_v36  ;;  %1484 = vmatpush1.bf16.msra.mxu0 %v3001_v37  ;;  %v3076_v36 = vld [vmem:[#allocation8] ss:$8 sps:$4 sm:$0xff]   ;;  %v3081_v37 = vld [vmem:[#allocation8 + $0x14] ss:$8 sps:$4 sm:$0xff]  }
 0x188   :  { %1362 = vmatprep.subr.bf16.mxu1 %v3006_v38  ;;  %1485 = vmatprep.subr.bf16.mxu0 %v3009_v39  ;;  %v3079_v38 = vld [vmem:[#allocation8 + $0x10] ss:$8 sps:$4 sm:$0xff]   ;;  %v3084_v39 = vld [vmem:[#allocation8 + $0x24] ss:$8 sps:$4 sm:$0xff]  }
 0x18b   :  { %1363 = vmatpush1.bf16.msra.mxu1 %v3004_v41  ;;  %1486 = vmatpush1.bf16.msra.mxu0 %v3007_v42  ;;  %v3087_v41 = vld [vmem:[#allocation8 + $0x34] ss:$8 sps:$4 sm:$0xff]   ;;  %v3085_v42 = vld [vmem:[#allocation8 + $0x30] ss:$8 sps:$4 sm:$0xff]  }
 0x18c   :  { %1364 = vmatprep.subr.bf16.mxu1 %v3012_v43  ;;  %1487 = vmatprep.subr.bf16.mxu0 %v3015_v44  ;;  %v3090_v43 = vld [vmem:[#allocation8 + $0x44] ss:$8 sps:$4 sm:$0xff]   ;;  %v3088_v44 = vld [vmem:[#allocation8 + $0x40] ss:$8 sps:$4 sm:$0xff]  }
 0x18f   :  { %1365 = vmatpush1.bf16.msra.mxu1 %v3010_v46  ;;  %1488 = vmatpush1.bf16.msra.mxu0 %v3013_v47  ;;  %v3093_v46 = vld [vmem:[#allocation8 + $0x54] ss:$8 sps:$4 sm:$0xff]   ;;  %v3091_v47 = vld [vmem:[#allocation8 + $0x50] ss:$8 sps:$4 sm:$0xff]  }
 0x190   :  { %1366 = vmatprep.subr.bf16.mxu1 %v3018_v48  ;;  %1489 = vmatprep.subr.bf16.mxu0 %v3021_v49  ;;  %v3096_v48 = vld [vmem:[#allocation8 + $0x64] ss:$8 sps:$4 sm:$0xff]   ;;  %v3094_v49 = vld [vmem:[#allocation8 + $0x60] ss:$8 sps:$4 sm:$0xff]  }
 0x193   :  { %1367 = vmatpush1.bf16.msra.mxu1 %v3016_v32  ;;  %1490 = vmatpush1.bf16.msra.mxu0 %v3019_v50  ;;  %v3099_v32 = vld [vmem:[#allocation8 + $0x74] ss:$8 sps:$4 sm:$0xff]   ;;  %v3097_v50 = vld [vmem:[#allocation8 + $0x70] ss:$8 sps:$4 sm:$0xff]  }
 0x194   :  { %1368 = vmatprep.subr.bf16.mxu1 %v3024_v51  ;;  %1491 = vmatprep.subr.bf16.mxu0 %v3027_v52  ;;  %v3102_v51 = vld [vmem:[#allocation8 + $0x84] ss:$8 sps:$4 sm:$0xff]   ;;  %v3100_v52 = vld [vmem:[#allocation8 + $0x80] ss:$8 sps:$4 sm:$0xff]  }
 0x197   :  { %1369 = vmatpush1.bf16.msra.mxu1 %v3022_v54  ;;  %1492 = vmatpush1.bf16.msra.mxu0 %v3025_v55  ;;  %v3103_v54 = vld [vmem:[#allocation8 + $0x90] ss:$8 sps:$4 sm:$0xff]   ;;  %v3108_v55 = vld [vmem:[#allocation8 + $0xa4] ss:$8 sps:$4 sm:$0xff]  }
 0x198   :  { %1379 = vmatprep.subr.bf16.mxu1 %v3030_v56  ;;  %1502 = vmatprep.subr.bf16.mxu0 %v3033_v57  ;;  %v3106_v56 = vld [vmem:[#allocation8 + $0xa0] ss:$8 sps:$4 sm:$0xff]   ;;  %v3111_v57 = vld [vmem:[#allocation8 + $0xb4] ss:$8 sps:$4 sm:$0xff]  }
 0x19a   :  { %1371 = vmatmul.mubr.bf16.vlgmr.msra.gmra.mrb[0].mxu1 %v312_v58  ;;  %1494 = vmatmul.mubr.bf16.vlgmr.msra.gmra.mrb[12].mxu0 %v312_v58  ;;  %v3109_v58 = vld [vmem:[#allocation8 + $0xb0] ss:$8 sps:$4 sm:$0xff]  }
 0x19b   :  { %1380 = vmatpush1.bf16.msra.mxu1 %v3028_v59  ;;  %1503 = vmatpush1.bf16.msra.mxu0 %v3031_v60  ;;  %v3114_v59 = vld [vmem:[#allocation8 + $0xc4] ss:$8 sps:$4 sm:$0xff]   ;;  %v3112_v60 = vld [vmem:[#allocation8 + $0xc0] ss:$8 sps:$4 sm:$0xff]  }
 0x19c   :  { %1381 = vmatprep.subr.bf16.mxu1 %v3036_v61  ;;  %1504 = vmatprep.subr.bf16.mxu0 %v3039_v62  ;;  %v3117_v61 = vld [vmem:[#allocation8 + $0xd4] ss:$8 sps:$4 sm:$0xff]   ;;  %v3115_v62 = vld [vmem:[#allocation8 + $0xd0] ss:$8 sps:$4 sm:$0xff]  }
 0x19d   :  { %1411 = vmatprep.mubr.bf16.mxu1 %v3438_v0  ;;  %1534 = vmatprep.mubr.bf16.mxu0 %v3438_v0  ;;  %v300_v0 = vadd.f32 %v3634_v45, %v144_v9  ;;  %v3064_v45 = vld [vmem:[#allocation7 + $0x4c0] ss:$16 sps:$4 sm:$0xff]   ;;  %v3180_v9 = vld [vmem:[#allocation10 + $0x24] ss:$8 sps:$4 sm:$0xff]  }
 0x19f   :  { %1382 = vmatpush1.bf16.msra.mxu1 %v3034_v63  ;;  %1505 = vmatpush1.bf16.msra.mxu0 %v3037_v1  ;;  %3244 = vtanh.f32 %v300_v0  ;;  %v3120_v63 = vld [vmem:[#allocation8 + $0xe4] ss:$8 sps:$4 sm:$0xff]   ;;  %v3118_v1 = vld [vmem:[#allocation8 + $0xe0] ss:$8 sps:$4 sm:$0xff]  }
 0x1a0   :  { %1383 = vmatprep.subr.bf16.mxu1 %v3042_v2  ;;  %1506 = vmatprep.subr.bf16.mxu0 %v3045_v3  ;;  %v3123_v2 = vld [vmem:[#allocation8 + $0xf4] ss:$8 sps:$4 sm:$0xff]   ;;  %v3121_v3 = vld [vmem:[#allocation8 + $0xf0] ss:$8 sps:$4 sm:$0xff]   ;;  %v3184_v0 = vld [vmem:[#allocation10 + $0x40] ss:$8 sps:$4 sm:$0xff]  }
 0x1a3   :  { %1384 = vmatpush1.bf16.msra.mxu1 %v3040_v5  ;;  %1507 = vmatpush1.bf16.msra.mxu0 %v3043_v6  ;;  %v3172_v5 = vld [vmem:[#allocation10] ss:$8 sps:$4 sm:$0xff]   ;;  %v3174_v6 = vld [vmem:[#allocation10 + $0x4] ss:$8 sps:$4 sm:$0xff]  }
 0x1a4   :  { %1385 = vmatprep.subr.bf16.mxu1 %v3048_v7  ;;  %1508 = vmatprep.subr.bf16.mxu0 %v3051_v8  ;;  %v3177_v7 = vld [vmem:[#allocation10 + $0x14] ss:$8 sps:$4 sm:$0xff]   ;;  %v3175_v8 = vld [vmem:[#allocation10 + $0x10] ss:$8 sps:$4 sm:$0xff]  }
 0x1a7   :  { %1386 = vmatpush1.bf16.msra.mxu1 %v3046_v10  ;;  %1509 = vmatpush1.bf16.msra.mxu0 %v3049_v11  ;;  %v3178_v10 = vld [vmem:[#allocation10 + $0x20] ss:$8 sps:$4 sm:$0xff]   ;;  %v3183_v11 = vld [vmem:[#allocation10 + $0x34] ss:$8 sps:$4 sm:$0xff]  }
 0x1a8   :  { %1387 = vmatprep.subr.bf16.mxu1 %v3054_v12  ;;  %1510 = vmatprep.subr.bf16.mxu0 %v3057_v13  ;;  %v3181_v12 = vld [vmem:[#allocation10 + $0x30] ss:$8 sps:$4 sm:$0xff]   ;;  %v3186_v13 = vld [vmem:[#allocation10 + $0x44] ss:$8 sps:$4 sm:$0xff]  }
 0x1a9   :  { %v3245_v30 = vpop.eup %3244 }
 0x1aa   :  { %v314_v35 = vpack.c.bf16 %v3245_v30, %v3245_v30  ;;  %v3202_v30 = vld [vmem:[#allocation10 + $0xa0] ss:$8 sps:$4 sm:$0xff]  }
 0x1ab   :  { %1388 = vmatpush1.bf16.msra.mxu1 %v3052_v14  ;;  %1511 = vmatpush1.bf16.msra.mxu0 %v3055_v15  ;;  %v3189_v14 = vld [vmem:[#allocation10 + $0x54] ss:$8 sps:$4 sm:$0xff]   ;;  %v3187_v15 = vld [vmem:[#allocation10 + $0x50] ss:$8 sps:$4 sm:$0xff]  }
 0x1ac   :  { %1389 = vmatprep.subr.bf16.mxu1 %v3060_v16  ;;  %1512 = vmatprep.subr.bf16.mxu0 %v3063_v17  ;;  %v3192_v16 = vld [vmem:[#allocation10 + $0x64] ss:$8 sps:$4 sm:$0xff]   ;;  %v3190_v17 = vld [vmem:[#allocation10 + $0x60] ss:$8 sps:$4 sm:$0xff]  }
 0x1af   :  { %1390 = vmatpush1.bf16.msra.mxu1 %v3058_v20  ;;  %1513 = vmatpush1.bf16.msra.mxu0 %v3061_v22  ;;  %v3195_v20 = vld [vmem:[#allocation10 + $0x74] ss:$8 sps:$4 sm:$0xff]   ;;  %v3193_v22 = vld [vmem:[#allocation10 + $0x70] ss:$8 sps:$4 sm:$0xff]  }
 0x1b0   :  { %1391 = vmatprep.subr.bf16.mxu1 %v3066_v23  ;;  %1514 = vmatprep.subr.bf16.mxu0 %v3069_v24  ;;  %v3198_v23 = vld [vmem:[#allocation10 + $0x84] ss:$8 sps:$4 sm:$0xff]   ;;  %v3196_v24 = vld [vmem:[#allocation10 + $0x80] ss:$8 sps:$4 sm:$0xff]  }
 0x1b3   :  { %1392 = vmatpush1.bf16.msra.mxu1 %v3064_v45  ;;  %1515 = vmatpush1.bf16.msra.mxu0 %v3067_v25  ;;  %v3201_v45 = vld [vmem:[#allocation10 + $0x94] ss:$8 sps:$4 sm:$0xff]   ;;  %v3199_v25 = vld [vmem:[#allocation10 + $0x90] ss:$8 sps:$4 sm:$0xff]  }
 0x1b4   :  { %1393 = vmatprep.subr.bf16.mxu1 %v3072_v26  ;;  %1516 = vmatprep.subr.bf16.mxu0 %v3075_v27  ;;  %v3204_v26 = vld [vmem:[#allocation10 + $0xa4] ss:$8 sps:$4 sm:$0xff]  }
 0x1b5   :  { %v3649_v27 = vld [vmem:[%s3693_s4] sm:$0xf] }
 0x1b7   :  { %1394 = vmatpush1.bf16.msra.mxu1 %v3070_v31  ;;  %1517 = vmatpush1.bf16.msra.mxu0 %v3073_v33  ;;  %v3207_v31 = vld [vmem:[#allocation10 + $0xb4] ss:$8 sps:$4 sm:$0xff]   ;;  %v480_v33 = vrot.slane %v3649_v27, %v3614_v19 }
 0x1b8   :  { %1947 = vmatprep.subr.bf16.mxu1 %v3078_v34  ;;  %2237 = vmatprep.subr.bf16.mxu0 %v3174_v6  ;;  %v484_v34 = vrot.slane %v3649_v27, %v3622_v21  ;;  %v3148_v6 = vld [vmem:[#allocation8 + $0x180] ss:$8 sps:$4 sm:$0xff]  }
 0x1ba   :  { %1412 = vmatmul.mubr.bf16.vlgmr.msra.gmra.mrb[0].mxu1 %v314_v35  ;;  %1535 = vmatmul.mubr.bf16.vlgmr.msra.gmra.mrb[12].mxu0 %v314_v35  ;;  %v492_v35 = vrot.slane %v3649_v27, %v139_v29 }
 0x1bb   :  { %1948 = vmatpush1.bf16.msra.mxu1 %v3076_v36  ;;  %2238 = vmatpush1.bf16.msra.mxu0 %v3172_v5  ;;  %v3205_v36 = vld [vmem:[#allocation10 + $0xb0] ss:$8 sps:$4 sm:$0xff]   ;;  %v3150_v5 = vld [vmem:[#allocation8 + $0x184] ss:$8 sps:$4 sm:$0xff]  }
 0x1bc   :  { %1949 = vmatprep.subr.bf16.mxu1 %v3081_v37  ;;  %2239 = vmatprep.subr.bf16.mxu0 %v3177_v7  ;;  %v3153_v7 = vld [vmem:[#allocation8 + $0x194] ss:$8 sps:$4 sm:$0xff]  }
 0x1bf   :  { %1950 = vmatpush1.bf16.msra.mxu1 %v3079_v38  ;;  %2240 = vmatpush1.bf16.msra.mxu0 %v3175_v8  ;;  %v3151_v8 = vld [vmem:[#allocation8 + $0x190] ss:$8 sps:$4 sm:$0xff]  }
 0x1c0   :  { %1951 = vmatprep.subr.bf16.mxu1 %v3084_v39  ;;  %2241 = vmatprep.subr.bf16.mxu0 %v3180_v9  ;;  %v3156_v9 = vld [vmem:[#allocation8 + $0x1a4] ss:$8 sps:$4 sm:$0xff]  }
 0x1c3   :  { %1952 = vmatpush1.bf16.msra.mxu1 %v3082_v40  ;;  %2242 = vmatpush1.bf16.msra.mxu0 %v3178_v10  ;;  %v3154_v10 = vld [vmem:[#allocation8 + $0x1a0] ss:$8 sps:$4 sm:$0xff]  }
 0x1c4   :  { %1953 = vmatprep.subr.bf16.mxu1 %v3087_v41  ;;  %2243 = vmatprep.subr.bf16.mxu0 %v3183_v11  ;;  %v3159_v11 = vld [vmem:[#allocation8 + $0x1b4] ss:$8 sps:$4 sm:$0xff]  }
 0x1c7   :  { %1954 = vmatpush1.bf16.msra.mxu1 %v3085_v42  ;;  %2244 = vmatpush1.bf16.msra.mxu0 %v3181_v12  ;;  %v488_v12 = vrot.slane %v3649_v27, %v135_v28  ;;  %v3169_v28 = vld [vmem:[#allocation8 + $0x1f0] ss:$8 sps:$4 sm:$0xff]  }
 0x1c8   :  { %1955 = vmatprep.subr.bf16.mxu1 %v3090_v43  ;;  %2245 = vmatprep.subr.bf16.mxu0 %v3186_v13  ;;  %v3157_v13 = vld [vmem:[#allocation8 + $0x1b0] ss:$8 sps:$4 sm:$0xff]  }
 0x1c9   :  { %v3211_v27 = vld [vmem:[#allocation10 + $0xd0] ss:$8 sps:$4 sm:$0xff]  }
 0x1cb   :  { %1956 = vmatpush1.bf16.msra.mxu1 %v3088_v44  ;;  %2246 = vmatpush1.bf16.msra.mxu0 %v3184_v0  ;;  %v3162_v0 = vld [vmem:[#allocation8 + $0x1c4] ss:$8 sps:$4 sm:$0xff]  }
 0x1cc   :  { %1957 = vmatprep.subr.bf16.mxu1 %v3093_v46  ;;  %2247 = vmatprep.subr.bf16.mxu0 %v3189_v14 }
 0x1cf   :  { %1958 = vmatpush1.bf16.msra.mxu1 %v3091_v47  ;;  %2248 = vmatpush1.bf16.msra.mxu0 %v3187_v15  ;;  %v3160_v15 = vld [vmem:[#allocation8 + $0x1c0] ss:$8 sps:$4 sm:$0xff]  }
 0x1d0   :  { %1959 = vmatprep.subr.bf16.mxu1 %v3096_v48  ;;  %2249 = vmatprep.subr.bf16.mxu0 %v3192_v16  ;;  %v3165_v16 = vld [vmem:[#allocation8 + $0x1d4] ss:$8 sps:$4 sm:$0xff]  }
 0x1d3   :  { %1960 = vmatpush1.bf16.msra.mxu1 %v3094_v49  ;;  %2250 = vmatpush1.bf16.msra.mxu0 %v3190_v17  ;;  %v3163_v17 = vld [vmem:[#allocation8 + $0x1d0] ss:$8 sps:$4 sm:$0xff]  }
 0x1d4   :  { %1961 = vmatprep.subr.bf16.mxu1 %v3099_v32  ;;  %2251 = vmatprep.subr.bf16.mxu0 %v3195_v20  ;;  %v3168_v20 = vld [vmem:[#allocation8 + $0x1e4] ss:$8 sps:$4 sm:$0xff]  }
 0x1d7   :  { %1962 = vmatpush1.bf16.msra.mxu1 %v3097_v50  ;;  %2252 = vmatpush1.bf16.msra.mxu0 %v3193_v22  ;;  %v3166_v22 = vld [vmem:[#allocation8 + $0x1e0] ss:$8 sps:$4 sm:$0xff]  }
 0x1d8   :  { %1963 = vmatprep.subr.bf16.mxu1 %v3102_v51  ;;  %2253 = vmatprep.subr.bf16.mxu0 %v3198_v23  ;;  %v3124_v51 = vld [vmem:[#allocation8 + $0x100] ss:$8 sps:$4 sm:$0xff]  }
 0x1db   :  { %1964 = vmatpush1.bf16.msra.mxu1 %v3100_v52  ;;  %2254 = vmatpush1.bf16.msra.mxu0 %v3196_v24 }
 0x1dc   :  { %1965 = vmatprep.subr.bf16.mxu1 %v3105_v53  ;;  %2255 = vmatprep.subr.bf16.mxu0 %v3201_v45  ;;  %v3129_v53 = vld [vmem:[#allocation8 + $0x114] ss:$8 sps:$4 sm:$0xff]   ;;  %v3210_v45 = vld [vmem:[#allocation10 + $0xc4] ss:$8 sps:$4 sm:$0xff]  }
 0x1df   :  { %1966 = vmatpush1.bf16.msra.mxu1 %v3103_v54  ;;  %2256 = vmatpush1.bf16.msra.mxu0 %v3199_v25  ;;  %v3208_v25 = vld [vmem:[#allocation10 + $0xc0] ss:$8 sps:$4 sm:$0xff]  }
 0x1e0   :  { %1967 = vmatprep.subr.bf16.mxu1 %v3108_v55  ;;  %2257 = vmatprep.subr.bf16.mxu0 %v3204_v26  ;;  %v3127_v55 = vld [vmem:[#allocation8 + $0x110] ss:$8 sps:$4 sm:$0xff]   ;;  %v3213_v26 = vld [vmem:[#allocation10 + $0xd4] ss:$8 sps:$4 sm:$0xff]  }
 0x1e3   :  { %1968 = vmatpush1.bf16.msra.mxu1 %v3106_v56  ;;  %2258 = vmatpush1.bf16.msra.mxu0 %v3202_v30  ;;  %v3132_v56 = vld [vmem:[#allocation8 + $0x124] ss:$8 sps:$4 sm:$0xff]  }
 0x1e4   :  { %1969 = vmatprep.subr.bf16.mxu1 %v3111_v57  ;;  %2259 = vmatprep.subr.bf16.mxu0 %v3207_v31  ;;  %v3130_v57 = vld [vmem:[#allocation8 + $0x120] ss:$8 sps:$4 sm:$0xff]   ;;  %v3216_v30 = vld [vmem:[#allocation10 + $0xe4] ss:$8 sps:$4 sm:$0xff]  }
 0x1e5   :  { %v3214_v31 = vld [vmem:[#allocation10 + $0xe0] ss:$8 sps:$4 sm:$0xff]  }
 0x1e7   :  { %1970 = vmatpush1.bf16.msra.mxu1 %v3109_v58  ;;  %2260 = vmatpush1.bf16.msra.mxu0 %v3205_v36  ;;  %v3135_v58 = vld [vmem:[#allocation8 + $0x134] ss:$8 sps:$4 sm:$0xff]   ;;  %v1615_v36 = vld [vmem:[%s3695_s6] sm:$0x3] }
 0x1e8   :  { %1971 = vmatprep.subr.bf16.mxu1 %v3114_v59  ;;  %v3133_v59 = vld [vmem:[#allocation8 + $0x130] ss:$8 sps:$4 sm:$0xff]   ;;  %2261 = vmatprep.subr.bf16.mxu0 %v3210_v45 }
 0x1eb   :  { %1972 = vmatpush1.bf16.msra.mxu1 %v3112_v60  ;;  %v3138_v60 = vld [vmem:[#allocation8 + $0x144] ss:$8 sps:$4 sm:$0xff]   ;;  %2262 = vmatpush1.bf16.msra.mxu0 %v3208_v25 }
 0x1ec   :  { %1973 = vmatprep.subr.bf16.mxu1 %v3117_v61  ;;  %v3136_v61 = vld [vmem:[#allocation8 + $0x140] ss:$8 sps:$4 sm:$0xff]   ;;  %2263 = vmatprep.subr.bf16.mxu0 %v3213_v26 }
 0x1ef   :  { %1974 = vmatpush1.bf16.msra.mxu1 %v3115_v62  ;;  %v3141_v62 = vld [vmem:[#allocation8 + $0x154] ss:$8 sps:$4 sm:$0xff]   ;;  %2264 = vmatpush1.bf16.msra.mxu0 %v3211_v27 }
 0x1f0   :  { %1975 = vmatprep.subr.bf16.mxu1 %v3120_v63  ;;  %v3139_v63 = vld [vmem:[#allocation8 + $0x150] ss:$8 sps:$4 sm:$0xff]   ;;  %2265 = vmatprep.subr.bf16.mxu0 %v3216_v30 }
 0x1f3   :  { %1976 = vmatpush1.bf16.msra.mxu1 %v3118_v1  ;;  %v3144_v1 = vld [vmem:[#allocation8 + $0x164] ss:$8 sps:$4 sm:$0xff]   ;;  %2266 = vmatpush1.bf16.msra.mxu0 %v3214_v31 }
 0x1f4   :  { %1977 = vmatprep.subr.bf16.mxu1 %v3123_v2  ;;  %v3142_v2 = vld [vmem:[#allocation8 + $0x160] ss:$8 sps:$4 sm:$0xff]  }
 0x1f7   :  { %1978 = vmatpush1.bf16.msra.mxu1 %v3121_v3  ;;  %v3147_v3 = vld [vmem:[#allocation8 + $0x174] ss:$8 sps:$4 sm:$0xff]  }
 0x1f8   :  { %1988 = vmatprep.subr.bf16.mxu1 %v3126_v4  ;;  %v3145_v4 = vld [vmem:[#allocation8 + $0x170] ss:$8 sps:$4 sm:$0xff]  }
 0x28d   :  { %v1413_v37 = vpop.f32.mrb[0].mxu1  ;;  %v3658_v38 = vpop.f32.mrb[12].mxu0 }
 0x28e   :  { %v2789_v39 = vadd.f32 %v1413_v37, %v480_v33  ;;  %v1415_v40 = vpop.f32.mrb[1].mxu1  ;;  %v1538_v41 = vpop.f32.mrb[13].mxu0  ;;  %v2791_v14 = vadd.f32 %v3658_v38, %v488_v12  ;;  %v3219_v33 = vld [vmem:[#allocation10 + $0xf4] ss:$8 sps:$4 sm:$0xff]   ;;  %v1620_v37 = vrot.slane %v1615_v36, %v3614_v19  ;;  %v1624_v38 = vrot.slane %v1615_v36, %v3622_v21 }
 0x28f   :  { %v2790_v42 = vadd.f32 %v1415_v40, %v484_v34  ;;  %v2792_v43 = vadd.f32 %v1538_v41, %v492_v35  ;;  %v1417_v44 = vpop.f32.mrb[2].mxu1  ;;  %v1540_v46 = vpop.f32.mrb[14].mxu0  ;;  %v3217_v34 = vld [vmem:[#allocation10 + $0xf0] ss:$8 sps:$4 sm:$0xff]   ;;  %2267 = vmatprep.subr.bf16.mxu0 %v3219_v33  ;;  %v3220_v35 = vld [vmem:[#allocation11 + $0x40] sm:$0xff]  }
 0x290   :  { %v1418_v47 = vpop.f32.mrb[3].mxu1  ;;  %v1541_v48 = vpop.f32.mrb[15].mxu0  ;;  %3246 = vtanh.f32 %v2789_v39  ;;  %2268 = vmatpush1.bf16.msra.mxu0 %v3217_v34 }
 0x291   :  { %3248 = vtanh.f32 %v2790_v42  ;;  %2761 = vmatprep.subr.bf16.mxu0 %v3220_v35 }
 0x292   :  { %3250 = vtanh.f32 %v2792_v43 }
 0x293   :  { %3252 = vtanh.f32 %v2791_v14 }
 0x29a   :  { %v3247_v29 = vpop.eup %3246 }
 0x29b   :  { %v3249_v49 = vpop.eup %3248  ;;  %v1547_v52 = vpack.c.bf16 %v3247_v29, %v3247_v29  ;;  %v3221_v29 = vld [vmem:[#allocation11] sm:$0xff]  }
 0x29c   :  { %v3251_v32 = vpop.eup %3250  ;;  %v1548_v50 = vpack.c.bf16 %v3249_v49, %v3249_v49 }
 0x29d   :  { %v1550_v54 = vpack.c.bf16 %v3251_v32, %v3251_v32  ;;  %v3253_v23 = vpop.eup %3252  ;;  %v3222_v32 = vld [vmem:[#allocation11 + $0x48] sm:$0xff]  }
 0x29e   :  { %1979 = vmatprep.mubr.bf16.mxu1 %v1548_v50  ;;  %v1549_v24 = vpack.c.bf16 %v3253_v23, %v3253_v23  ;;  %v3223_v50 = vld [vmem:[#allocation11 + $0x8] sm:$0xff]  }
 0x29f   :  { %1980 = vmatmul.mubr.bf16.vlgmr.msra.gmra.mrb[4].mxu1 %v1547_v52  ;;  %v3225_v52 = vld [vmem:[#allocation11 + $0x10] sm:$0xff]  }
 0x2a0   :  { %1989 = vmatpush1.bf16.msra.mxu1 %v3124_v51  ;;  %2020 = vmatprep.mubr.bf16.mxu1 %v1550_v54  ;;  %v3224_v51 = vld [vmem:[#allocation11 + $0x50] sm:$0xff]   ;;  %v3227_v54 = vld [vmem:[#allocation11 + $0x18] sm:$0xff]  }
 0x2a1   :  { %1990 = vmatprep.subr.bf16.mxu1 %v3129_v53  ;;  %v3226_v53 = vld [vmem:[#allocation11 + $0x58] sm:$0xff]  }
 0x2a4   :  { %1991 = vmatpush1.bf16.msra.mxu1 %v3127_v55  ;;  %v3228_v55 = vld [vmem:[#allocation11 + $0x60] sm:$0xff]  }
 0x2a5   :  { %1992 = vmatprep.subr.bf16.mxu1 %v3132_v56  ;;  %v3229_v56 = vld [vmem:[#allocation11 + $0x20] sm:$0xff]  }
 0x2a8   :  { %1993 = vmatpush1.bf16.msra.mxu1 %v3130_v57  ;;  %v3230_v57 = vld [vmem:[#allocation11 + $0x68] sm:$0xff]  }
 0x2a9   :  { %1994 = vmatprep.subr.bf16.mxu1 %v3135_v58  ;;  %v3231_v58 = vld [vmem:[#allocation11 + $0x28] sm:$0xff]  }
 0x2ac   :  { %1995 = vmatpush1.bf16.msra.mxu1 %v3133_v59  ;;  %v3232_v59 = vld [vmem:[#allocation11 + $0x70] sm:$0xff]  }
 0x2ad   :  { %1996 = vmatprep.subr.bf16.mxu1 %v3138_v60  ;;  %v3233_v60 = vld [vmem:[#allocation11 + $0x30] sm:$0xff]  }
 0x2b0   :  { %1997 = vmatpush1.bf16.msra.mxu1 %v3136_v61  ;;  %v3234_v61 = vld [vmem:[#allocation11 + $0x78] sm:$0xff]  }
 0x2b1   :  { %1998 = vmatprep.subr.bf16.mxu1 %v3141_v62  ;;  %v3235_v62 = vld [vmem:[#allocation11 + $0x38] sm:$0xff]  }
 0x2b4   :  { %1999 = vmatpush1.bf16.msra.mxu1 %v3139_v63  ;;  %v2065_v63 = vld [vmem:[%s3697_s8] sm:$0x3] }
 0x2b5   :  { %2000 = vmatprep.subr.bf16.mxu1 %v3144_v1  ;;  %v2070_v1 = vrot.slane %v2065_v63, %v3614_v19  ;;  %v2742_v19 = vld [vmem:[%s3699_s10] ss:$0 sm:$0xff] }
 0x2b8   :  { %2001 = vmatpush1.bf16.msra.mxu1 %v3142_v2  ;;  %v2074_v2 = vrot.slane %v2065_v63, %v3622_v21 }
 0x2b9   :  { %2002 = vmatprep.subr.bf16.mxu1 %v3147_v3 }
 0x2bc   :  { %2003 = vmatpush1.bf16.msra.mxu1 %v3145_v4 }
 0x2bd   :  { %2004 = vmatprep.subr.bf16.mxu1 %v3150_v5 }
 0x2c0   :  { %2005 = vmatpush1.bf16.msra.mxu1 %v3148_v6 }
 0x2c1   :  { %2006 = vmatprep.subr.bf16.mxu1 %v3153_v7 }
 0x2c4   :  { %2007 = vmatpush1.bf16.msra.mxu1 %v3151_v8 }
 0x2c5   :  { %2008 = vmatprep.subr.bf16.mxu1 %v3156_v9 }
 0x2c8   :  { %2009 = vmatpush1.bf16.msra.mxu1 %v3154_v10 }
 0x2c9   :  { %2010 = vmatprep.subr.bf16.mxu1 %v3159_v11 }
 0x2cc   :  { %2011 = vmatpush1.bf16.msra.mxu1 %v3157_v13 }
 0x2cd   :  { %2012 = vmatprep.subr.bf16.mxu1 %v3162_v0 }
 0x2d0   :  { %2013 = vmatpush1.bf16.msra.mxu1 %v3160_v15 }
 0x2d1   :  { %2014 = vmatprep.subr.bf16.mxu1 %v3165_v16 }
 0x2d4   :  { %2015 = vmatpush1.bf16.msra.mxu1 %v3163_v17 }
 0x2d5   :  { %2016 = vmatprep.subr.bf16.mxu1 %v3168_v20 }
 0x2d8   :  { %2017 = vmatpush1.bf16.msra.mxu1 %v3166_v22 }
 0x2d9   :  { %2018 = vmatprep.subr.bf16.mxu1 %v3171_v18 }
 0x2dc   :  { %2019 = vmatpush1.bf16.msra.mxu1 %v3169_v28 }
 0x2df   :  { %2021 = vmatmul.mubr.bf16.vlgmr.msra.gmra.mrb[4].mxu1 %v1549_v24 }
 0x3b2   :  { %v2022_v39 = vpop.f32.mrb[4].mxu1 }
 0x3b3   :  { %v2793_v40 = vadd.f32 %v2022_v39, %v1620_v37  ;;  %v2024_v41 = vpop.f32.mrb[5].mxu1 }
 0x3b4   :  { %v2794_v42 = vadd.f32 %v2024_v41, %v1624_v38  ;;  %v2026_v43 = vpop.f32.mrb[6].mxu1 }
 0x3b5   :  { %3254 = vtanh.f32 %v2793_v40  ;;  %v2027_v44 = vpop.f32.mrb[7].mxu1 }
 0x3b6   :  { %3256 = vtanh.f32 %v2794_v42 }
 0x3bf   :  { %v3255_v46 = vpop.eup %3254 }
 0x3c0   :  { %v3257_v47 = vpop.eup %3256  ;;  %v2031_v49 = vpack.c.bf16 %v3255_v46, %v3255_v46 }
 0x3c1   :  { %v2032_v48 = vpack.c.bf16 %v3257_v47, %v3257_v47 }
 0x3c3   :  { %2269 = vmatprep.mubr.bf16.mxu0 %v2032_v48 }
 0x3c4   :  { %2270 = vmatmul.mubr.bf16.vlgmr.msra.gmra.mrb[16].mxu0 %v2031_v49 }
 0x3c5   :  { %2762 = vmatpush3.bf16.msra.mxu0 %v3221_v29 }
 0x3c6   :  { %2763 = vmatprep.subr.bf16.mxu0 %v3222_v32 }
 0x3c9   :  { %2764 = vmatpush3.bf16.msra.mxu0 %v3223_v50 }
 0x3ca   :  { %2765 = vmatprep.subr.bf16.mxu0 %v3224_v51 }
 0x3cd   :  { %2766 = vmatpush3.bf16.msra.mxu0 %v3225_v52 }
 0x3ce   :  { %2767 = vmatprep.subr.bf16.mxu0 %v3226_v53 }
 0x3d1   :  { %2768 = vmatpush3.bf16.msra.mxu0 %v3227_v54 }
 0x3d2   :  { %2769 = vmatprep.subr.bf16.mxu0 %v3228_v55 }
 0x3d5   :  { %2770 = vmatpush3.bf16.msra.mxu0 %v3229_v56 }
 0x3d6   :  { %2771 = vmatprep.subr.bf16.mxu0 %v3230_v57 }
 0x3d9   :  { %2772 = vmatpush3.bf16.msra.mxu0 %v3231_v58 }
 0x3da   :  { %2773 = vmatprep.subr.bf16.mxu0 %v3232_v59 }
 0x3dd   :  { %2774 = vmatpush3.bf16.msra.mxu0 %v3233_v60 }
 0x3de   :  { %2775 = vmatprep.subr.bf16.mxu0 %v3234_v61 }
 0x3e1   :  { %2776 = vmatpush3.bf16.msra.mxu0 %v3235_v62 }
 0x497   :  { %v2271_v3 = vpop.f32.mrb[16].mxu0 }
 0x498   :  { %v2272_v4 = vadd.f32 %v2271_v3, %v2070_v1  ;;  %v2273_v5 = vpop.f32.mrb[17].mxu0 }
 0x499   :  { %v2274_v6 = vadd.f32 %v2273_v5, %v2074_v2  ;;  %v2275_v7 = vpop.f32.mrb[18].mxu0 }
 0x49a   :  { %3258 = vtanh.f32 %v2272_v4  ;;  %v2276_v8 = vpop.f32.mrb[19].mxu0 }
 0x49b   :  { %3260 = vtanh.f32 %v2274_v6 }
 0x4a4   :  { %v3259_v9 = vpop.eup %3258 }
 0x4a5   :  { %v3261_v10 = vpop.eup %3260  ;;  %v2280_v12 = vpack.c.bf16 %v3259_v9, %v3259_v9 }
 0x4a6   :  { %v2281_v11 = vpack.c.bf16 %v3261_v10, %v3261_v10 }
 0x4a8   :  { %2449 = vmatprep.mubr.bf16.mxu0 %v2281_v11 }
 0x4a9   :  { %2450 = vmatmul.mubr.bf16.vlgmr.msra.gmra.mrb[20].mxu0 %v2280_v12 }
 0x57c   :  { %v2777_v13 = vpop.f32.mrb[20].mxu0 }
 0x57d   :  { %v2778_v21 = vpop.f32.mrb[21].mxu0 }
 0x57e   :  { %v2779_v0 = vadd.f32 %v2778_v21, %v2777_v13  ;;  %v2780_v14 = vpop.f32.mrb[22].mxu0 }
 0x57f   :  { %v2781_v15 = vpop.f32.mrb[23].mxu0 }
 0x580   :  { %v2452_v16 = vadd.f32 %v2779_v0, %v2742_v19 }
 0x582   :  { %2457 = vst [vmem:[#allocation13] sm:$0xff] %v2452_v16 }
 0x583   :  { %3405 = shalt.err (!%p3402_p10)
}
 0x584   :  { %s3406_s10 = scalar_lea.hbm %s3700_s11, 128 }
 0x585   :  { %p3407_p11 = scmp.ne.s32.totalorder %s3700_s11, %s3406_s10  ;;  %p3410_p12 = scmp.lt.u32.totalorder %s3406_s10, %s3700_s11 }
 0x587   :  { %p3412_p13 = pnand %p3410_p12, %p3407_p11 }
 0x589   :  { %3415 = shalt.err (!%p3412_p13)
}
 0x58a   :  { %2467 = dma.vmem_to_hbm [thread:$0]  %s2465_s19, 128, %s3700_s11, [#allocation4]  }
 0x58b   :  { %3424 = dma.done.wait [#allocation4], 128  }
 0x58c   :  { %3425 = vsyncadd [#allocation4], 4294967168 }
 0x58d   :  { %2471 = vsyncpa [#allocation3], 1 }
 0x58e   :  { %2472 = vsyncpa [#allocation6], 1 }
 0x58f   :  { %2473 = vsyncpa [#allocation9], 1 }
 0x590   :  { %2474 = vsyncpa [#allocation12], 1 }
 0x591   :  { %2475 = vsyncpa [#allocation4], 1 }

</bundles_post_ra>
